<compile_context>
chip_gen: v7x
topology: tpu7x:2x2x1
jax: 0.10.0
libtpu: 0.0.40
codegen_flags: <defaults>
</compile_context>

<pallas_src>
import numpy as np

import jax
import jax.numpy as jnp
from jax.experimental import pallas as pl
from jax.experimental.pallas import tpu as pltpu


# ---------------------------------------------------------------------------
# Static model plan (synthetic, deterministic parameters)
# ---------------------------------------------------------------------------
WIDTH_MULTIPLIER = [0.25, 0.25, 0.25, 0.25]
NUM_BLOCKS = [1, 2, 2, 1]          # small synthetic stage depths
NUM_CLASSES = 10
INPUT_HW = 64                      # network input is (N, 3, 64, 64) NCHW


def build_block_plan():
    """List of (in_ch, out_ch, stride) matching the PyTorch __init__ order."""
    plan = []
    in_planes = min(64, int(64 * WIDTH_MULTIPLIER[0]))
    plan.append((3, in_planes, 2))                            # stage0
    stage_planes = [int(64 * WIDTH_MULTIPLIER[0]),
                    int(128 * WIDTH_MULTIPLIER[1]),
                    int(256 * WIDTH_MULTIPLIER[2]),
                    int(512 * WIDTH_MULTIPLIER[3])]
    for planes, nb in zip(stage_planes, NUM_BLOCKS):
        strides = [2] + [1] * (nb - 1)
        for s in strides:
            plan.append((in_planes, planes, s))
            in_planes = planes
    return plan, in_planes


BLOCK_PLAN, FINAL_CH = build_block_plan()


def build_layer_meta(hw):
    """Static per-layer meta: (cin, cout, stride, h_in); maps are square."""
    meta = []
    h = hw
    for (cin, cout, stride) in BLOCK_PLAN:
        assert h % stride == 0 and h % 2 == 0, (h, stride)
        meta.append((cin, cout, stride, h))
        h //= stride
    return meta, h


LAYER_META, FINAL_HW = build_layer_meta(INPUT_HW)
NUM_LAYERS = len(LAYER_META)


# ---------------------------------------------------------------------------
# Parameter init (raw 3x3 conv+BN-folded weights) + banded-weight preparation
# ---------------------------------------------------------------------------
def init_params(key):
    params = {"conv_w": [], "conv_b": []}
    for (cin, cout, _stride) in BLOCK_PLAN:
        key, kw, kb = jax.random.split(key, 3)
        w = jax.random.normal(kw, (3, 3, cin, cout), jnp.float32)
        w = w * (1.0 / jnp.sqrt(9.0 * cin))                   # folded conv+BN weight
        b = 0.01 * jax.random.normal(kb, (cout,), jnp.float32)
        params["conv_w"].append(w)
        params["conv_b"].append(b)
    key, kw, kb = jax.random.split(key, 3)
    lw = jax.random.normal(kw, (FINAL_CH, NUM_CLASSES), jnp.float32)
    params["lin_w"] = lw * (1.0 / jnp.sqrt(float(FINAL_CH)))
    params["lin_b"] = 0.01 * jax.random.normal(kb, (NUM_CLASSES,), jnp.float32)
    return params


def _band_weight(w3x3, stride, w_in):
    """(3,3,Cin,Cout) conv weight -> (3, W_in*Cin, OW*Cout) banded matrices.

    B[kh, w*Cin+ci, c*Cout+co] = w3x3[kh, kw, ci, co] with w = stride*c + kw - 1
    (pad=1).  Entries whose input column falls in the width padding are zero,
    so the kernel never needs width-padded activations; only a 1-row height
    halo is needed, which the kernel builds with zero-row concatenation.
    """
    w_np = np.asarray(jax.device_get(w3x3), np.float32)
    cin, cout = w_np.shape[2], w_np.shape[3]
    ow = w_in // stride
    band = np.zeros((3, w_in * cin, ow * cout), np.float32)
    for kh in range(3):
        for c in range(ow):
            for kw in range(3):
                win = stride * c + kw - 1
                if 0 <= win < w_in:
                    band[kh, win * cin:(win + 1) * cin,
                         c * cout:(c + 1) * cout] = w_np[kh, kw]
    return jnp.asarray(band, jnp.bfloat16)


def prepare_params(params):
    prepared = {"w": [], "b": []}
    for (cin, cout, stride, h_in), w, b in zip(LAYER_META, params["conv_w"],
                                               params["conv_b"]):
        ow = h_in // stride
        prepared["w"].append(_band_weight(w, stride, h_in))
        # Bias broadcast over the (c, co) lane layout of the layer output.
        prepared["b"].append(
            jnp.tile(b, ow).reshape(1, ow * cout).astype(jnp.float32))
    prepared["lin_w"] = params["lin_w"].astype(jnp.float32)
    prepared["lin_b"] = params["lin_b"].reshape(1, NUM_CLASSES).astype(jnp.float32)
    return prepared


# ---------------------------------------------------------------------------
# Fused Pallas kernel: whole network for one image, VMEM resident
# ---------------------------------------------------------------------------
def _row_parity_select(x, parity):
    """Rows r of x with r % 2 == parity, in order.  Implemented as an exact
    0/1 selection matmul so no strided sub-lane loads are needed anywhere."""
    oh = x.shape[0]
    half = oh // 2
    i = jax.lax.broadcasted_iota(jnp.int32, (half, oh), 0)
    j = jax.lax.broadcasted_iota(jnp.int32, (half, oh), 1)
    sel = (j == 2 * i + parity).astype(x.dtype)
    return jnp.dot(sel, x, preferred_element_type=jnp.float32).astype(x.dtype)


def _fused_repvgg_kernel(*refs):
    """7 conv3x3(+bias+ReLU) blocks as banded matmuls, then GAP + Linear."""
    x_ref = refs[0]
    w_refs = refs[1:1 + NUM_LAYERS]
    b_refs = refs[1 + NUM_LAYERS:1 + 2 * NUM_LAYERS]
    lw_ref = refs[1 + 2 * NUM_LAYERS]
    lb_ref = refs[2 + 2 * NUM_LAYERS]
    o_ref = refs[3 + 2 * NUM_LAYERS]

    # Network input: even / odd height-padded rows, each (H/2 + 1, W*Cin) bf16.
    feed_split = (x_ref[0, 0], x_ref[0, 1])
    feed_plain = None

    act_f32 = None
    for li, (cin, cout, stride, h_in) in enumerate(LAYER_META):
        oh = h_in // stride                      # output rows
        ow = h_in // stride                      # output cols (square maps)
        nlanes = ow * cout

        # LHS rows for the three kernel rows: static contiguous slices only.
        if stride == 2:
            ep, op = feed_split                  # even / odd height-padded rows
            lhs = (ep[0:oh], op[0:oh], ep[1:oh + 1])
        else:
            p = feed_plain                       # all height-padded rows
            lhs = (p[0:oh], p[1:oh + 1], p[2:oh + 2])

        acc = jnp.zeros((oh, nlanes), jnp.float32)
        for kh in range(3):
            acc = acc + jnp.dot(lhs[kh], w_refs[li][kh],
                                preferred_element_type=jnp.float32)
        act_f32 = jnp.maximum(acc + b_refs[li][...], 0.0)

        if li + 1 < NUM_LAYERS:
            act = act_f32.astype(jnp.bfloat16)
            zero = jnp.zeros((1, nlanes), jnp.bfloat16)
            if LAYER_META[li + 1][2] == 2:
                # Next layer is stride-2: hand it even/odd *padded* rows.
                even = _row_parity_select(act, 0)
                odd = _row_parity_select(act, 1)
                feed_split = (jnp.concatenate([zero, odd], axis=0),
                              jnp.concatenate([even, zero], axis=0))
                feed_plain = None
            else:
                feed_plain = jnp.concatenate([zero, act, zero], axis=0)
                feed_split = None

    # AdaptiveAvgPool2d(1) + flatten + Linear (f32, matching the reference).
    cout_last = LAYER_META[-1][1]
    ow_last = LAYER_META[-1][3] // LAYER_META[-1][2]
    col_sum = jnp.sum(act_f32, axis=0, keepdims=True)         # (1, ow_last*cout)
    pooled = jnp.zeros((1, cout_last), jnp.float32)
    for c in range(ow_last):
        pooled = pooled + col_sum[:, c * cout_last:(c + 1) * cout_last]
    pooled = pooled * (1.0 / float(ow_last * ow_last))
    logits = jnp.dot(pooled, lw_ref[...],
                     preferred_element_type=jnp.float32) + lb_ref[...]
    o_ref[0] = logits.astype(o_ref.dtype)


# ---------------------------------------------------------------------------
# Wrapper: one pallas_call for the whole network
# ---------------------------------------------------------------------------
def _cost_estimate(batch):
    flops = 0
    for (cin, cout, stride, h_in) in LAYER_META:
        oh = h_in // stride
        flops += 2 * 3 * oh * (h_in * cin) * (oh * cout)      # banded matmuls
    flops += 2 * FINAL_CH * NUM_CLASSES
    flops *= batch
    bytes_w = sum(3 * (h * cin) * ((h // s) * cout) * 2 + (h // s) * cout * 4
                  for (cin, cout, s, h) in LAYER_META)
    bytes_x = batch * 2 * (INPUT_HW // 2 + 1) * INPUT_HW * 3 * 2
    bytes_head = FINAL_CH * NUM_CLASSES * 4 + NUM_CLASSES * 4
    bytes_out = batch * NUM_CLASSES * 4
    return pl.CostEstimate(flops=flops, transcendentals=0,
                           bytes_accessed=bytes_x + bytes_w + bytes_head + bytes_out)


@jax.jit
def repvgg_quant_forward(prepared, x_nchw):
    n, c, h, w = x_nchw.shape
    assert (c, h, w) == (3, INPUT_HW, INPUT_HW), (c, h, w)
    # QuantStub / DeQuantStub are identity in the float path.
    x = jnp.transpose(x_nchw, (0, 2, 3, 1)).astype(jnp.bfloat16)   # NHWC
    x = x.reshape(n, h, w * c)                                     # row -> lanes
    x = jnp.pad(x, ((0, 0), (1, 1), (0, 0)))                       # height halo only
    x_split = jnp.stack([x[:, 0::2, :], x[:, 1::2, :]], axis=1)    # (n,2,h/2+1,w*c)
    hp2 = h // 2 + 1

    in_specs = [pl.BlockSpec((1, 2, hp2, w * c), lambda i: (i, 0, 0, 0))]
    operands = [x_split]
    for wt in prepared["w"]:
        in_specs.append(pl.BlockSpec(wt.shape, lambda i: (0, 0, 0)))
        operands.append(wt)
    for bt in prepared["b"]:
        in_specs.append(pl.BlockSpec(bt.shape, lambda i: (0, 0)))
        operands.append(bt)
    in_specs.append(pl.BlockSpec(prepared["lin_w"].shape, lambda i: (0, 0)))
    operands.append(prepared["lin_w"])
    in_specs.append(pl.BlockSpec(prepared["lin_b"].shape, lambda i: (0, 0)))
    operands.append(prepared["lin_b"])

    out = pl.pallas_call(
        _fused_repvgg_kernel,
        out_shape=jax.ShapeDtypeStruct((n, 1, NUM_CLASSES), jnp.float32),
        grid=(n,),
        in_specs=in_specs,
        out_specs=pl.BlockSpec((1, 1, NUM_CLASSES), lambda i: (i, 0, 0)),
        compiler_params=pltpu.CompilerParams(
            dimension_semantics=("parallel",)),
        cost_estimate=_cost_estimate(n),
    )(*operands)
    return out.reshape(n, NUM_CLASSES)


# ---------------------------------------------------------------------------
# Pure-JAX reference (same bf16 activation/weight quantization, f32 accumulate)
# ---------------------------------------------------------------------------
def repvgg_reference(params, x_nchw):
    x = jnp.transpose(x_nchw, (0, 2, 3, 1)).astype(jnp.bfloat16)
    y = None
    for (cin, cout, stride), w, b in zip(BLOCK_PLAN, params["conv_w"],
                                         params["conv_b"]):
        y = jax.lax.conv_general_dilated(
            x, w.astype(jnp.bfloat16), window_strides=(stride, stride),
            padding=((1, 1), (1, 1)),
            dimension_numbers=("NHWC", "HWIO", "NHWC"),
            preferred_element_type=jnp.float32)
        y = jnp.maximum(y + b, 0.0)
        x = y.astype(jnp.bfloat16)
    pooled = jnp.mean(y, axis=(1, 2))
    return pooled @ params["lin_w"] + params["lin_b"]


if __name__ == "__main__":
    key = jax.random.PRNGKey(0)
    params = init_params(key)
    prepared = prepare_params(params)

    key, kx = jax.random.split(key)
    x = jax.random.normal(kx, (2, 3, INPUT_HW, INPUT_HW), jnp.float32)  # NCHW

    out = jax.block_until_ready(repvgg_quant_forward(prepared, x))
    assert out.shape == (2, NUM_CLASSES), out.shape

    ref = jax.block_until_ready(jax.jit(repvgg_reference)(params, x))
    assert jnp.allclose(out, ref, rtol=2e-2, atol=2e-2), (out, ref)

    print("KERNEL_OK")
</pallas_src>

<mosaic_0001>
module attributes {stable_mosaic.version = 11 : i64} {
  func.func @_fused_repvgg_kernel(%arg0: i32, %arg1: memref<1x2x33x192xbf16, #tpu.memory_space<vmem>>, %arg2: memref<3x192x512xbf16, #tpu.memory_space<vmem>>, %arg3: memref<3x512x256xbf16, #tpu.memory_space<vmem>>, %arg4: memref<3x256x256xbf16, #tpu.memory_space<vmem>>, %arg5: memref<3x256x256xbf16, #tpu.memory_space<vmem>>, %arg6: memref<3x256x256xbf16, #tpu.memory_space<vmem>>, %arg7: memref<3x256x256xbf16, #tpu.memory_space<vmem>>, %arg8: memref<3x256x256xbf16, #tpu.memory_space<vmem>>, %arg9: memref<1x512xf32, #tpu.memory_space<vmem>>, %arg10: memref<1x256xf32, #tpu.memory_space<vmem>>, %arg11: memref<1x256xf32, #tpu.memory_space<vmem>>, %arg12: memref<1x256xf32, #tpu.memory_space<vmem>>, %arg13: memref<1x256xf32, #tpu.memory_space<vmem>>, %arg14: memref<1x256xf32, #tpu.memory_space<vmem>>, %arg15: memref<1x256xf32, #tpu.memory_space<vmem>>, %arg16: memref<128x10xf32, #tpu.memory_space<vmem>>, %arg17: memref<1x10xf32, #tpu.memory_space<vmem>>, %arg18: memref<1x1x10xf32, #tpu.memory_space<vmem>>) attributes {dimension_semantics = [#tpu.dimension_semantics<parallel>], iteration_bounds = array<i64: 2>, scalar_prefetch = 0 : i64, scratch_operands = 0 : i64, tpu.core_type = #tpu.core_type<tc>, window_params = [{transform_indices = @transform_0, window_bounds = array<i64: 1, 2, 33, 192>}, {pipeline_mode = #tpu.pipeline_mode<synchronous>, transform_indices = @transform_1, window_bounds = array<i64: 3, 192, 512>}, {pipeline_mode = #tpu.pipeline_mode<synchronous>, transform_indices = @transform_2, window_bounds = array<i64: 3, 512, 256>}, {pipeline_mode = #tpu.pipeline_mode<synchronous>, transform_indices = @transform_3, window_bounds = array<i64: 3, 256, 256>}, {pipeline_mode = #tpu.pipeline_mode<synchronous>, transform_indices = @transform_4, window_bounds = array<i64: 3, 256, 256>}, {pipeline_mode = #tpu.pipeline_mode<synchronous>, transform_indices = @transform_5, window_bounds = array<i64: 3, 256, 256>}, {pipeline_mode = #tpu.pipeline_mode<synchronous>, transform_indices = @transform_6, window_bounds = array<i64: 3, 256, 256>}, {pipeline_mode = #tpu.pipeline_mode<synchronous>, transform_indices = @transform_7, window_bounds = array<i64: 3, 256, 256>}, {pipeline_mode = #tpu.pipeline_mode<synchronous>, transform_indices = @transform_8, window_bounds = array<i64: 1, 512>}, {pipeline_mode = #tpu.pipeline_mode<synchronous>, transform_indices = @transform_9, window_bounds = array<i64: 1, 256>}, {pipeline_mode = #tpu.pipeline_mode<synchronous>, transform_indices = @transform_10, window_bounds = array<i64: 1, 256>}, {pipeline_mode = #tpu.pipeline_mode<synchronous>, transform_indices = @transform_11, window_bounds = array<i64: 1, 256>}, {pipeline_mode = #tpu.pipeline_mode<synchronous>, transform_indices = @transform_12, window_bounds = array<i64: 1, 256>}, {pipeline_mode = #tpu.pipeline_mode<synchronous>, transform_indices = @transform_13, window_bounds = array<i64: 1, 256>}, {pipeline_mode = #tpu.pipeline_mode<synchronous>, transform_indices = @transform_14, window_bounds = array<i64: 1, 256>}, {pipeline_mode = #tpu.pipeline_mode<synchronous>, transform_indices = @transform_15, window_bounds = array<i64: 128, 10>}, {pipeline_mode = #tpu.pipeline_mode<synchronous>, transform_indices = @transform_16, window_bounds = array<i64: 1, 10>}, {transform_indices = @transform_17, window_bounds = array<i64: 1, 1, 10>}]} {
    %c0 = arith.constant 0 : index
    %c0_0 = arith.constant 0 : index
    %c0_1 = arith.constant 0 : index
    %c0_2 = arith.constant 0 : index
    %0 = vector.load %arg1[%c0, %c0_0, %c0_1, %c0_2] : memref<1x2x33x192xbf16, #tpu.memory_space<vmem>>, vector<1x1x33x192xbf16>
    %1 = vector.shape_cast %0 : vector<1x1x33x192xbf16> to vector<33x192xbf16>
    %c0_3 = arith.constant 0 : index
    %c1 = arith.constant 1 : index
    %c0_4 = arith.constant 0 : index
    %c0_5 = arith.constant 0 : index
    %2 = vector.load %arg1[%c0_3, %c1, %c0_4, %c0_5] : memref<1x2x33x192xbf16, #tpu.memory_space<vmem>>, vector<1x1x33x192xbf16>
    %3 = vector.shape_cast %2 : vector<1x1x33x192xbf16> to vector<33x192xbf16>
    %4 = vector.extract_strided_slice %1 {offsets = [0, 0], sizes = [32, 192], strides = [1, 1]} : vector<33x192xbf16> to vector<32x192xbf16>
    %5 = vector.extract_strided_slice %3 {offsets = [0, 0], sizes = [32, 192], strides = [1, 1]} : vector<33x192xbf16> to vector<32x192xbf16>
    %6 = vector.extract_strided_slice %1 {offsets = [1, 0], sizes = [32, 192], strides = [1, 1]} : vector<33x192xbf16> to vector<32x192xbf16>
    %cst = arith.constant 0.000000e+00 : f32
    %7 = vector.broadcast %cst : f32 to vector<32x512xf32>
    %c0_6 = arith.constant 0 : index
    %c0_7 = arith.constant 0 : index
    %c0_8 = arith.constant 0 : index
    %8 = vector.load %arg2[%c0_6, %c0_7, %c0_8] : memref<3x192x512xbf16, #tpu.memory_space<vmem>>, vector<1x192x512xbf16>
    %9 = vector.shape_cast %8 : vector<1x192x512xbf16> to vector<192x512xbf16>
    %cst_9 = arith.constant dense<0.000000e+00> : vector<32x512xf32>
    %10 = tpu.matmul %4, %9, %cst_9 {dimension_numbers = #tpu.dot_dimension_numbers<[1], [0], [0], [1], [0, 0, 1, 1], [], []>} : vector<32x192xbf16>, vector<192x512xbf16>, vector<32x512xf32> -> vector<32x512xf32>
    %11 = arith.addf %7, %10 : vector<32x512xf32>
    %c1_10 = arith.constant 1 : index
    %c0_11 = arith.constant 0 : index
    %c0_12 = arith.constant 0 : index
    %12 = vector.load %arg2[%c1_10, %c0_11, %c0_12] : memref<3x192x512xbf16, #tpu.memory_space<vmem>>, vector<1x192x512xbf16>
    %13 = vector.shape_cast %12 : vector<1x192x512xbf16> to vector<192x512xbf16>
    %cst_13 = arith.constant dense<0.000000e+00> : vector<32x512xf32>
    %14 = tpu.matmul %5, %13, %cst_13 {dimension_numbers = #tpu.dot_dimension_numbers<[1], [0], [0], [1], [0, 0, 1, 1], [], []>} : vector<32x192xbf16>, vector<192x512xbf16>, vector<32x512xf32> -> vector<32x512xf32>
    %15 = arith.addf %11, %14 : vector<32x512xf32>
    %c2 = arith.constant 2 : index
    %c0_14 = arith.constant 0 : index
    %c0_15 = arith.constant 0 : index
    %16 = vector.load %arg2[%c2, %c0_14, %c0_15] : memref<3x192x512xbf16, #tpu.memory_space<vmem>>, vector<1x192x512xbf16>
    %17 = vector.shape_cast %16 : vector<1x192x512xbf16> to vector<192x512xbf16>
    %cst_16 = arith.constant dense<0.000000e+00> : vector<32x512xf32>
    %18 = tpu.matmul %6, %17, %cst_16 {dimension_numbers = #tpu.dot_dimension_numbers<[1], [0], [0], [1], [0, 0, 1, 1], [], []>} : vector<32x192xbf16>, vector<192x512xbf16>, vector<32x512xf32> -> vector<32x512xf32>
    %19 = arith.addf %15, %18 : vector<32x512xf32>
    %c0_17 = arith.constant 0 : index
    %c0_18 = arith.constant 0 : index
    %20 = vector.load %arg9[%c0_17, %c0_18] : memref<1x512xf32, #tpu.memory_space<vmem>>, vector<1x512xf32>
    %21 = vector.broadcast %20 : vector<1x512xf32> to vector<32x512xf32>
    %22 = arith.addf %19, %21 : vector<32x512xf32>
    %cst_19 = arith.constant 0.000000e+00 : f32
    %23 = vector.broadcast %cst_19 : f32 to vector<32x512xf32>
    %24 = arith.maximumf %22, %23 : vector<32x512xf32>
    %25 = arith.truncf %24 : vector<32x512xf32> to vector<32x512xbf16>
    %cst_20 = arith.constant 0.000000e+00 : bf16
    %26 = vector.broadcast %cst_20 : bf16 to vector<1x512xbf16>
    %27 = tpu.iota {dimensions = array<i32: 0>} : vector<16x32xi32>
    %28 = tpu.iota {dimensions = array<i32: 1>} : vector<16x32xi32>
    %c2_i32 = arith.constant 2 : i32
    %29 = vector.broadcast %c2_i32 : i32 to vector<16x32xi32>
    %30 = arith.muli %29, %27 : vector<16x32xi32>
    %c0_i32 = arith.constant 0 : i32
    %31 = vector.broadcast %c0_i32 : i32 to vector<16x32xi32>
    %32 = arith.addi %30, %31 : vector<16x32xi32>
    %33 = arith.cmpi eq, %28, %32 : vector<16x32xi32>
    %34 = arith.extui %33 : vector<16x32xi1> to vector<16x32xi32>
    %35 = arith.sitofp %34 : vector<16x32xi32> to vector<16x32xf32>
    %36 = arith.truncf %35 : vector<16x32xf32> to vector<16x32xbf16>
    %cst_21 = arith.constant dense<0.000000e+00> : vector<16x512xf32>
    %37 = tpu.matmul %36, %25, %cst_21 {dimension_numbers = #tpu.dot_dimension_numbers<[1], [0], [0], [1], [0, 0, 1, 1], [], []>} : vector<16x32xbf16>, vector<32x512xbf16>, vector<16x512xf32> -> vector<16x512xf32>
    %38 = arith.truncf %37 : vector<16x512xf32> to vector<16x512xbf16>
    %39 = tpu.iota {dimensions = array<i32: 0>} : vector<16x32xi32>
    %40 = tpu.iota {dimensions = array<i32: 1>} : vector<16x32xi32>
    %c2_i32_22 = arith.constant 2 : i32
    %41 = vector.broadcast %c2_i32_22 : i32 to vector<16x32xi32>
    %42 = arith.muli %41, %39 : vector<16x32xi32>
    %c1_i32 = arith.constant 1 : i32
    %43 = vector.broadcast %c1_i32 : i32 to vector<16x32xi32>
    %44 = arith.addi %42, %43 : vector<16x32xi32>
    %45 = arith.cmpi eq, %40, %44 : vector<16x32xi32>
    %46 = arith.extui %45 : vector<16x32xi1> to vector<16x32xi32>
    %47 = arith.sitofp %46 : vector<16x32xi32> to vector<16x32xf32>
    %48 = arith.truncf %47 : vector<16x32xf32> to vector<16x32xbf16>
    %cst_23 = arith.constant dense<0.000000e+00> : vector<16x512xf32>
    %49 = tpu.matmul %48, %25, %cst_23 {dimension_numbers = #tpu.dot_dimension_numbers<[1], [0], [0], [1], [0, 0, 1, 1], [], []>} : vector<16x32xbf16>, vector<32x512xbf16>, vector<16x512xf32> -> vector<16x512xf32>
    %50 = arith.truncf %49 : vector<16x512xf32> to vector<16x512xbf16>
    %51 = tpu.concatenate %26, %50 in 0 : vector<1x512xbf16>, vector<16x512xbf16> -> vector<17x512xbf16>
    %52 = tpu.concatenate %38, %26 in 0 : vector<16x512xbf16>, vector<1x512xbf16> -> vector<17x512xbf16>
    %53 = vector.extract_strided_slice %51 {offsets = [0, 0], sizes = [16, 512], strides = [1, 1]} : vector<17x512xbf16> to vector<16x512xbf16>
    %54 = vector.extract_strided_slice %52 {offsets = [0, 0], sizes = [16, 512], strides = [1, 1]} : vector<17x512xbf16> to vector<16x512xbf16>
    %55 = vector.extract_strided_slice %51 {offsets = [1, 0], sizes = [16, 512], strides = [1, 1]} : vector<17x512xbf16> to vector<16x512xbf16>
    %cst_24 = arith.constant 0.000000e+00 : f32
    %56 = vector.broadcast %cst_24 : f32 to vector<16x256xf32>
    %c0_25 = arith.constant 0 : index
    %c0_26 = arith.constant 0 : index
    %c0_27 = arith.constant 0 : index
    %57 = vector.load %arg3[%c0_25, %c0_26, %c0_27] : memref<3x512x256xbf16, #tpu.memory_space<vmem>>, vector<1x512x256xbf16>
    %58 = vector.shape_cast %57 : vector<1x512x256xbf16> to vector<512x256xbf16>
    %cst_28 = arith.constant dense<0.000000e+00> : vector<16x256xf32>
    %59 = tpu.matmul %53, %58, %cst_28 {dimension_numbers = #tpu.dot_dimension_numbers<[1], [0], [0], [1], [0, 0, 1, 1], [], []>} : vector<16x512xbf16>, vector<512x256xbf16>, vector<16x256xf32> -> vector<16x256xf32>
    %60 = arith.addf %56, %59 : vector<16x256xf32>
    %c1_29 = arith.constant 1 : index
    %c0_30 = arith.constant 0 : index
    %c0_31 = arith.constant 0 : index
    %61 = vector.load %arg3[%c1_29, %c0_30, %c0_31] : memref<3x512x256xbf16, #tpu.memory_space<vmem>>, vector<1x512x256xbf16>
    %62 = vector.shape_cast %61 : vector<1x512x256xbf16> to vector<512x256xbf16>
    %cst_32 = arith.constant dense<0.000000e+00> : vector<16x256xf32>
    %63 = tpu.matmul %54, %62, %cst_32 {dimension_numbers = #tpu.dot_dimension_numbers<[1], [0], [0], [1], [0, 0, 1, 1], [], []>} : vector<16x512xbf16>, vector<512x256xbf16>, vector<16x256xf32> -> vector<16x256xf32>
    %64 = arith.addf %60, %63 : vector<16x256xf32>
    %c2_33 = arith.constant 2 : index
    %c0_34 = arith.constant 0 : index
    %c0_35 = arith.constant 0 : index
    %65 = vector.load %arg3[%c2_33, %c0_34, %c0_35] : memref<3x512x256xbf16, #tpu.memory_space<vmem>>, vector<1x512x256xbf16>
    %66 = vector.shape_cast %65 : vector<1x512x256xbf16> to vector<512x256xbf16>
    %cst_36 = arith.constant dense<0.000000e+00> : vector<16x256xf32>
    %67 = tpu.matmul %55, %66, %cst_36 {dimension_numbers = #tpu.dot_dimension_numbers<[1], [0], [0], [1], [0, 0, 1, 1], [], []>} : vector<16x512xbf16>, vector<512x256xbf16>, vector<16x256xf32> -> vector<16x256xf32>
    %68 = arith.addf %64, %67 : vector<16x256xf32>
    %c0_37 = arith.constant 0 : index
    %c0_38 = arith.constant 0 : index
    %69 = vector.load %arg10[%c0_37, %c0_38] : memref<1x256xf32, #tpu.memory_space<vmem>>, vector<1x256xf32>
    %70 = vector.broadcast %69 : vector<1x256xf32> to vector<16x256xf32>
    %71 = arith.addf %68, %70 : vector<16x256xf32>
    %cst_39 = arith.constant 0.000000e+00 : f32
    %72 = vector.broadcast %cst_39 : f32 to vector<16x256xf32>
    %73 = arith.maximumf %71, %72 : vector<16x256xf32>
    %74 = arith.truncf %73 : vector<16x256xf32> to vector<16x256xbf16>
    %cst_40 = arith.constant 0.000000e+00 : bf16
    %75 = vector.broadcast %cst_40 : bf16 to vector<1x256xbf16>
    %76 = tpu.iota {dimensions = array<i32: 0>} : vector<8x16xi32>
    %77 = tpu.iota {dimensions = array<i32: 1>} : vector<8x16xi32>
    %c2_i32_41 = arith.constant 2 : i32
    %78 = vector.broadcast %c2_i32_41 : i32 to vector<8x16xi32>
    %79 = arith.muli %78, %76 : vector<8x16xi32>
    %c0_i32_42 = arith.constant 0 : i32
    %80 = vector.broadcast %c0_i32_42 : i32 to vector<8x16xi32>
    %81 = arith.addi %79, %80 : vector<8x16xi32>
    %82 = arith.cmpi eq, %77, %81 : vector<8x16xi32>
    %83 = arith.extui %82 : vector<8x16xi1> to vector<8x16xi32>
    %84 = arith.sitofp %83 : vector<8x16xi32> to vector<8x16xf32>
    %85 = arith.truncf %84 : vector<8x16xf32> to vector<8x16xbf16>
    %cst_43 = arith.constant dense<0.000000e+00> : vector<8x256xf32>
    %86 = tpu.matmul %85, %74, %cst_43 {dimension_numbers = #tpu.dot_dimension_numbers<[1], [0], [0], [1], [0, 0, 1, 1], [], []>} : vector<8x16xbf16>, vector<16x256xbf16>, vector<8x256xf32> -> vector<8x256xf32>
    %87 = arith.truncf %86 : vector<8x256xf32> to vector<8x256xbf16>
    %88 = tpu.iota {dimensions = array<i32: 0>} : vector<8x16xi32>
    %89 = tpu.iota {dimensions = array<i32: 1>} : vector<8x16xi32>
    %c2_i32_44 = arith.constant 2 : i32
    %90 = vector.broadcast %c2_i32_44 : i32 to vector<8x16xi32>
    %91 = arith.muli %90, %88 : vector<8x16xi32>
    %c1_i32_45 = arith.constant 1 : i32
    %92 = vector.broadcast %c1_i32_45 : i32 to vector<8x16xi32>
    %93 = arith.addi %91, %92 : vector<8x16xi32>
    %94 = arith.cmpi eq, %89, %93 : vector<8x16xi32>
    %95 = arith.extui %94 : vector<8x16xi1> to vector<8x16xi32>
    %96 = arith.sitofp %95 : vector<8x16xi32> to vector<8x16xf32>
    %97 = arith.truncf %96 : vector<8x16xf32> to vector<8x16xbf16>
    %cst_46 = arith.constant dense<0.000000e+00> : vector<8x256xf32>
    %98 = tpu.matmul %97, %74, %cst_46 {dimension_numbers = #tpu.dot_dimension_numbers<[1], [0], [0], [1], [0, 0, 1, 1], [], []>} : vector<8x16xbf16>, vector<16x256xbf16>, vector<8x256xf32> -> vector<8x256xf32>
    %99 = arith.truncf %98 : vector<8x256xf32> to vector<8x256xbf16>
    %100 = tpu.concatenate %75, %99 in 0 : vector<1x256xbf16>, vector<8x256xbf16> -> vector<9x256xbf16>
    %101 = tpu.concatenate %87, %75 in 0 : vector<8x256xbf16>, vector<1x256xbf16> -> vector<9x256xbf16>
    %102 = vector.extract_strided_slice %100 {offsets = [0, 0], sizes = [8, 256], strides = [1, 1]} : vector<9x256xbf16> to vector<8x256xbf16>
    %103 = vector.extract_strided_slice %101 {offsets = [0, 0], sizes = [8, 256], strides = [1, 1]} : vector<9x256xbf16> to vector<8x256xbf16>
    %104 = vector.extract_strided_slice %100 {offsets = [1, 0], sizes = [8, 256], strides = [1, 1]} : vector<9x256xbf16> to vector<8x256xbf16>
    %cst_47 = arith.constant 0.000000e+00 : f32
    %105 = vector.broadcast %cst_47 : f32 to vector<8x256xf32>
    %c0_48 = arith.constant 0 : index
    %c0_49 = arith.constant 0 : index
    %c0_50 = arith.constant 0 : index
    %106 = vector.load %arg4[%c0_48, %c0_49, %c0_50] : memref<3x256x256xbf16, #tpu.memory_space<vmem>>, vector<1x256x256xbf16>
    %107 = vector.shape_cast %106 : vector<1x256x256xbf16> to vector<256x256xbf16>
    %cst_51 = arith.constant dense<0.000000e+00> : vector<8x256xf32>
    %108 = tpu.matmul %102, %107, %cst_51 {dimension_numbers = #tpu.dot_dimension_numbers<[1], [0], [0], [1], [0, 0, 1, 1], [], []>} : vector<8x256xbf16>, vector<256x256xbf16>, vector<8x256xf32> -> vector<8x256xf32>
    %109 = arith.addf %105, %108 : vector<8x256xf32>
    %c1_52 = arith.constant 1 : index
    %c0_53 = arith.constant 0 : index
    %c0_54 = arith.constant 0 : index
    %110 = vector.load %arg4[%c1_52, %c0_53, %c0_54] : memref<3x256x256xbf16, #tpu.memory_space<vmem>>, vector<1x256x256xbf16>
    %111 = vector.shape_cast %110 : vector<1x256x256xbf16> to vector<256x256xbf16>
    %cst_55 = arith.constant dense<0.000000e+00> : vector<8x256xf32>
    %112 = tpu.matmul %103, %111, %cst_55 {dimension_numbers = #tpu.dot_dimension_numbers<[1], [0], [0], [1], [0, 0, 1, 1], [], []>} : vector<8x256xbf16>, vector<256x256xbf16>, vector<8x256xf32> -> vector<8x256xf32>
    %113 = arith.addf %109, %112 : vector<8x256xf32>
    %c2_56 = arith.constant 2 : index
    %c0_57 = arith.constant 0 : index
    %c0_58 = arith.constant 0 : index
    %114 = vector.load %arg4[%c2_56, %c0_57, %c0_58] : memref<3x256x256xbf16, #tpu.memory_space<vmem>>, vector<1x256x256xbf16>
    %115 = vector.shape_cast %114 : vector<1x256x256xbf16> to vector<256x256xbf16>
    %cst_59 = arith.constant dense<0.000000e+00> : vector<8x256xf32>
    %116 = tpu.matmul %104, %115, %cst_59 {dimension_numbers = #tpu.dot_dimension_numbers<[1], [0], [0], [1], [0, 0, 1, 1], [], []>} : vector<8x256xbf16>, vector<256x256xbf16>, vector<8x256xf32> -> vector<8x256xf32>
    %117 = arith.addf %113, %116 : vector<8x256xf32>
    %c0_60 = arith.constant 0 : index
    %c0_61 = arith.constant 0 : index
    %118 = vector.load %arg11[%c0_60, %c0_61] : memref<1x256xf32, #tpu.memory_space<vmem>>, vector<1x256xf32>
    %119 = vector.broadcast %118 : vector<1x256xf32> to vector<8x256xf32>
    %120 = arith.addf %117, %119 : vector<8x256xf32>
    %cst_62 = arith.constant 0.000000e+00 : f32
    %121 = vector.broadcast %cst_62 : f32 to vector<8x256xf32>
    %122 = arith.maximumf %120, %121 : vector<8x256xf32>
    %123 = arith.truncf %122 : vector<8x256xf32> to vector<8x256xbf16>
    %cst_63 = arith.constant 0.000000e+00 : bf16
    %124 = vector.broadcast %cst_63 : bf16 to vector<1x256xbf16>
    %125 = tpu.concatenate %124, %123, %124 in 0 : vector<1x256xbf16>, vector<8x256xbf16>, vector<1x256xbf16> -> vector<10x256xbf16>
    %126 = vector.extract_strided_slice %125 {offsets = [0, 0], sizes = [8, 256], strides = [1, 1]} : vector<10x256xbf16> to vector<8x256xbf16>
    %127 = vector.extract_strided_slice %125 {offsets = [1, 0], sizes = [8, 256], strides = [1, 1]} : vector<10x256xbf16> to vector<8x256xbf16>
    %128 = vector.extract_strided_slice %125 {offsets = [2, 0], sizes = [8, 256], strides = [1, 1]} : vector<10x256xbf16> to vector<8x256xbf16>
    %cst_64 = arith.constant 0.000000e+00 : f32
    %129 = vector.broadcast %cst_64 : f32 to vector<8x256xf32>
    %c0_65 = arith.constant 0 : index
    %c0_66 = arith.constant 0 : index
    %c0_67 = arith.constant 0 : index
    %130 = vector.load %arg5[%c0_65, %c0_66, %c0_67] : memref<3x256x256xbf16, #tpu.memory_space<vmem>>, vector<1x256x256xbf16>
    %131 = vector.shape_cast %130 : vector<1x256x256xbf16> to vector<256x256xbf16>
    %cst_68 = arith.constant dense<0.000000e+00> : vector<8x256xf32>
    %132 = tpu.matmul %126, %131, %cst_68 {dimension_numbers = #tpu.dot_dimension_numbers<[1], [0], [0], [1], [0, 0, 1, 1], [], []>} : vector<8x256xbf16>, vector<256x256xbf16>, vector<8x256xf32> -> vector<8x256xf32>
    %133 = arith.addf %129, %132 : vector<8x256xf32>
    %c1_69 = arith.constant 1 : index
    %c0_70 = arith.constant 0 : index
    %c0_71 = arith.constant 0 : index
    %134 = vector.load %arg5[%c1_69, %c0_70, %c0_71] : memref<3x256x256xbf16, #tpu.memory_space<vmem>>, vector<1x256x256xbf16>
    %135 = vector.shape_cast %134 : vector<1x256x256xbf16> to vector<256x256xbf16>
    %cst_72 = arith.constant dense<0.000000e+00> : vector<8x256xf32>
    %136 = tpu.matmul %127, %135, %cst_72 {dimension_numbers = #tpu.dot_dimension_numbers<[1], [0], [0], [1], [0, 0, 1, 1], [], []>} : vector<8x256xbf16>, vector<256x256xbf16>, vector<8x256xf32> -> vector<8x256xf32>
    %137 = arith.addf %133, %136 : vector<8x256xf32>
    %c2_73 = arith.constant 2 : index
    %c0_74 = arith.constant 0 : index
    %c0_75 = arith.constant 0 : index
    %138 = vector.load %arg5[%c2_73, %c0_74, %c0_75] : memref<3x256x256xbf16, #tpu.memory_space<vmem>>, vector<1x256x256xbf16>
    %139 = vector.shape_cast %138 : vector<1x256x256xbf16> to vector<256x256xbf16>
    %cst_76 = arith.constant dense<0.000000e+00> : vector<8x256xf32>
    %140 = tpu.matmul %128, %139, %cst_76 {dimension_numbers = #tpu.dot_dimension_numbers<[1], [0], [0], [1], [0, 0, 1, 1], [], []>} : vector<8x256xbf16>, vector<256x256xbf16>, vector<8x256xf32> -> vector<8x256xf32>
    %141 = arith.addf %137, %140 : vector<8x256xf32>
    %c0_77 = arith.constant 0 : index
    %c0_78 = arith.constant 0 : index
    %142 = vector.load %arg12[%c0_77, %c0_78] : memref<1x256xf32, #tpu.memory_space<vmem>>, vector<1x256xf32>
    %143 = vector.broadcast %142 : vector<1x256xf32> to vector<8x256xf32>
    %144 = arith.addf %141, %143 : vector<8x256xf32>
    %cst_79 = arith.constant 0.000000e+00 : f32
    %145 = vector.broadcast %cst_79 : f32 to vector<8x256xf32>
    %146 = arith.maximumf %144, %145 : vector<8x256xf32>
    %147 = arith.truncf %146 : vector<8x256xf32> to vector<8x256xbf16>
    %cst_80 = arith.constant 0.000000e+00 : bf16
    %148 = vector.broadcast %cst_80 : bf16 to vector<1x256xbf16>
    %149 = tpu.iota {dimensions = array<i32: 0>} : vector<4x8xi32>
    %150 = tpu.iota {dimensions = array<i32: 1>} : vector<4x8xi32>
    %c2_i32_81 = arith.constant 2 : i32
    %151 = vector.broadcast %c2_i32_81 : i32 to vector<4x8xi32>
    %152 = arith.muli %151, %149 : vector<4x8xi32>
    %c0_i32_82 = arith.constant 0 : i32
    %153 = vector.broadcast %c0_i32_82 : i32 to vector<4x8xi32>
    %154 = arith.addi %152, %153 : vector<4x8xi32>
    %155 = arith.cmpi eq, %150, %154 : vector<4x8xi32>
    %156 = arith.extui %155 : vector<4x8xi1> to vector<4x8xi32>
    %157 = arith.sitofp %156 : vector<4x8xi32> to vector<4x8xf32>
    %158 = arith.truncf %157 : vector<4x8xf32> to vector<4x8xbf16>
    %cst_83 = arith.constant dense<0.000000e+00> : vector<4x256xf32>
    %159 = tpu.matmul %158, %147, %cst_83 {dimension_numbers = #tpu.dot_dimension_numbers<[1], [0], [0], [1], [0, 0, 1, 1], [], []>} : vector<4x8xbf16>, vector<8x256xbf16>, vector<4x256xf32> -> vector<4x256xf32>
    %160 = arith.truncf %159 : vector<4x256xf32> to vector<4x256xbf16>
    %161 = tpu.iota {dimensions = array<i32: 0>} : vector<4x8xi32>
    %162 = tpu.iota {dimensions = array<i32: 1>} : vector<4x8xi32>
    %c2_i32_84 = arith.constant 2 : i32
    %163 = vector.broadcast %c2_i32_84 : i32 to vector<4x8xi32>
    %164 = arith.muli %163, %161 : vector<4x8xi32>
    %c1_i32_85 = arith.constant 1 : i32
    %165 = vector.broadcast %c1_i32_85 : i32 to vector<4x8xi32>
    %166 = arith.addi %164, %165 : vector<4x8xi32>
    %167 = arith.cmpi eq, %162, %166 : vector<4x8xi32>
    %168 = arith.extui %167 : vector<4x8xi1> to vector<4x8xi32>
    %169 = arith.sitofp %168 : vector<4x8xi32> to vector<4x8xf32>
    %170 = arith.truncf %169 : vector<4x8xf32> to vector<4x8xbf16>
    %cst_86 = arith.constant dense<0.000000e+00> : vector<4x256xf32>
    %171 = tpu.matmul %170, %147, %cst_86 {dimension_numbers = #tpu.dot_dimension_numbers<[1], [0], [0], [1], [0, 0, 1, 1], [], []>} : vector<4x8xbf16>, vector<8x256xbf16>, vector<4x256xf32> -> vector<4x256xf32>
    %172 = arith.truncf %171 : vector<4x256xf32> to vector<4x256xbf16>
    %173 = tpu.concatenate %148, %172 in 0 : vector<1x256xbf16>, vector<4x256xbf16> -> vector<5x256xbf16>
    %174 = tpu.concatenate %160, %148 in 0 : vector<4x256xbf16>, vector<1x256xbf16> -> vector<5x256xbf16>
    %175 = vector.extract_strided_slice %173 {offsets = [0, 0], sizes = [4, 256], strides = [1, 1]} : vector<5x256xbf16> to vector<4x256xbf16>
    %176 = vector.extract_strided_slice %174 {offsets = [0, 0], sizes = [4, 256], strides = [1, 1]} : vector<5x256xbf16> to vector<4x256xbf16>
    %177 = vector.extract_strided_slice %173 {offsets = [1, 0], sizes = [4, 256], strides = [1, 1]} : vector<5x256xbf16> to vector<4x256xbf16>
    %cst_87 = arith.constant 0.000000e+00 : f32
    %178 = vector.broadcast %cst_87 : f32 to vector<4x256xf32>
    %c0_88 = arith.constant 0 : index
    %c0_89 = arith.constant 0 : index
    %c0_90 = arith.constant 0 : index
    %179 = vector.load %arg6[%c0_88, %c0_89, %c0_90] : memref<3x256x256xbf16, #tpu.memory_space<vmem>>, vector<1x256x256xbf16>
    %180 = vector.shape_cast %179 : vector<1x256x256xbf16> to vector<256x256xbf16>
    %cst_91 = arith.constant dense<0.000000e+00> : vector<4x256xf32>
    %181 = tpu.matmul %175, %180, %cst_91 {dimension_numbers = #tpu.dot_dimension_numbers<[1], [0], [0], [1], [0, 0, 1, 1], [], []>} : vector<4x256xbf16>, vector<256x256xbf16>, vector<4x256xf32> -> vector<4x256xf32>
    %182 = arith.addf %178, %181 : vector<4x256xf32>
    %c1_92 = arith.constant 1 : index
    %c0_93 = arith.constant 0 : index
    %c0_94 = arith.constant 0 : index
    %183 = vector.load %arg6[%c1_92, %c0_93, %c0_94] : memref<3x256x256xbf16, #tpu.memory_space<vmem>>, vector<1x256x256xbf16>
    %184 = vector.shape_cast %183 : vector<1x256x256xbf16> to vector<256x256xbf16>
    %cst_95 = arith.constant dense<0.000000e+00> : vector<4x256xf32>
    %185 = tpu.matmul %176, %184, %cst_95 {dimension_numbers = #tpu.dot_dimension_numbers<[1], [0], [0], [1], [0, 0, 1, 1], [], []>} : vector<4x256xbf16>, vector<256x256xbf16>, vector<4x256xf32> -> vector<4x256xf32>
    %186 = arith.addf %182, %185 : vector<4x256xf32>
    %c2_96 = arith.constant 2 : index
    %c0_97 = arith.constant 0 : index
    %c0_98 = arith.constant 0 : index
    %187 = vector.load %arg6[%c2_96, %c0_97, %c0_98] : memref<3x256x256xbf16, #tpu.memory_space<vmem>>, vector<1x256x256xbf16>
    %188 = vector.shape_cast %187 : vector<1x256x256xbf16> to vector<256x256xbf16>
    %cst_99 = arith.constant dense<0.000000e+00> : vector<4x256xf32>
    %189 = tpu.matmul %177, %188, %cst_99 {dimension_numbers = #tpu.dot_dimension_numbers<[1], [0], [0], [1], [0, 0, 1, 1], [], []>} : vector<4x256xbf16>, vector<256x256xbf16>, vector<4x256xf32> -> vector<4x256xf32>
    %190 = arith.addf %186, %189 : vector<4x256xf32>
    %c0_100 = arith.constant 0 : index
    %c0_101 = arith.constant 0 : index
    %191 = vector.load %arg13[%c0_100, %c0_101] : memref<1x256xf32, #tpu.memory_space<vmem>>, vector<1x256xf32>
    %192 = vector.broadcast %191 : vector<1x256xf32> to vector<4x256xf32>
    %193 = arith.addf %190, %192 : vector<4x256xf32>
    %cst_102 = arith.constant 0.000000e+00 : f32
    %194 = vector.broadcast %cst_102 : f32 to vector<4x256xf32>
    %195 = arith.maximumf %193, %194 : vector<4x256xf32>
    %196 = arith.truncf %195 : vector<4x256xf32> to vector<4x256xbf16>
    %cst_103 = arith.constant 0.000000e+00 : bf16
    %197 = vector.broadcast %cst_103 : bf16 to vector<1x256xbf16>
    %198 = tpu.concatenate %197, %196, %197 in 0 : vector<1x256xbf16>, vector<4x256xbf16>, vector<1x256xbf16> -> vector<6x256xbf16>
    %199 = vector.extract_strided_slice %198 {offsets = [0, 0], sizes = [4, 256], strides = [1, 1]} : vector<6x256xbf16> to vector<4x256xbf16>
    %200 = vector.extract_strided_slice %198 {offsets = [1, 0], sizes = [4, 256], strides = [1, 1]} : vector<6x256xbf16> to vector<4x256xbf16>
    %201 = vector.extract_strided_slice %198 {offsets = [2, 0], sizes = [4, 256], strides = [1, 1]} : vector<6x256xbf16> to vector<4x256xbf16>
    %cst_104 = arith.constant 0.000000e+00 : f32
    %202 = vector.broadcast %cst_104 : f32 to vector<4x256xf32>
    %c0_105 = arith.constant 0 : index
    %c0_106 = arith.constant 0 : index
    %c0_107 = arith.constant 0 : index
    %203 = vector.load %arg7[%c0_105, %c0_106, %c0_107] : memref<3x256x256xbf16, #tpu.memory_space<vmem>>, vector<1x256x256xbf16>
    %204 = vector.shape_cast %203 : vector<1x256x256xbf16> to vector<256x256xbf16>
    %cst_108 = arith.constant dense<0.000000e+00> : vector<4x256xf32>
    %205 = tpu.matmul %199, %204, %cst_108 {dimension_numbers = #tpu.dot_dimension_numbers<[1], [0], [0], [1], [0, 0, 1, 1], [], []>} : vector<4x256xbf16>, vector<256x256xbf16>, vector<4x256xf32> -> vector<4x256xf32>
    %206 = arith.addf %202, %205 : vector<4x256xf32>
    %c1_109 = arith.constant 1 : index
    %c0_110 = arith.constant 0 : index
    %c0_111 = arith.constant 0 : index
    %207 = vector.load %arg7[%c1_109, %c0_110, %c0_111] : memref<3x256x256xbf16, #tpu.memory_space<vmem>>, vector<1x256x256xbf16>
    %208 = vector.shape_cast %207 : vector<1x256x256xbf16> to vector<256x256xbf16>
    %cst_112 = arith.constant dense<0.000000e+00> : vector<4x256xf32>
    %209 = tpu.matmul %200, %208, %cst_112 {dimension_numbers = #tpu.dot_dimension_numbers<[1], [0], [0], [1], [0, 0, 1, 1], [], []>} : vector<4x256xbf16>, vector<256x256xbf16>, vector<4x256xf32> -> vector<4x256xf32>
    %210 = arith.addf %206, %209 : vector<4x256xf32>
    %c2_113 = arith.constant 2 : index
    %c0_114 = arith.constant 0 : index
    %c0_115 = arith.constant 0 : index
    %211 = vector.load %arg7[%c2_113, %c0_114, %c0_115] : memref<3x256x256xbf16, #tpu.memory_space<vmem>>, vector<1x256x256xbf16>
    %212 = vector.shape_cast %211 : vector<1x256x256xbf16> to vector<256x256xbf16>
    %cst_116 = arith.constant dense<0.000000e+00> : vector<4x256xf32>
    %213 = tpu.matmul %201, %212, %cst_116 {dimension_numbers = #tpu.dot_dimension_numbers<[1], [0], [0], [1], [0, 0, 1, 1], [], []>} : vector<4x256xbf16>, vector<256x256xbf16>, vector<4x256xf32> -> vector<4x256xf32>
    %214 = arith.addf %210, %213 : vector<4x256xf32>
    %c0_117 = arith.constant 0 : index
    %c0_118 = arith.constant 0 : index
    %215 = vector.load %arg14[%c0_117, %c0_118] : memref<1x256xf32, #tpu.memory_space<vmem>>, vector<1x256xf32>
    %216 = vector.broadcast %215 : vector<1x256xf32> to vector<4x256xf32>
    %217 = arith.addf %214, %216 : vector<4x256xf32>
    %cst_119 = arith.constant 0.000000e+00 : f32
    %218 = vector.broadcast %cst_119 : f32 to vector<4x256xf32>
    %219 = arith.maximumf %217, %218 : vector<4x256xf32>
    %220 = arith.truncf %219 : vector<4x256xf32> to vector<4x256xbf16>
    %cst_120 = arith.constant 0.000000e+00 : bf16
    %221 = vector.broadcast %cst_120 : bf16 to vector<1x256xbf16>
    %222 = tpu.iota {dimensions = array<i32: 0>} : vector<2x4xi32>
    %223 = tpu.iota {dimensions = array<i32: 1>} : vector<2x4xi32>
    %c2_i32_121 = arith.constant 2 : i32
    %224 = vector.broadcast %c2_i32_121 : i32 to vector<2x4xi32>
    %225 = arith.muli %224, %222 : vector<2x4xi32>
    %c0_i32_122 = arith.constant 0 : i32
    %226 = vector.broadcast %c0_i32_122 : i32 to vector<2x4xi32>
    %227 = arith.addi %225, %226 : vector<2x4xi32>
    %228 = arith.cmpi eq, %223, %227 : vector<2x4xi32>
    %229 = arith.extui %228 : vector<2x4xi1> to vector<2x4xi32>
    %230 = arith.sitofp %229 : vector<2x4xi32> to vector<2x4xf32>
    %231 = arith.truncf %230 : vector<2x4xf32> to vector<2x4xbf16>
    %cst_123 = arith.constant dense<0.000000e+00> : vector<2x256xf32>
    %232 = tpu.matmul %231, %220, %cst_123 {dimension_numbers = #tpu.dot_dimension_numbers<[1], [0], [0], [1], [0, 0, 1, 1], [], []>} : vector<2x4xbf16>, vector<4x256xbf16>, vector<2x256xf32> -> vector<2x256xf32>
    %233 = arith.truncf %232 : vector<2x256xf32> to vector<2x256xbf16>
    %234 = tpu.iota {dimensions = array<i32: 0>} : vector<2x4xi32>
    %235 = tpu.iota {dimensions = array<i32: 1>} : vector<2x4xi32>
    %c2_i32_124 = arith.constant 2 : i32
    %236 = vector.broadcast %c2_i32_124 : i32 to vector<2x4xi32>
    %237 = arith.muli %236, %234 : vector<2x4xi32>
    %c1_i32_125 = arith.constant 1 : i32
    %238 = vector.broadcast %c1_i32_125 : i32 to vector<2x4xi32>
    %239 = arith.addi %237, %238 : vector<2x4xi32>
    %240 = arith.cmpi eq, %235, %239 : vector<2x4xi32>
    %241 = arith.extui %240 : vector<2x4xi1> to vector<2x4xi32>
    %242 = arith.sitofp %241 : vector<2x4xi32> to vector<2x4xf32>
    %243 = arith.truncf %242 : vector<2x4xf32> to vector<2x4xbf16>
    %cst_126 = arith.constant dense<0.000000e+00> : vector<2x256xf32>
    %244 = tpu.matmul %243, %220, %cst_126 {dimension_numbers = #tpu.dot_dimension_numbers<[1], [0], [0], [1], [0, 0, 1, 1], [], []>} : vector<2x4xbf16>, vector<4x256xbf16>, vector<2x256xf32> -> vector<2x256xf32>
    %245 = arith.truncf %244 : vector<2x256xf32> to vector<2x256xbf16>
    %246 = tpu.concatenate %221, %245 in 0 : vector<1x256xbf16>, vector<2x256xbf16> -> vector<3x256xbf16>
    %247 = tpu.concatenate %233, %221 in 0 : vector<2x256xbf16>, vector<1x256xbf16> -> vector<3x256xbf16>
    %248 = vector.extract_strided_slice %246 {offsets = [0, 0], sizes = [2, 256], strides = [1, 1]} : vector<3x256xbf16> to vector<2x256xbf16>
    %249 = vector.extract_strided_slice %247 {offsets = [0, 0], sizes = [2, 256], strides = [1, 1]} : vector<3x256xbf16> to vector<2x256xbf16>
    %250 = vector.extract_strided_slice %246 {offsets = [1, 0], sizes = [2, 256], strides = [1, 1]} : vector<3x256xbf16> to vector<2x256xbf16>
    %cst_127 = arith.constant 0.000000e+00 : f32
    %251 = vector.broadcast %cst_127 : f32 to vector<2x256xf32>
    %c0_128 = arith.constant 0 : index
    %c0_129 = arith.constant 0 : index
    %c0_130 = arith.constant 0 : index
    %252 = vector.load %arg8[%c0_128, %c0_129, %c0_130] : memref<3x256x256xbf16, #tpu.memory_space<vmem>>, vector<1x256x256xbf16>
    %253 = vector.shape_cast %252 : vector<1x256x256xbf16> to vector<256x256xbf16>
    %cst_131 = arith.constant dense<0.000000e+00> : vector<2x256xf32>
    %254 = tpu.matmul %248, %253, %cst_131 {dimension_numbers = #tpu.dot_dimension_numbers<[1], [0], [0], [1], [0, 0, 1, 1], [], []>} : vector<2x256xbf16>, vector<256x256xbf16>, vector<2x256xf32> -> vector<2x256xf32>
    %255 = arith.addf %251, %254 : vector<2x256xf32>
    %c1_132 = arith.constant 1 : index
    %c0_133 = arith.constant 0 : index
    %c0_134 = arith.constant 0 : index
    %256 = vector.load %arg8[%c1_132, %c0_133, %c0_134] : memref<3x256x256xbf16, #tpu.memory_space<vmem>>, vector<1x256x256xbf16>
    %257 = vector.shape_cast %256 : vector<1x256x256xbf16> to vector<256x256xbf16>
    %cst_135 = arith.constant dense<0.000000e+00> : vector<2x256xf32>
    %258 = tpu.matmul %249, %257, %cst_135 {dimension_numbers = #tpu.dot_dimension_numbers<[1], [0], [0], [1], [0, 0, 1, 1], [], []>} : vector<2x256xbf16>, vector<256x256xbf16>, vector<2x256xf32> -> vector<2x256xf32>
    %259 = arith.addf %255, %258 : vector<2x256xf32>
    %c2_136 = arith.constant 2 : index
    %c0_137 = arith.constant 0 : index
    %c0_138 = arith.constant 0 : index
    %260 = vector.load %arg8[%c2_136, %c0_137, %c0_138] : memref<3x256x256xbf16, #tpu.memory_space<vmem>>, vector<1x256x256xbf16>
    %261 = vector.shape_cast %260 : vector<1x256x256xbf16> to vector<256x256xbf16>
    %cst_139 = arith.constant dense<0.000000e+00> : vector<2x256xf32>
    %262 = tpu.matmul %250, %261, %cst_139 {dimension_numbers = #tpu.dot_dimension_numbers<[1], [0], [0], [1], [0, 0, 1, 1], [], []>} : vector<2x256xbf16>, vector<256x256xbf16>, vector<2x256xf32> -> vector<2x256xf32>
    %263 = arith.addf %259, %262 : vector<2x256xf32>
    %c0_140 = arith.constant 0 : index
    %c0_141 = arith.constant 0 : index
    %264 = vector.load %arg15[%c0_140, %c0_141] : memref<1x256xf32, #tpu.memory_space<vmem>>, vector<1x256xf32>
    %265 = vector.broadcast %264 : vector<1x256xf32> to vector<2x256xf32>
    %266 = arith.addf %263, %265 : vector<2x256xf32>
    %cst_142 = arith.constant 0.000000e+00 : f32
    %267 = vector.broadcast %cst_142 : f32 to vector<2x256xf32>
    %268 = arith.maximumf %266, %267 : vector<2x256xf32>
    %cst_143 = arith.constant dense<0.000000e+00> : vector<256xf32>
    %269 = vector.multi_reduction <add>, %268, %cst_143 [0] : vector<2x256xf32> to vector<256xf32>
    %270 = vector.shape_cast %269 : vector<256xf32> to vector<1x256xf32>
    %cst_144 = arith.constant 0.000000e+00 : f32
    %271 = vector.broadcast %cst_144 : f32 to vector<1x128xf32>
    %272 = vector.extract_strided_slice %270 {offsets = [0, 0], sizes = [1, 128], strides = [1, 1]} : vector<1x256xf32> to vector<1x128xf32>
    %273 = arith.addf %271, %272 : vector<1x128xf32>
    %274 = vector.extract_strided_slice %270 {offsets = [0, 128], sizes = [1, 128], strides = [1, 1]} : vector<1x256xf32> to vector<1x128xf32>
    %275 = arith.addf %273, %274 : vector<1x128xf32>
    %cst_145 = arith.constant 2.500000e-01 : f32
    %276 = vector.broadcast %cst_145 : f32 to vector<1x128xf32>
    %277 = arith.mulf %275, %276 : vector<1x128xf32>
    %c0_146 = arith.constant 0 : index
    %c0_147 = arith.constant 0 : index
    %278 = vector.load %arg16[%c0_146, %c0_147] : memref<128x10xf32, #tpu.memory_space<vmem>>, vector<128x10xf32>
    %cst_148 = arith.constant dense<0.000000e+00> : vector<1x10xf32>
    %279 = tpu.matmul %277, %278, %cst_148 {dimension_numbers = #tpu.dot_dimension_numbers<[1], [0], [0], [1], [0, 0, 1, 1], [], []>} : vector<1x128xf32>, vector<128x10xf32>, vector<1x10xf32> -> vector<1x10xf32>
    %c0_149 = arith.constant 0 : index
    %c0_150 = arith.constant 0 : index
    %280 = vector.load %arg17[%c0_149, %c0_150] : memref<1x10xf32, #tpu.memory_space<vmem>>, vector<1x10xf32>
    %281 = arith.addf %279, %280 : vector<1x10xf32>
    %c0_151 = arith.constant 0 : index
    %c0_152 = arith.constant 0 : index
    %c0_153 = arith.constant 0 : index
    %282 = vector.load %arg18[%c0_151, %c0_152, %c0_153] : memref<1x1x10xf32, #tpu.memory_space<vmem>>, vector<1x1x10xf32>
    %283 = vector.shape_cast %282 : vector<1x1x10xf32> to vector<1x10xf32>
    %284 = vector.shape_cast %281 : vector<1x10xf32> to vector<1x1x10xf32>
    tpu.vector_store %arg18[%c0_151, %c0_152, %c0_153], %284 {strides = array<i32>} : memref<1x1x10xf32, #tpu.memory_space<vmem>>, vector<1x1x10xf32>,
    return
  }
  func.func @transform_0(%arg0: i32) -> (i32, i32, i32, i32) {
    %c0_i32 = arith.constant 0 : i32
    %c0_i32_0 = arith.constant 0 : i32
    %c0_i32_1 = arith.constant 0 : i32
    %c0_i32_2 = arith.constant 0 : i32
    return %arg0, %c0_i32, %c0_i32_0, %c0_i32_1 : i32, i32, i32, i32
  }
  func.func @transform_1(%arg0: i32) -> (i32, i32, i32) {
    %c0_i32 = arith.constant 0 : i32
    %c0_i32_0 = arith.constant 0 : i32
    %c0_i32_1 = arith.constant 0 : i32
    %c0_i32_2 = arith.constant 0 : i32
    return %c0_i32, %c0_i32_0, %c0_i32_1 : i32, i32, i32
  }
  func.func @transform_2(%arg0: i32) -> (i32, i32, i32) {
    %c0_i32 = arith.constant 0 : i32
    %c0_i32_0 = arith.constant 0 : i32
    %c0_i32_1 = arith.constant 0 : i32
    %c0_i32_2 = arith.constant 0 : i32
    return %c0_i32, %c0_i32_0, %c0_i32_1 : i32, i32, i32
  }
  func.func @transform_3(%arg0: i32) -> (i32, i32, i32) {
    %c0_i32 = arith.constant 0 : i32
    %c0_i32_0 = arith.constant 0 : i32
    %c0_i32_1 = arith.constant 0 : i32
    %c0_i32_2 = arith.constant 0 : i32
    return %c0_i32, %c0_i32_0, %c0_i32_1 : i32, i32, i32
  }
  func.func @transform_4(%arg0: i32) -> (i32, i32, i32) {
    %c0_i32 = arith.constant 0 : i32
    %c0_i32_0 = arith.constant 0 : i32
    %c0_i32_1 = arith.constant 0 : i32
    %c0_i32_2 = arith.constant 0 : i32
    return %c0_i32, %c0_i32_0, %c0_i32_1 : i32, i32, i32
  }
  func.func @transform_5(%arg0: i32) -> (i32, i32, i32) {
    %c0_i32 = arith.constant 0 : i32
    %c0_i32_0 = arith.constant 0 : i32
    %c0_i32_1 = arith.constant 0 : i32
    %c0_i32_2 = arith.constant 0 : i32
    return %c0_i32, %c0_i32_0, %c0_i32_1 : i32, i32, i32
  }
  func.func @transform_6(%arg0: i32) -> (i32, i32, i32) {
    %c0_i32 = arith.constant 0 : i32
    %c0_i32_0 = arith.constant 0 : i32
    %c0_i32_1 = arith.constant 0 : i32
    %c0_i32_2 = arith.constant 0 : i32
    return %c0_i32, %c0_i32_0, %c0_i32_1 : i32, i32, i32
  }
  func.func @transform_7(%arg0: i32) -> (i32, i32, i32) {
    %c0_i32 = arith.constant 0 : i32
    %c0_i32_0 = arith.constant 0 : i32
    %c0_i32_1 = arith.constant 0 : i32
    %c0_i32_2 = arith.constant 0 : i32
    return %c0_i32, %c0_i32_0, %c0_i32_1 : i32, i32, i32
  }
  func.func @transform_8(%arg0: i32) -> (i32, i32) {
    %c0_i32 = arith.constant 0 : i32
    %c0_i32_0 = arith.constant 0 : i32
    %c0_i32_1 = arith.constant 0 : i32
    return %c0_i32, %c0_i32_0 : i32, i32
  }
  func.func @transform_9(%arg0: i32) -> (i32, i32) {
    %c0_i32 = arith.constant 0 : i32
    %c0_i32_0 = arith.constant 0 : i32
    %c0_i32_1 = arith.constant 0 : i32
    return %c0_i32, %c0_i32_0 : i32, i32
  }
  func.func @transform_10(%arg0: i32) -> (i32, i32) {
    %c0_i32 = arith.constant 0 : i32
    %c0_i32_0 = arith.constant 0 : i32
    %c0_i32_1 = arith.constant 0 : i32
    return %c0_i32, %c0_i32_0 : i32, i32
  }
  func.func @transform_11(%arg0: i32) -> (i32, i32) {
    %c0_i32 = arith.constant 0 : i32
    %c0_i32_0 = arith.constant 0 : i32
    %c0_i32_1 = arith.constant 0 : i32
    return %c0_i32, %c0_i32_0 : i32, i32
  }
  func.func @transform_12(%arg0: i32) -> (i32, i32) {
    %c0_i32 = arith.constant 0 : i32
    %c0_i32_0 = arith.constant 0 : i32
    %c0_i32_1 = arith.constant 0 : i32
    return %c0_i32, %c0_i32_0 : i32, i32
  }
  func.func @transform_13(%arg0: i32) -> (i32, i32) {
    %c0_i32 = arith.constant 0 : i32
    %c0_i32_0 = arith.constant 0 : i32
    %c0_i32_1 = arith.constant 0 : i32
    return %c0_i32, %c0_i32_0 : i32, i32
  }
  func.func @transform_14(%arg0: i32) -> (i32, i32) {
    %c0_i32 = arith.constant 0 : i32
    %c0_i32_0 = arith.constant 0 : i32
    %c0_i32_1 = arith.constant 0 : i32
    return %c0_i32, %c0_i32_0 : i32, i32
  }
  func.func @transform_15(%arg0: i32) -> (i32, i32) {
    %c0_i32 = arith.constant 0 : i32
    %c0_i32_0 = arith.constant 0 : i32
    %c0_i32_1 = arith.constant 0 : i32
    return %c0_i32, %c0_i32_0 : i32, i32
  }
  func.func @transform_16(%arg0: i32) -> (i32, i32) {
    %c0_i32 = arith.constant 0 : i32
    %c0_i32_0 = arith.constant 0 : i32
    %c0_i32_1 = arith.constant 0 : i32
    return %c0_i32, %c0_i32_0 : i32, i32
  }
  func.func @transform_17(%arg0: i32) -> (i32, i32, i32) {
    %c0_i32 = arith.constant 0 : i32
    %c0_i32_0 = arith.constant 0 : i32
    %c0_i32_1 = arith.constant 0 : i32
    return %arg0, %c0_i32, %c0_i32_0 : i32, i32, i32
  }
}

</mosaic_0001>

<bundles_post_ra>
// kernel: repvgg_quant_forward.1
= control target key start
LH: loop header
LB: loop body
LE: loop exit
PB: predicated region body
PF: predicated region fallthrough
CT: control target
= control target key end

     0   :  { %s12365_s0 = inlined_call_operand.vmem [shape: bf16[2,2,33,192], index: 0, kind: input, shape index: {}]   ;;  %s12366_s1 = inlined_call_operand.hbm [shape: bf16[3,192,512], index: 1, kind: input, shape index: {}]   ;;  %s12367_s2 = inlined_call_operand.vmem [shape: bf16[3,512,256], index: 2, kind: input, shape index: {}]   ;;  %s12368_s3 = inlined_call_operand.vmem [shape: bf16[3,256,256], index: 3, kind: input, shape index: {}]   ;;  %s12369_s4 = inlined_call_operand.hbm [shape: bf16[3,256,256], index: 4, kind: input, shape index: {}]   ;;  %s12370_s5 = inlined_call_operand.hbm [shape: bf16[3,256,256], index: 5, kind: input, shape index: {}]   ;;  %s12371_s6 = inlined_call_operand.hbm [shape: bf16[3,256,256], index: 6, kind: input, shape index: {}]   ;;  %s12372_s7 = inlined_call_operand.hbm [shape: bf16[3,256,256], index: 7, kind: input, shape index: {}]   ;;  %s12373_s8 = inlined_call_operand.vmem [shape: f32[1,512], index: 8, kind: input, shape index: {}]   ;;  %s12374_s9 = inlined_call_operand.vmem [shape: f32[1,256], index: 9, kind: input, shape index: {}]   ;;  %s12375_s10 = inlined_call_operand.vmem [shape: f32[1,256], index: 10, kind: input, shape index: {}]   ;;  %s12376_s11 = inlined_call_operand.vmem [shape: f32[1,256], index: 11, kind: input, shape index: {}]   ;;  %s12377_s12 = inlined_call_operand.vmem [shape: f32[1,256], index: 12, kind: input, shape index: {}]   ;;  %s12378_s13 = inlined_call_operand.vmem [shape: f32[1,256], index: 13, kind: input, shape index: {}]   ;;  %s12379_s14 = inlined_call_operand.vmem [shape: f32[1,256], index: 14, kind: input, shape index: {}]   ;;  %s12380_s15 = inlined_call_operand.vmem [shape: f32[128,10], index: 15, kind: input, shape index: {}]   ;;  %s12381_s16 = inlined_call_operand.vmem [shape: f32[1,10], index: 16, kind: input, shape index: {}]   ;;  %s12382_s17 = inlined_call_operand.hbm [shape: f32[2,1,10], index: 17, kind: output, shape index: {}]  }
   0x1   :  { %12402 = sst [smem:[#allocation24_spill]] %s12365_s0 }
   0x2   :  { %12403 = sst [smem:[#allocation25_spill]] %s12366_s1 }
   0x3   :  { %12404 = sst [smem:[#allocation26_spill]] %s12369_s4 }
   0x4   :  { %12405 = sst [smem:[#allocation27_spill]] %s12371_s6 }
   0x5   :  { %12406 = sst [smem:[#allocation28_spill]] %s12379_s14 }
   0x6   :  { %12407 = sst [smem:[#allocation29_spill]] %s12380_s15 }
   0x7   :  { %12408 = sst [smem:[#allocation30_spill]] %s12381_s16 }
   0x8   :  { %12409 = sst [smem:[#allocation31_spill]] %s12382_s17 }
   0x9   :  { %22 = vsyncpa [#allocation3], 0 }
   0xa   :  { %23 = vsyncpa [#allocation6], 0 }
   0xb   :  { %24 = vsyncpa [#allocation9], 0 }
   0xc   :  { %25 = vsyncpa [#allocation4], 0 }
   0xd   :  { %27 = vsyncpa [#allocation4 + $0x1], 0  ;;  %s10923_s24 = smov 0   ;;  %s10925_s25 = smov 0  }
   0xe   :  { %s10927_s26 = smov 0   ;;  %s10929_s27 = smov 0  }
   0xf LB: > { %12410 = sst [smem:[#allocation16_spill]] %s10805_s24  ;;  %s10944_s28 = sadd.s32 4294967295, %s10817_s27   ;;  %s10817_s27 = sphi %s10929_s27, %s12449_s27   ;;  %s10813_s26 = sphi %s10927_s26, %s12452_s26   ;;  %s10809_s25 = sphi %s10925_s25, %s12451_s25   ;;  %s10805_s24 = sphi %s10923_s24, %s12450_s24  }
  0x10   : > { %12411 = sst [smem:[#allocation17_spill]] %s10809_s25  ;;  %s8062_s29 = sadd.s32 4294967294, %s10817_s27  }
  0x11   : > { %12412 = sst [smem:[#allocation18_spill]] %s10813_s26  ;;  %s10948_s0 = sadd.s32 1, %s10817_s27  }
  0x12   : > { %12413 = sst [smem:[#allocation19_spill]] %s10817_s27  ;;  %s402_s30 = sadd.s32 1, %s10813_s26 }
  0x13   : > { %12414 = sst [smem:[#allocation20_spill]] %s10948_s0  ;;  %s399_s18 = ssub.s32 %s10817_s27, %s10948_s0 }
  0x14   : > { %p412_p0 = scmp.ne.s32.totalorder %s10813_s26, %s10809_s25  ;;  %p400_p1 = scmp.eq.s32.totalorder %s399_s18, 0 }
  0x15   : > { %p413_p2 = scmp.eq.s32.totalorder %s10944_s28, 1  ;;  %p418_p3 = scmp.ne.s32.totalorder %s10809_s25, %s10805_s24 }
  0x16   : > { %p419_p4 = scmp.eq.s32.totalorder %s8062_s29, 1  ;;  %p8063_p7 = scmp.ge.s32.totalorder %s10817_s27, 1 }
  0x17   : > { %s10959_s19 = scalar_select %p400_p1, %s10813_s26, %s402_s30  }
  0x18   : > { %p10961_p5 = por %p413_p2, %p412_p0  ;;  %p10965_p6 = por %p419_p4, %p418_p3 }
  0x19   : > { %12415 = sst [smem:[#allocation21_spill]] %s10959_s19  ;;  %p426_p8 = scmp.lt.s32.totalorder %s10817_s27, 3 }
  0x1a   : > { %s12416_s1 = scalar_select %p10961_p5, 1, 0 }
  0x1b   : > { %s12418_s20 = scalar_select %p10965_p6, 1, 0 }
  0x1c   : > { %12417 = sst [smem:[#allocation22_spill]] %s12416_s1  ;;  %p12391_p9 = scmp.eq.s32.totalorder %s10944_s28, 0 }
  0x1d   : > { %12419 = sst [smem:[#allocation23_spill]] %s12418_s20  ;;  %p10972_p10 = pnand %p8063_p7, %p426_p8 }
  0x1e   : > { %s10819_s22 = smov [#allocation5]   ;;  %s10820_s30 = smov [#allocation8]  }
  0x1f   : > { %s12420_s21 = scalar_select %p10972_p10, 1, 0 }
  0x20   : > { %s457_s23 = sshll.u32 %s10819_s22, 4  ;;  %p9289_p11 = pneg %p10972_p10  ;;  %s10978_s23 = int_to_ptr.vmem [resolvable:$true] %s457_s23 }
  0x21   : > { %s483_s18 = sshll.u32 %s10820_s30, 4  ;;  %s10821_s19 = smov [#allocation2]   ;;  %s10986_s18 = int_to_ptr.vmem [resolvable:$true] %s483_s18 }
  0x22   : > { %p10982_p12 = pnand %p12391_p9, %p9289_p11  ;;  %s10988_s26 = sshll.u32 %s10821_s19, 4  ;;  %s439_s26 = int_to_ptr.vmem [resolvable:$true] %s10988_s26 }
  0x23   : > { %s12422_s4 = sld [smem:[#allocation26_spill]] }
  0x24   : > { %p10998_p0 = pneg %p10982_p12 }
  0x29   : > { %s10603_s22 = scalar_lea.hbm %s12422_s4, 12288 }
  0x2a   : > { %p10604_p13 = scmp.ne.s32.totalorder %s12422_s4, %s10603_s22  ;;  %p10610_p3 = scmp.lt.u32.totalorder %s10603_s22, %s12422_s4 }
  0x2c   : > { %p10606_p1 = pnand %p10998_p0, %p10604_p13 }
  0x2e   : > { %p10607_p2 = pneg %p10606_p1 }
  0x30   : > { %p10612_p4 = pnand %p10610_p3, %p10607_p2 }
  0x32   : > { %10615 = shalt.err (!%p10612_p4)
}
  0x33   : > { %s10616_s24 = scalar_lea.vmem %s10978_s23, 12288  ;;  %p10624_p9 = scmp.lt.s32.totalorder %s10978_s23, %s10978_s23 }
  0x34   : > { %p10617_p7 = scmp.ne.s32.totalorder %s10978_s23, %s10616_s24  ;;  %p10625_p6 = scmp.lt.s32.totalorder %s10616_s24, %s10616_s24 }
  0x36   : > { %p10619_p8 = pnand %p10617_p7, %p10998_p0  ;;  %p10626_p13 = por %p10625_p6, %p10624_p9 }
  0x38   : > { %p10620_p11 = pneg %p10619_p8 }
  0x3a   : > { %p10627_p1 = pnand %p10626_p13, %p10620_p11 }
  0x3c   : > { %10630 = shalt.err (!%p10627_p1)
}
  0x3d   : > { %s12397_s27 = smov 128   ;;  %s12399_s0 = smov 8  }
  0x3e   : > { %9295 = dma.hbm_to_vmem [thread:$0]  (!%p10982_p12), %s12422_s4, 12288, %s10978_s23, [#allocation6], %s12397_s27, %s12397_s27, %s12399_s0  }
  0x3f   : > { %s12424_s6 = sld [smem:[#allocation27_spill]] }
  0x45   : > { %s10631_s24 = scalar_lea.hbm %s12424_s6, 12288 }
  0x46   : > { %p10632_p6 = scmp.ne.s32.totalorder %s12424_s6, %s10631_s24  ;;  %p10638_p3 = scmp.lt.u32.totalorder %s10631_s24, %s12424_s6 }
  0x48   : > { %p10634_p9 = pnand %p10632_p6, %p10998_p0 }
  0x4a   : > { %p10635_p2 = pneg %p10634_p9 }
  0x4c   : > { %p10640_p4 = pnand %p10638_p3, %p10635_p2 }
  0x4e   : > { %10643 = shalt.err (!%p10640_p4)
}
  0x4f   : > { %s10644_s23 = scalar_lea.vmem %s10986_s18, 12288  ;;  %p10652_p13 = scmp.lt.s32.totalorder %s10986_s18, %s10986_s18 }
  0x50   : > { %p10645_p7 = scmp.ne.s32.totalorder %s10986_s18, %s10644_s23  ;;  %p10653_p1 = scmp.lt.s32.totalorder %s10644_s23, %s10644_s23 }
  0x52   : > { %p10647_p8 = pnand %p10645_p7, %p10998_p0  ;;  %p10654_p6 = por %p10653_p1, %p10652_p13 }
  0x54   : > { %p10648_p11 = pneg %p10647_p8 }
  0x56   : > { %p10655_p9 = pnand %p10654_p6, %p10648_p11 }
  0x58   : > { %10658 = shalt.err (!%p10655_p9)
}
  0x59   : > { %9301 = dma.hbm_to_vmem [thread:$0]  (!%p10982_p12), %s12424_s6, 12288, %s10986_s18, [#allocation9], %s12397_s27, %s12397_s27, %s12399_s0  }
  0x5a   : > { %s12425_s20 = sld [smem:[#allocation25_spill]] }
  0x60   : > { %s10659_s22 = scalar_lea.hbm %s12425_s20, 18432 }
  0x61   : > { %p10660_p2 = scmp.ne.s32.totalorder %s12425_s20, %s10659_s22  ;;  %p10666_p7 = scmp.lt.u32.totalorder %s10659_s22, %s12425_s20 }
  0x63   : > { %p10662_p3 = pnand %p10660_p2, %p10998_p0 }
  0x65   : > { %p10663_p4 = pneg %p10662_p3 }
  0x67   : > { %p10668_p8 = pnand %p10666_p7, %p10663_p4 }
  0x69   : > { %10671 = shalt.err (!%p10668_p8)
}
  0x6a   : > { %s10672_s14 = scalar_lea.vmem %s439_s26, 18432  ;;  %p10680_p6 = scmp.lt.s32.totalorder %s439_s26, %s439_s26 }
  0x6b   : > { %p10673_p11 = scmp.ne.s32.totalorder %s439_s26, %s10672_s14  ;;  %p10681_p9 = scmp.lt.s32.totalorder %s10672_s14, %s10672_s14 }
  0x6d   : > { %p10675_p13 = pnand %p10673_p11, %p10998_p0  ;;  %p10682_p5 = por %p10681_p9, %p10680_p6 }
  0x6f   : > { %p10676_p1 = pneg %p10675_p13 }
  0x71   : > { %p10683_p10 = pnand %p10682_p5, %p10676_p1 }
  0x73   : > { %10686 = shalt.err (!%p10683_p10)
}
  0x74   : > { %s10824_s18 = smov 256   ;;  %s10825_s16 = smov 16  }
  0x75   : > { %9292 = dma.hbm_to_vmem [thread:$0]  (!%p10982_p12), %s12425_s20, 18432, %s439_s26, [#allocation3], %s10824_s18, %s10824_s18, %s10825_s16  }
  0x76   : > { %s10826_s22 = smov [#allocation7]   ;;  %s10827_s19 = smov [#allocation10]  }
  0x77   : > { %s470_s30 = sshll.u32 %s10826_s22, 4  ;;  %s496_s24 = sshll.u32 %s10827_s19, 4  ;;  %s471_s30 = int_to_ptr.vmem [resolvable:$true] %s470_s30  ;;  %s497_s24 = int_to_ptr.vmem [resolvable:$true] %s496_s24 }
  0x78   : > { %s10687_s14 = scalar_lea.hbm %s12370_s5, 12288 }
  0x79   : > { %p10688_p5 = scmp.ne.s32.totalorder %s12370_s5, %s10687_s14  ;;  %p10694_p3 = scmp.lt.u32.totalorder %s10687_s14, %s12370_s5 }
  0x7b   : > { %p10690_p10 = pnand %p10688_p5, %p10998_p0 }
  0x7d   : > { %p10691_p2 = pneg %p10690_p10 }
  0x7f   : > { %p10696_p4 = pnand %p10694_p3, %p10691_p2 }
  0x81   : > { %10699 = shalt.err (!%p10696_p4)
}
  0x82   : > { %s10700_s26 = scalar_lea.vmem %s471_s30, 12288  ;;  %p10708_p13 = scmp.lt.s32.totalorder %s471_s30, %s471_s30 }
  0x83   : > { %p10701_p7 = scmp.ne.s32.totalorder %s471_s30, %s10700_s26  ;;  %p10709_p1 = scmp.lt.s32.totalorder %s10700_s26, %s10700_s26 }
  0x85   : > { %p10703_p8 = pnand %p10701_p7, %p10998_p0  ;;  %p10710_p6 = por %p10709_p1, %p10708_p13 }
  0x87   : > { %p10704_p11 = pneg %p10703_p8 }
  0x89   : > { %p10711_p9 = pnand %p10710_p6, %p10704_p11 }
  0x8b   : > { %10714 = shalt.err (!%p10711_p9)
}
  0x8c   : > { %s12426_s4 = smov 8   ;;  %s12427_s27 = smov 128  }
  0x8d   : > { %9298 = dma.hbm_to_vmem [thread:$0]  (!%p10982_p12), %s12370_s5, 12288, %s471_s30, [#allocation6], %s12427_s27, %s12427_s27, %s12426_s4  }
  0x8e   : > { %s10715_s16 = scalar_lea.hbm %s12372_s7, 12288 }
  0x8f   : > { %p10716_p5 = scmp.ne.s32.totalorder %s12372_s7, %s10715_s16  ;;  %p10722_p3 = scmp.lt.u32.totalorder %s10715_s16, %s12372_s7 }
  0x91   : > { %p10718_p10 = pnand %p10716_p5, %p10998_p0 }
  0x93   : > { %p10719_p2 = pneg %p10718_p10 }
  0x95   : > { %p10724_p4 = pnand %p10722_p3, %p10719_p2 }
  0x97   : > { %10727 = shalt.err (!%p10724_p4)
}
  0x98   : > { %s10728_s23 = scalar_lea.vmem %s497_s24, 12288  ;;  %p10736_p13 = scmp.lt.s32.totalorder %s497_s24, %s497_s24 }
  0x99   : > { %p10729_p7 = scmp.ne.s32.totalorder %s497_s24, %s10728_s23  ;;  %p10737_p1 = scmp.lt.s32.totalorder %s10728_s23, %s10728_s23 }
  0x9b   : > { %p10731_p8 = pnand %p10729_p7, %p10998_p0  ;;  %p10738_p6 = por %p10737_p1, %p10736_p13 }
  0x9d   : > { %p10732_p11 = pneg %p10731_p8 }
  0x9f   : > { %p10739_p9 = pnand %p10738_p6, %p10732_p11 }
  0xa1   : > { %10742 = shalt.err (!%p10739_p9)
}
  0xa2   : > { %9304 = dma.hbm_to_vmem [thread:$0]  (!%p10982_p12), %s12372_s7, 12288, %s497_s24, [#allocation9], %s12427_s27, %s12427_s27, %s12426_s4  }
  0xa3   : > { %p12428_p5 = scmp.ne.s32.totalorder %s12420_s21, 0 }
  0xa4   : > { %p12429_p0 = scmp.eq.s32.totalorder (!%p12428_p5), %s10944_s28, 0 }
  0xa5   : > { %547 = sbr.rel (%p12428_p5) target bundleno = 3802 (0xeda), region = 88 }
  0xac   : > { %10788 = dma.done.wait (%p12429_p0), [#allocation3], 18432   ;;  %p12430_p10 = pmov %p12429_p0 }
  0xad   : > { %p12431_p2 = pmov %p12429_p0 }
  0xae   : > { %10790 = vsyncadd (%p12430_p10), [#allocation3], 4294948864 }
  0xaf   : > { %10792 = dma.done.wait (%p12431_p2), [#allocation6], 24576   ;;  %p12432_p3 = pmov %p12429_p0 }
  0xb0   : > { %p12433_p4 = pmov %p12429_p0 }
  0xb1   : > { %10794 = vsyncadd (%p12432_p3), [#allocation6], 4294942720 }
  0xb2   : > { %10796 = dma.done.wait (%p12433_p4), [#allocation9], 24576   ;;  %p12434_p12 = pmov %p12429_p0 }
  0xb3   : > { %v9365_v0 = vld [vmem:[#allocation2 + $0x184] ss:$16 sps:$4 sm:$0xff]   ;;  %v9367_v1 = vld [vmem:[#allocation2 + $0x18c] ss:$16 sps:$4 sm:$0xff]   ;;  %v9369_v2 = vld [vmem:[#allocation2 + $0x180] ss:$16 sps:$4 sm:$0xff]  }
  0xb4   : > { %10798 = vsyncadd (%p12434_p12), [#allocation9], 4294942720  ;;  %992 = vmatprep.subr.bf16.mxu0 %v9365_v0  ;;  %v9370_v3 = vld [vmem:[#allocation2 + $0x188] ss:$16 sps:$4 sm:$0xff]   ;;  %1045 = vmatprep.subr.bf16.mxu1 %v9367_v1  ;;  %v9371_v4 = vld [vmem:[#allocation2 + $0x1a4] ss:$16 sps:$4 sm:$0xff]  }
  0xb5   : > { %993 = vmatpush1.bf16.msra.mxu0 %v9369_v2  ;;  %1046 = vmatpush1.bf16.msra.mxu1 %v9370_v3  ;;  %v9373_v5 = vld [vmem:[#allocation2 + $0x1ac] ss:$16 sps:$4 sm:$0xff]   ;;  %v9375_v6 = vld [vmem:[#allocation2 + $0x1a0] ss:$16 sps:$4 sm:$0xff]   ;;  %v9376_v7 = vld [vmem:[#allocation2 + $0x1a8] ss:$16 sps:$4 sm:$0xff]  }
  0xb6   : > { %994 = vmatprep.subr.bf16.mxu0 %v9371_v4  ;;  %1047 = vmatprep.subr.bf16.mxu1 %v9373_v5  ;;  %v9377_v8 = vld [vmem:[#allocation2 + $0x1c4] ss:$16 sps:$4 sm:$0xff]   ;;  %v9379_v9 = vld [vmem:[#allocation2 + $0x1cc] ss:$16 sps:$4 sm:$0xff]   ;;  %v9381_v10 = vld [vmem:[#allocation2 + $0x1c0] ss:$16 sps:$4 sm:$0xff]  }
  0xb7   : > { %v9382_v11 = vld [vmem:[#allocation2 + $0x1c8] ss:$16 sps:$4 sm:$0xff]   ;;  %v9383_v12 = vld [vmem:[#allocation2 + $0x1e4] ss:$16 sps:$4 sm:$0xff]   ;;  %v9385_v13 = vld [vmem:[#allocation2 + $0x1ec] ss:$16 sps:$4 sm:$0xff]  }
  0xb8   : > { %v9387_v14 = vld [vmem:[#allocation2 + $0x1e0] ss:$16 sps:$4 sm:$0xff]   ;;  %v9388_v15 = vld [vmem:[#allocation2 + $0x1e8] ss:$16 sps:$4 sm:$0xff]   ;;  %v9389_v16 = vld [vmem:[#allocation2 + $0x204] ss:$16 sps:$4 sm:$0xff]  }
  0xb9   : > { %995 = vmatpush1.bf16.msra.mxu0 %v9375_v6  ;;  %1048 = vmatpush1.bf16.msra.mxu1 %v9376_v7  ;;  %v9391_v17 = vld [vmem:[#allocation2 + $0x20c] ss:$16 sps:$4 sm:$0xff]   ;;  %v9393_v18 = vld [vmem:[#allocation2 + $0x200] ss:$16 sps:$4 sm:$0xff]   ;;  %v9394_v19 = vld [vmem:[#allocation2 + $0x208] ss:$16 sps:$4 sm:$0xff]  }
  0xba   : > { %996 = vmatprep.subr.bf16.mxu0 %v9377_v8  ;;  %1049 = vmatprep.subr.bf16.mxu1 %v9379_v9  ;;  %v9395_v20 = vld [vmem:[#allocation2 + $0x224] ss:$16 sps:$4 sm:$0xff]   ;;  %v9397_v21 = vld [vmem:[#allocation2 + $0x22c] ss:$16 sps:$4 sm:$0xff]   ;;  %p614_p7 = scmp.lt.s32.totalorder %s10944_s28, 1  ;;  %s12435_s26 = sld [smem:[#allocation24_spill]] }
  0xbb   : > { %v9399_v22 = vld [vmem:[#allocation2 + $0x220] ss:$16 sps:$4 sm:$0xff]   ;;  %v9400_v23 = vld [vmem:[#allocation2 + $0x228] ss:$16 sps:$4 sm:$0xff]   ;;  %v9401_v24 = vld [vmem:[#allocation2 + $0x244] ss:$16 sps:$4 sm:$0xff]  }
  0xbc   : > { %v9403_v25 = vld [vmem:[#allocation2 + $0x24c] ss:$16 sps:$4 sm:$0xff]   ;;  %s615_s17 = scalar_select %p614_p7, %s10944_s28, 1  ;;  %v9405_v26 = vld [vmem:[#allocation2 + $0x240] ss:$16 sps:$4 sm:$0xff]   ;;  %vm985_vm0 = vcmask 523264  }
  0xbd   : > { %997 = vmatpush1.bf16.msra.mxu0 %v9381_v10  ;;  %1050 = vmatpush1.bf16.msra.mxu1 %v9382_v11  ;;  %v9406_v27 = vld [vmem:[#allocation2 + $0x248] ss:$16 sps:$4 sm:$0xff]   ;;  %v9407_v28 = vld [vmem:[#allocation2 + $0x264] ss:$16 sps:$4 sm:$0xff]   ;;  %v9409_v29 = vld [vmem:[#allocation2 + $0x26c] ss:$16 sps:$4 sm:$0xff]  }
  0xbe   : > { %998 = vmatprep.subr.bf16.mxu0 %v9383_v12  ;;  %1051 = vmatprep.subr.bf16.mxu1 %v9385_v13  ;;  %s9266_s21 = smul.u32 80, %s615_s17  ;;  %v9411_v30 = vld [vmem:[#allocation2 + $0x260] ss:$16 sps:$4 sm:$0xff]   ;;  %v9412_v31 = vld [vmem:[#allocation2 + $0x268] ss:$16 sps:$4 sm:$0xff]   ;;  %vm2007_vm4 = vcmask 261120  }
  0xbf   : > { %v9413_v32 = vld [vmem:[#allocation2 + $0x284] ss:$16 sps:$4 sm:$0xff]   ;;  %v9415_v33 = vld [vmem:[#allocation2 + $0x28c] ss:$16 sps:$4 sm:$0xff]   ;;  %v9417_v34 = vld [vmem:[#allocation2 + $0x280] ss:$16 sps:$4 sm:$0xff]  }
  0xc0   : > { %s11128_s4 = scalar_lea.vmem %s12435_s26, %s9266_s21  ;;  %v9418_v35 = vld [vmem:[#allocation2 + $0x288] ss:$16 sps:$4 sm:$0xff]   ;;  %v9419_v36 = vld [vmem:[#allocation2 + $0x2a4] ss:$16 sps:$4 sm:$0xff]   ;;  %v9421_v37 = vld [vmem:[#allocation2 + $0x2ac] ss:$16 sps:$4 sm:$0xff]  }
  0xc1   : > { %999 = vmatpush1.bf16.msra.mxu0 %v9387_v14  ;;  %1052 = vmatpush1.bf16.msra.mxu1 %v9388_v15  ;;  %v9439_v38 = vld [vmem:[%s11128_s4 + $0x2c] ss:$8 sps:$4 sm:$0xff]   ;;  %v9423_v39 = vld [vmem:[#allocation2 + $0x2a0] ss:$16 sps:$4 sm:$0xff]   ;;  %v9424_v40 = vld [vmem:[#allocation2 + $0x2a8] ss:$16 sps:$4 sm:$0xff]  }
  0xc2   : > { %1000 = vmatprep.subr.bf16.mxu0 %v9389_v16  ;;  %1053 = vmatprep.subr.bf16.mxu1 %v9391_v17  ;;  %v9425_v41 = vld [vmem:[#allocation2 + $0x2c4] ss:$16 sps:$4 sm:$0xff]   ;;  %v9427_v42 = vld [vmem:[#allocation2 + $0x2cc] ss:$16 sps:$4 sm:$0xff]   ;;  %v9429_v43 = vld [vmem:[#allocation2 + $0x2c0] ss:$16 sps:$4 sm:$0xff]  }
  0xc3   : > { %8133 = vmatprep.mubr.msk.bf16.mxu0 %vm985_vm0, %v9439_v38  ;;  %8135 = vmatprep.mubr.msk.bf16.mxu1 %vm985_vm0, %v9439_v38  ;;  %v9430_v44 = vld [vmem:[#allocation2 + $0x2c8] ss:$16 sps:$4 sm:$0xff]   ;;  %v9431_v45 = vld [vmem:[#allocation2 + $0x2e4] ss:$16 sps:$4 sm:$0xff]   ;;  %v9433_v46 = vld [vmem:[#allocation2 + $0x2ec] ss:$16 sps:$4 sm:$0xff]  }
  0xc4   : > { %v9435_v47 = vld [vmem:[#allocation2 + $0x2e0] ss:$16 sps:$4 sm:$0xff]   ;;  %v9436_v48 = vld [vmem:[#allocation2 + $0x2e8] ss:$16 sps:$4 sm:$0xff]   ;;  %v9442_v49 = vld [vmem:[#allocation2 + $0x4] ss:$16 sps:$4 sm:$0xff]  }
  0xc5   : > { %1001 = vmatpush1.bf16.msra.mxu0 %v9393_v18  ;;  %1054 = vmatpush1.bf16.msra.mxu1 %v9394_v19  ;;  %v9445_v50 = vld [vmem:[#allocation2 + $0xc] ss:$16 sps:$4 sm:$0xff]   ;;  %v9437_v51 = vld [vmem:[%s11128_s4 + $0x28] ss:$8 sps:$4 sm:$0xff]   ;;  %v9448_v54 = vld [vmem:[#allocation2 + $0x24] ss:$16 sps:$4 sm:$0xff]  }
  0xc6   : > { %1002 = vmatprep.subr.bf16.mxu0 %v9395_v20  ;;  %1055 = vmatprep.subr.bf16.mxu1 %v9397_v21  ;;  %v9440_v52 = vld [vmem:[#allocation2] ss:$16 sps:$4 sm:$0xff]   ;;  %v9443_v53 = vld [vmem:[#allocation2 + $0x8] ss:$16 sps:$4 sm:$0xff]   ;;  %v9451_v55 = vld [vmem:[#allocation2 + $0x2c] ss:$16 sps:$4 sm:$0xff]  }
  0xc7   : > { %v9446_v56 = vld [vmem:[#allocation2 + $0x20] ss:$16 sps:$4 sm:$0xff]   ;;  %v9449_v57 = vld [vmem:[#allocation2 + $0x28] ss:$16 sps:$4 sm:$0xff]   ;;  %v9454_v58 = vld [vmem:[#allocation2 + $0x44] ss:$16 sps:$4 sm:$0xff]  }
  0xc8   : > { %v9457_v59 = vld [vmem:[#allocation2 + $0x4c] ss:$16 sps:$4 sm:$0xff]   ;;  %v9452_v60 = vld [vmem:[#allocation2 + $0x40] ss:$16 sps:$4 sm:$0xff]   ;;  %v9455_v61 = vld [vmem:[#allocation2 + $0x48] ss:$16 sps:$4 sm:$0xff]  }
  0xc9   : > { %1003 = vmatpush1.bf16.msra.mxu0 %v9399_v22  ;;  %1056 = vmatpush1.bf16.msra.mxu1 %v9400_v23  ;;  %v9460_v62 = vld [vmem:[#allocation2 + $0x64] ss:$16 sps:$4 sm:$0xff]   ;;  %v9463_v63 = vld [vmem:[#allocation2 + $0x6c] ss:$16 sps:$4 sm:$0xff]   ;;  %v9458_v0 = vld [vmem:[#allocation2 + $0x60] ss:$16 sps:$4 sm:$0xff]  }
  0xca   : > { %1004 = vmatprep.subr.bf16.mxu0 %v9401_v24  ;;  %1057 = vmatprep.subr.bf16.mxu1 %v9403_v25  ;;  %v9461_v1 = vld [vmem:[#allocation2 + $0x68] ss:$16 sps:$4 sm:$0xff]   ;;  %v9466_v2 = vld [vmem:[#allocation2 + $0x84] ss:$16 sps:$4 sm:$0xff]   ;;  %v9469_v4 = vld [vmem:[#allocation2 + $0x8c] ss:$16 sps:$4 sm:$0xff]  }
  0xcb   : > { %v9500_v3 = vld [vmem:[%s11128_s4 + $0x3c] ss:$8 sps:$4 sm:$0xff]   ;;  %v9464_v5 = vld [vmem:[#allocation2 + $0x80] ss:$16 sps:$4 sm:$0xff]   ;;  %v9467_v6 = vld [vmem:[#allocation2 + $0x88] ss:$16 sps:$4 sm:$0xff]  }
  0xcc   : > { %v9508_v7 = vld [vmem:[%s11128_s4 + $0x38] ss:$8 sps:$4 sm:$0xff]   ;;  %v9472_v8 = vld [vmem:[#allocation2 + $0xa4] ss:$16 sps:$4 sm:$0xff]   ;;  %v9475_v9 = vld [vmem:[#allocation2 + $0xac] ss:$16 sps:$4 sm:$0xff]  }
  0xcd   : > { %1005 = vmatpush1.bf16.msra.mxu0 %v9405_v26  ;;  %1058 = vmatpush1.bf16.msra.mxu1 %v9406_v27  ;;  %v9470_v10 = vld [vmem:[#allocation2 + $0xa0] ss:$16 sps:$4 sm:$0xff]   ;;  %v9473_v11 = vld [vmem:[#allocation2 + $0xa8] ss:$16 sps:$4 sm:$0xff]   ;;  %v11139_v12 = vld [vmem:[%s11128_s4 + $0x4] ss:$8 sps:$4 sm:$0xff]  }
  0xce   : > { %1006 = vmatprep.subr.bf16.mxu0 %v9407_v28  ;;  %1059 = vmatprep.subr.bf16.mxu1 %v9409_v29  ;;  %v9478_v13 = vld [vmem:[#allocation2 + $0xc4] ss:$16 sps:$4 sm:$0xff]   ;;  %v9481_v14 = vld [vmem:[#allocation2 + $0xcc] ss:$16 sps:$4 sm:$0xff]   ;;  %v9476_v15 = vld [vmem:[#allocation2 + $0xc0] ss:$16 sps:$4 sm:$0xff]  }
  0xcf   : > { %v9479_v16 = vld [vmem:[#allocation2 + $0xc8] ss:$16 sps:$4 sm:$0xff]   ;;  %v9484_v17 = vld [vmem:[#allocation2 + $0xe4] ss:$16 sps:$4 sm:$0xff]   ;;  %v9487_v18 = vld [vmem:[#allocation2 + $0xec] ss:$16 sps:$4 sm:$0xff]  }
  0xd0   : > { %v9482_v19 = vld [vmem:[#allocation2 + $0xe0] ss:$16 sps:$4 sm:$0xff]   ;;  %v9485_v20 = vld [vmem:[#allocation2 + $0xe8] ss:$16 sps:$4 sm:$0xff]   ;;  %v9490_v21 = vld [vmem:[#allocation2 + $0x104] ss:$16 sps:$4 sm:$0xff]  }
  0xd1   : > { %1007 = vmatpush1.bf16.msra.mxu0 %v9411_v30  ;;  %1060 = vmatpush1.bf16.msra.mxu1 %v9412_v31  ;;  %v9493_v22 = vld [vmem:[#allocation2 + $0x10c] ss:$16 sps:$4 sm:$0xff]   ;;  %v9488_v23 = vld [vmem:[#allocation2 + $0x100] ss:$16 sps:$4 sm:$0xff]   ;;  %v9491_v24 = vld [vmem:[#allocation2 + $0x108] ss:$16 sps:$4 sm:$0xff]  }
  0xd2   : > { %1008 = vmatprep.subr.bf16.mxu0 %v9413_v32  ;;  %1061 = vmatprep.subr.bf16.mxu1 %v9415_v33  ;;  %v9496_v25 = vld [vmem:[#allocation2 + $0x124] ss:$16 sps:$4 sm:$0xff]   ;;  %v9499_v26 = vld [vmem:[#allocation2 + $0x12c] ss:$16 sps:$4 sm:$0xff]   ;;  %v9494_v27 = vld [vmem:[#allocation2 + $0x120] ss:$16 sps:$4 sm:$0xff]  }
  0xd3   : > { %v9497_v28 = vld [vmem:[#allocation2 + $0x128] ss:$16 sps:$4 sm:$0xff]   ;;  %v9504_v29 = vld [vmem:[#allocation2 + $0x144] ss:$16 sps:$4 sm:$0xff]   ;;  %v9507_v30 = vld [vmem:[#allocation2 + $0x14c] ss:$16 sps:$4 sm:$0xff]  }
  0xd4   : > { %v9502_v31 = vld [vmem:[#allocation2 + $0x140] ss:$16 sps:$4 sm:$0xff]   ;;  %v9505_v32 = vld [vmem:[#allocation2 + $0x148] ss:$16 sps:$4 sm:$0xff]   ;;  %v9511_v33 = vld [vmem:[#allocation2 + $0x164] ss:$16 sps:$4 sm:$0xff]  }
  0xd5   : > { %1009 = vmatpush1.bf16.msra.mxu0 %v9417_v34  ;;  %1062 = vmatpush1.bf16.msra.mxu1 %v9418_v35  ;;  %v9514_v34 = vld [vmem:[#allocation2 + $0x16c] ss:$16 sps:$4 sm:$0xff]   ;;  %v9509_v35 = vld [vmem:[#allocation2 + $0x160] ss:$16 sps:$4 sm:$0xff]   ;;  %vm1522_vm1 = vsmask.f32 7424 }
  0xd6   : > { %1010 = vmatprep.subr.bf16.mxu0 %v9419_v36  ;;  %1063 = vmatprep.subr.bf16.mxu1 %v9421_v37  ;;  %v9512_v36 = vld [vmem:[#allocation2 + $0x168] ss:$16 sps:$4 sm:$0xff]   ;;  %v9520_v37 = vld [vmem:[#allocation2 + $0x304] ss:$16 sps:$4 sm:$0xff]   ;;  %v9523_v38 = vld [vmem:[#allocation2 + $0x30c] ss:$16 sps:$4 sm:$0xff]  }
  0xd7   : > { %vm2235_vm7 = vcmask 1040384   ;;  %vm2236_vm8 = vsmask.f32 256  ;;  %vm3733_vm10 = vcmask 130048   ;;  %vm3845_vm11 = vcmask 1043456   ;;  %s12438_s6 = sld [smem:[#allocation29_spill]] }
  0xd8   : > { %vm11367_vm9 = vmand %vm2235_vm7, %vm2236_vm8  ;;  %vm4608_vm12 = vcmask 1044480   ;;  %vm4609_vm13 = vsmask.f32 4352  ;;  %vm5356_vm15 = vcmask 64512   ;;  %s12439_s24 = sld [smem:[#allocation28_spill]]  ;;  %s12440_s26 = sld [smem:[#allocation17_spill]] }
  0xd9   : > { %1011 = vmatpush1.bf16.msra.mxu0 %v9423_v39  ;;  %1064 = vmatpush1.bf16.msra.mxu1 %v9424_v40  ;;  %v11146_v39 = vld [vmem:[%s11128_s4] ss:$8 sps:$4 sm:$0xff]   ;;  %vm4610_vm14 = vmand %vm4608_vm12, %vm4609_vm13  ;;  %s12442_s18 = sld [smem:[#allocation30_spill]]  ;;  %s9135_s16 = sshll.u32 %s10944_s28, 4 }
  0xda   : > { %1012 = vmatprep.subr.bf16.mxu0 %v9425_v41  ;;  %1065 = vmatprep.subr.bf16.mxu1 %v9427_v42  ;;  %v9518_v40 = vld [vmem:[#allocation2 + $0x300] ss:$16 sps:$4 sm:$0xff]   ;;  %v9521_v41 = vld [vmem:[#allocation2 + $0x308] ss:$16 sps:$4 sm:$0xff]   ;;  %v9526_v42 = vld [vmem:[#allocation2 + $0x324] ss:$16 sps:$4 sm:$0xff]  }
  0xdb   : > { %s12443_s23 = sld [smem:[#allocation31_spill]]  ;;  %s10832_s28 = smov [#allocation11]  }
  0xdc   : > { %s10747_s21 = sshll.u32 %s10832_s28, 4  ;;  %s10748_s21 = int_to_ptr.vmem [resolvable:$false] %s10747_s21 }
  0xdd   : > { %1013 = vmatpush1.bf16.msra.mxu0 %v9429_v43  ;;  %1066 = vmatpush1.bf16.msra.mxu1 %v9430_v44  ;;  %v1537_v43 = vshll.u32 %v11139_v12, 16  ;;  %v9529_v44 = vld [vmem:[#allocation2 + $0x32c] ss:$16 sps:$4 sm:$0xff]   ;;  %s10749_s29 = scalar_lea.vmem %s10748_s21, 32 }
  0xde   : > { %1014 = vmatprep.subr.bf16.mxu0 %v9431_v45  ;;  %1067 = vmatprep.subr.bf16.mxu1 %v9433_v46  ;;  %v11150_v45 = vld [vmem:[%s11128_s4 + $0x14] ss:$8 sps:$4 sm:$0xff]   ;;  %v9524_v46 = vld [vmem:[#allocation2 + $0x320] ss:$16 sps:$4 sm:$0xff]   ;;  %s612_s27 = sand.u32 1, %s12440_s26  }
  0xdf   : > { %s613_s25 = scalar_lea.vmem [#allocation11], %s612_s27  ;;  %s7945_s14 = scalar_lea.sflag [#allocation4], %s612_s27 }
  0xe0   : > { %s7957_s1 = sshll.u32 %s613_s25, 4  ;;  %s12325_s1 = int_to_ptr.vmem [resolvable:$true] %s7957_s1 }
  0xe1   : > { %1015 = vmatpush1.bf16.msra.mxu0 %v9435_v47  ;;  %1068 = vmatpush1.bf16.msra.mxu1 %v9436_v48  ;;  %v9527_v47 = vld [vmem:[#allocation2 + $0x328] ss:$16 sps:$4 sm:$0xff]   ;;  %v1535_v48 = vshrl.u32 %v11139_v12, 16  ;;  %s12323_s30 = scalar_lea.hbm %s12443_s23, %s9135_s16  ;;  %s10743_s17 = scalar_lea.vmem %s12325_s1, 16 }
  0xe2   : > { %1362 = vmatprep.subr.bf16.mxu0 %v9442_v49  ;;  %1415 = vmatprep.subr.bf16.mxu1 %v9445_v50  ;;  %v1539_v49 = vrot.slane %v1537_v43, 1  ;;  %v1541_v50 = vshll.u32 %v11150_v45, 16  ;;  %p10744_p8 = scmp.ne.s32.totalorder %s12325_s1, %s10743_s17  ;;  %p10750_p6 = scmp.lt.s32.totalorder %s12325_s1, %s10748_s21 }
  0xe3   : > { %p10751_p9 = scmp.lt.s32.totalorder %s10749_s29, %s10743_s17 }
  0xe4   : > { %1025 = vmatmul.mubr.bf16.vlgmr.msra.gmra.mrb[0].mxu0 %v9437_v51  ;;  %1078 = vmatmul.mubr.bf16.vlgmr.msra.gmra.mrb[0].mxu1 %v9437_v51  ;;  %v9532_v51 = vld [vmem:[#allocation2 + $0x344] ss:$16 sps:$4 sm:$0xff]  }
  0xe5   : > { %1363 = vmatpush1.bf16.msra.mxu0 %v9440_v52  ;;  %1416 = vmatpush1.bf16.msra.mxu1 %v9443_v53  ;;  %v9535_v52 = vld [vmem:[#allocation2 + $0x34c] ss:$16 sps:$4 sm:$0xff]   ;;  %v11157_v53 = vld [vmem:[%s11128_s4 + $0x10] ss:$8 sps:$4 sm:$0xff]   ;;  %p10752_p5 = por %p10751_p9, %p10750_p6 }
  0xe6   : > { %1364 = vmatprep.subr.bf16.mxu0 %v9448_v54  ;;  %1417 = vmatprep.subr.bf16.mxu1 %v9451_v55  ;;  %v9530_v54 = vld [vmem:[#allocation2 + $0x340] ss:$16 sps:$4 sm:$0xff]   ;;  %v9533_v55 = vld [vmem:[#allocation2 + $0x348] ss:$16 sps:$4 sm:$0xff]  }
  0xe7   : > { %8134 = vmatprep.mubr.msk.bf16.mxu0 %vm985_vm0, %v9500_v3  ;;  %8136 = vmatprep.mubr.msk.bf16.mxu1 %vm985_vm0, %v9500_v3  ;;  %v9550_v3 = vld [vmem:[#allocation2 + $0x3a4] ss:$16 sps:$4 sm:$0xff]  }
  0xe9   : > { %1365 = vmatpush1.bf16.msra.mxu0 %v9446_v56  ;;  %1418 = vmatpush1.bf16.msra.mxu1 %v9449_v57  ;;  %v9538_v56 = vld [vmem:[#allocation2 + $0x364] ss:$16 sps:$4 sm:$0xff]   ;;  %v9541_v57 = vld [vmem:[#allocation2 + $0x36c] ss:$16 sps:$4 sm:$0xff]  }
  0xea   : > { %1366 = vmatprep.subr.bf16.mxu0 %v9454_v58  ;;  %1419 = vmatprep.subr.bf16.mxu1 %v9457_v59  ;;  %v1540_v58 = vor.u32 %v1539_v49, %v1535_v48  ;;  %v11163_v59 = vrot.slane %v1541_v50, 1 }
  0xec   : > { %1035 = vmatmul.mubr.bf16.gmra.mrb[4].mxu0 %v9508_v7  ;;  %1088 = vmatmul.mubr.bf16.gmra.mrb[4].mxu1 %v9508_v7  ;;  %v9556_v7 = vld [vmem:[#allocation2 + $0x3c4] ss:$16 sps:$4 sm:$0xff]  }
  0xed   : > { %1367 = vmatpush1.bf16.msra.mxu0 %v9452_v60  ;;  %1420 = vmatpush1.bf16.msra.mxu1 %v9455_v61  ;;  %v9536_v60 = vld [vmem:[#allocation2 + $0x360] ss:$16 sps:$4 sm:$0xff]   ;;  %v9539_v61 = vld [vmem:[#allocation2 + $0x368] ss:$16 sps:$4 sm:$0xff]  }
  0xee   : > { %1368 = vmatprep.subr.bf16.mxu0 %v9460_v62  ;;  %1421 = vmatprep.subr.bf16.mxu1 %v9463_v63  ;;  %v9544_v62 = vld [vmem:[#allocation2 + $0x384] ss:$16 sps:$4 sm:$0xff]   ;;  %v9547_v63 = vld [vmem:[#allocation2 + $0x38c] ss:$16 sps:$4 sm:$0xff]  }
  0xef   : > { %8189 = vmatprep.mubr.msk.bf16.mxu0 %vm985_vm0, %v11139_v12  ;;  %8191 = vmatprep.mubr.msk.bf16.mxu1 %vm985_vm0, %v11139_v12  ;;  %v9565_v12 = vld [vmem:[#allocation2 + $0x3ec] ss:$16 sps:$4 sm:$0xff]  }
  0xf1   : > { %1369 = vmatpush1.bf16.msra.mxu0 %v9458_v0  ;;  %1422 = vmatpush1.bf16.msra.mxu1 %v9461_v1  ;;  %v1544_v0 = vsel %vm1522_vm1, %v1540_v58, %v11163_v59  ;;  %v9542_v1 = vld [vmem:[#allocation2 + $0x380] ss:$16 sps:$4 sm:$0xff]   ;;  %v9606_v58 = vld [vmem:[%s12367_s2 + $0x234] ss:$8 sps:$4 sm:$0xff]  }
  0xf2   : > { %1370 = vmatprep.subr.bf16.mxu0 %v9466_v2  ;;  %1423 = vmatprep.subr.bf16.mxu1 %v9469_v4  ;;  %v9545_v2 = vld [vmem:[#allocation2 + $0x388] ss:$16 sps:$4 sm:$0xff]   ;;  %v9553_v4 = vld [vmem:[#allocation2 + $0x3ac] ss:$16 sps:$4 sm:$0xff]  }
  0xf5   : > { %1371 = vmatpush1.bf16.msra.mxu0 %v9464_v5  ;;  %1424 = vmatpush1.bf16.msra.mxu1 %v9467_v6  ;;  %v9548_v5 = vld [vmem:[#allocation2 + $0x3a0] ss:$16 sps:$4 sm:$0xff]   ;;  %v9551_v6 = vld [vmem:[#allocation2 + $0x3a8] ss:$16 sps:$4 sm:$0xff]  }
  0xf6   : > { %1372 = vmatprep.subr.bf16.mxu0 %v9472_v8  ;;  %1425 = vmatprep.subr.bf16.mxu1 %v9475_v9  ;;  %v9559_v8 = vld [vmem:[#allocation2 + $0x3cc] ss:$16 sps:$4 sm:$0xff]   ;;  %v9554_v9 = vld [vmem:[#allocation2 + $0x3c0] ss:$16 sps:$4 sm:$0xff]  }
  0xf9   : > { %1373 = vmatpush1.bf16.msra.mxu0 %v9470_v10  ;;  %1426 = vmatpush1.bf16.msra.mxu1 %v9473_v11  ;;  %v9557_v10 = vld [vmem:[#allocation2 + $0x3c8] ss:$16 sps:$4 sm:$0xff]   ;;  %v9562_v11 = vld [vmem:[#allocation2 + $0x3e4] ss:$16 sps:$4 sm:$0xff]  }
  0xfa   : > { %1374 = vmatprep.subr.bf16.mxu0 %v9478_v13  ;;  %1427 = vmatprep.subr.bf16.mxu1 %v9481_v14  ;;  %v9560_v13 = vld [vmem:[#allocation2 + $0x3e0] ss:$16 sps:$4 sm:$0xff]   ;;  %v9563_v14 = vld [vmem:[#allocation2 + $0x3e8] ss:$16 sps:$4 sm:$0xff]  }
  0xfd   : > { %1375 = vmatpush1.bf16.msra.mxu0 %v9476_v15  ;;  %1428 = vmatpush1.bf16.msra.mxu1 %v9479_v16  ;;  %v9568_v15 = vld [vmem:[#allocation2 + $0x404] ss:$16 sps:$4 sm:$0xff]   ;;  %v9571_v16 = vld [vmem:[#allocation2 + $0x40c] ss:$16 sps:$4 sm:$0xff]  }
  0xfe   : > { %1376 = vmatprep.subr.bf16.mxu0 %v9484_v17  ;;  %1429 = vmatprep.subr.bf16.mxu1 %v9487_v18  ;;  %v9566_v17 = vld [vmem:[#allocation2 + $0x400] ss:$16 sps:$4 sm:$0xff]   ;;  %v9569_v18 = vld [vmem:[#allocation2 + $0x408] ss:$16 sps:$4 sm:$0xff]  }
 0x101   : > { %1377 = vmatpush1.bf16.msra.mxu0 %v9482_v19  ;;  %1430 = vmatpush1.bf16.msra.mxu1 %v9485_v20  ;;  %v9574_v19 = vld [vmem:[#allocation2 + $0x424] ss:$16 sps:$4 sm:$0xff]   ;;  %v9577_v20 = vld [vmem:[#allocation2 + $0x42c] ss:$16 sps:$4 sm:$0xff]  }
 0x102   : > { %1378 = vmatprep.subr.bf16.mxu0 %v9490_v21  ;;  %1431 = vmatprep.subr.bf16.mxu1 %v9493_v22  ;;  %v624_v21 = vld [vmem:[%s11128_s4 + $0x20] sm:$0x11]  ;;  %s12441_s4 = sld [smem:[#allocation22_spill]] }
 0x103   : > { %v9572_v22 = vld [vmem:[#allocation2 + $0x420] ss:$16 sps:$4 sm:$0xff]  }
 0x105   : > { %1379 = vmatpush1.bf16.msra.mxu0 %v9488_v23  ;;  %1432 = vmatpush1.bf16.msra.mxu1 %v9491_v24  ;;  %v9575_v23 = vld [vmem:[#allocation2 + $0x428] ss:$16 sps:$4 sm:$0xff]   ;;  %v9583_v24 = vld [vmem:[#allocation2 + $0x444] ss:$16 sps:$4 sm:$0xff]  }
 0x106   : > { %1380 = vmatprep.subr.bf16.mxu0 %v9496_v25  ;;  %1433 = vmatprep.subr.bf16.mxu1 %v9499_v26  ;;  %v9586_v25 = vld [vmem:[#allocation2 + $0x44c] ss:$16 sps:$4 sm:$0xff]   ;;  %v1526_v26 = vshll.u32 %v11146_v39, 16 }
 0x108   : > { %p12444_p11 = scmp.ne.s32.totalorder %s12441_s4, 0 }
 0x109   : > { %1381 = vmatpush1.bf16.msra.mxu0 %v9494_v27  ;;  %1434 = vmatpush1.bf16.msra.mxu1 %v9497_v28  ;;  %v8194_v27 = vcombine.high %v624_v21, %v624_v21  ;;  %v9581_v28 = vld [vmem:[#allocation2 + $0x440] ss:$16 sps:$4 sm:$0xff]  }
 0x10a   : > { %1382 = vmatprep.subr.bf16.mxu0 %v9504_v29  ;;  %1435 = vmatprep.subr.bf16.mxu1 %v9507_v30  ;;  %v9584_v29 = vld [vmem:[#allocation2 + $0x448] ss:$16 sps:$4 sm:$0xff]   ;;  %v9589_v30 = vld [vmem:[#allocation2 + $0x464] ss:$16 sps:$4 sm:$0xff]   ;;  %p10745_p13 = pnand %p10744_p8, %p12444_p11 }
 0x10c   : > { %p10746_p1 = pneg %p10745_p13 }
 0x10d   : > { %1383 = vmatpush1.bf16.msra.mxu0 %v9502_v31  ;;  %1436 = vmatpush1.bf16.msra.mxu1 %v9505_v32  ;;  %v9592_v31 = vld [vmem:[#allocation2 + $0x46c] ss:$16 sps:$4 sm:$0xff]   ;;  %v1524_v32 = vshrl.u32 %v11146_v39, 16 }
 0x10e   : > { %1384 = vmatprep.subr.bf16.mxu0 %v9511_v33  ;;  %1437 = vmatprep.subr.bf16.mxu1 %v9514_v34  ;;  %v1528_v33 = vrot.slane %v1526_v26, 1  ;;  %v1531_v34 = vshll.u32 %v11157_v53, 16  ;;  %p10753_p0 = pnand %p10752_p5, %p10746_p1 }
 0x111   : > { %1385 = vmatpush1.bf16.msra.mxu0 %v9509_v35  ;;  %1438 = vmatpush1.bf16.msra.mxu1 %v9512_v36  ;;  %v1553_v35 = vshrl.u32 %v11150_v45, 16  ;;  %v1557_v36 = vshll.u32 %v8194_v27, 16 }
 0x112   : > { %1809 = vmatprep.subr.bf16.mxu0 %v9520_v37  ;;  %1862 = vmatprep.subr.bf16.mxu1 %v9523_v38  ;;  %v9587_v37 = vld [vmem:[#allocation2 + $0x460] ss:$16 sps:$4 sm:$0xff]   ;;  %v9590_v38 = vld [vmem:[#allocation2 + $0x468] ss:$16 sps:$4 sm:$0xff]  }
 0x113   : > { %v1555_v43 = vor.u32 %v1553_v35, %v11163_v59  ;;  %v9604_v59 = vld [vmem:[%s12367_s2 + $0x230] ss:$8 sps:$4 sm:$0xff]  }
 0x114   : > { %1395 = vmatmul.mubr.bf16.vlgmr.msra.gmra.mrb[0].mxu0 %v11146_v39  ;;  %1448 = vmatmul.mubr.bf16.vlgmr.msra.gmra.mrb[0].mxu1 %v11146_v39  ;;  %v1559_v39 = vrot.slane %v1557_v36, 1 }
 0x115   : > { %1810 = vmatpush1.bf16.msra.mxu0 %v9518_v40  ;;  %1863 = vmatpush1.bf16.msra.mxu1 %v9521_v41  ;;  %v1529_v40 = vor.u32 %v1528_v33, %v1524_v32  ;;  %v1533_v41 = vrot.slane %v1531_v34, 1 }
 0x116   : > { %1811 = vmatprep.subr.bf16.mxu0 %v9526_v42  ;;  %1864 = vmatprep.subr.bf16.mxu1 %v9529_v44  ;;  %v8193_v42 = vcombine.low %v624_v21, %v624_v21 }
 0x117   : > { %8190 = vmatprep.mubr.msk.bf16.mxu0 %vm985_vm0, %v11150_v45  ;;  %8192 = vmatprep.mubr.msk.bf16.mxu1 %vm985_vm0, %v11150_v45  ;;  %v1534_v44 = vsel %vm1522_vm1, %v1529_v40, %v1533_v41 }
 0x118   : > { %v1549_v45 = vshll.u32 %v8193_v42, 16 }
 0x119   : > { %1812 = vmatpush1.bf16.msra.mxu0 %v9524_v46  ;;  %1865 = vmatpush1.bf16.msra.mxu1 %v9527_v47  ;;  %v1545_v46 = vshrl.u32 %v11157_v53, 16  ;;  %v1560_v47 = vsel %vm1522_vm1, %v1555_v43, %v1559_v39 }
 0x11a   : > { %1813 = vmatprep.subr.bf16.mxu0 %v9532_v51  ;;  %1866 = vmatprep.subr.bf16.mxu1 %v9535_v52  ;;  %v1551_v49 = vrot.slane %v1549_v45, 1  ;;  %v10828_v51 = vmov 0   ;;  %v9595_v52 = vld [vmem:[%s12367_s2 + $0x200] ss:$8 sps:$4 sm:$0xff]  }
 0x11b   : > { %v1547_v48 = vor.u32 %v1545_v46, %v1533_v41 }
 0x11c   : > { %1405 = vmatmul.mubr.bf16.gmra.mrb[4].mxu0 %v11157_v53  ;;  %1458 = vmatmul.mubr.bf16.gmra.mrb[4].mxu1 %v11157_v53  ;;  %v9597_v53 = vld [vmem:[%s12367_s2 + $0x204] ss:$8 sps:$4 sm:$0xff]  }
 0x11d   : > { %1814 = vmatpush1.bf16.msra.mxu0 %v9530_v54  ;;  %1867 = vmatpush1.bf16.msra.mxu1 %v9533_v55  ;;  %v1552_v50 = vsel %vm1522_vm1, %v1547_v48, %v1551_v49  ;;  %v9600_v54 = vld [vmem:[%s12367_s2 + $0x214] ss:$8 sps:$4 sm:$0xff]   ;;  %v9598_v55 = vld [vmem:[%s12367_s2 + $0x210] ss:$8 sps:$4 sm:$0xff]  }
 0x11e   : > { %1815 = vmatprep.subr.bf16.mxu0 %v9538_v56  ;;  %1868 = vmatprep.subr.bf16.mxu1 %v9541_v57  ;;  %v9603_v56 = vld [vmem:[%s12367_s2 + $0x224] ss:$8 sps:$4 sm:$0xff]   ;;  %v9601_v57 = vld [vmem:[%s12367_s2 + $0x220] ss:$8 sps:$4 sm:$0xff]  }
 0x11f   : > { %8243 = vmatprep.mubr.msk.bf16.mxu0 %vm985_vm0, %v1544_v0  ;;  %8245 = vmatprep.mubr.msk.bf16.mxu1 %vm985_vm0, %v1544_v0  ;;  %v9615_v0 = vld [vmem:[%s12367_s2 + $0x264] ss:$8 sps:$4 sm:$0xff]  }
 0x121   : > { %1816 = vmatpush1.bf16.msra.mxu0 %v9536_v60  ;;  %1869 = vmatpush1.bf16.msra.mxu1 %v9539_v61  ;;  %v9609_v60 = vld [vmem:[%s12367_s2 + $0x244] ss:$8 sps:$4 sm:$0xff]   ;;  %v9607_v61 = vld [vmem:[%s12367_s2 + $0x240] ss:$8 sps:$4 sm:$0xff]  }
 0x122   : > { %1817 = vmatprep.subr.bf16.mxu0 %v9544_v62  ;;  %1870 = vmatprep.subr.bf16.mxu1 %v9547_v63  ;;  %v9612_v62 = vld [vmem:[%s12367_s2 + $0x254] ss:$8 sps:$4 sm:$0xff]   ;;  %v9610_v63 = vld [vmem:[%s12367_s2 + $0x250] ss:$8 sps:$4 sm:$0xff]  }
 0x125   : > { %1818 = vmatpush1.bf16.msra.mxu0 %v9542_v1  ;;  %1871 = vmatpush1.bf16.msra.mxu1 %v9545_v2  ;;  %v9613_v1 = vld [vmem:[%s12367_s2 + $0x260] ss:$8 sps:$4 sm:$0xff]   ;;  %v9618_v2 = vld [vmem:[%s12367_s2 + $0x274] ss:$8 sps:$4 sm:$0xff]  }
 0x126   : > { %1819 = vmatprep.subr.bf16.mxu0 %v9550_v3  ;;  %1872 = vmatprep.subr.bf16.mxu1 %v9553_v4  ;;  %v9616_v3 = vld [vmem:[%s12367_s2 + $0x270] ss:$8 sps:$4 sm:$0xff]   ;;  %v9621_v4 = vld [vmem:[%s12367_s2 + $0x284] ss:$8 sps:$4 sm:$0xff]  }
 0x129   : > { %1820 = vmatpush1.bf16.msra.mxu0 %v9548_v5  ;;  %1873 = vmatpush1.bf16.msra.mxu1 %v9551_v6  ;;  %v9619_v5 = vld [vmem:[%s12367_s2 + $0x280] ss:$8 sps:$4 sm:$0xff]   ;;  %v9624_v6 = vld [vmem:[%s12367_s2 + $0x294] ss:$8 sps:$4 sm:$0xff]  }
 0x12a   : > { %1821 = vmatprep.subr.bf16.mxu0 %v9556_v7  ;;  %1874 = vmatprep.subr.bf16.mxu1 %v9559_v8  ;;  %v9622_v7 = vld [vmem:[%s12367_s2 + $0x290] ss:$8 sps:$4 sm:$0xff]   ;;  %v9627_v8 = vld [vmem:[%s12367_s2 + $0x2a4] ss:$8 sps:$4 sm:$0xff]  }
 0x12d   : > { %1822 = vmatpush1.bf16.msra.mxu0 %v9554_v9  ;;  %1875 = vmatpush1.bf16.msra.mxu1 %v9557_v10  ;;  %v9625_v9 = vld [vmem:[%s12367_s2 + $0x2a0] ss:$8 sps:$4 sm:$0xff]   ;;  %v9630_v10 = vld [vmem:[%s12367_s2 + $0x2b4] ss:$8 sps:$4 sm:$0xff]  }
 0x12e   : > { %1823 = vmatprep.subr.bf16.mxu0 %v9562_v11  ;;  %1876 = vmatprep.subr.bf16.mxu1 %v9565_v12  ;;  %v9628_v11 = vld [vmem:[%s12367_s2 + $0x2b0] ss:$8 sps:$4 sm:$0xff]   ;;  %v9633_v12 = vld [vmem:[%s12367_s2 + $0x2c4] ss:$8 sps:$4 sm:$0xff]  }
 0x131   : > { %1824 = vmatpush1.bf16.msra.mxu0 %v9560_v13  ;;  %1877 = vmatpush1.bf16.msra.mxu1 %v9563_v14  ;;  %v9631_v13 = vld [vmem:[%s12367_s2 + $0x2c0] ss:$8 sps:$4 sm:$0xff]   ;;  %v9636_v14 = vld [vmem:[%s12367_s2 + $0x2d4] ss:$8 sps:$4 sm:$0xff]  }
 0x132   : > { %1825 = vmatprep.subr.bf16.mxu0 %v9568_v15  ;;  %1878 = vmatprep.subr.bf16.mxu1 %v9571_v16  ;;  %v9634_v15 = vld [vmem:[%s12367_s2 + $0x2d0] ss:$8 sps:$4 sm:$0xff]   ;;  %v9639_v16 = vld [vmem:[%s12367_s2 + $0x2e4] ss:$8 sps:$4 sm:$0xff]  }
 0x135   : > { %1826 = vmatpush1.bf16.msra.mxu0 %v9566_v17  ;;  %1879 = vmatpush1.bf16.msra.mxu1 %v9569_v18  ;;  %v9637_v17 = vld [vmem:[%s12367_s2 + $0x2e0] ss:$8 sps:$4 sm:$0xff]   ;;  %v1933_v18 = vlaneseq }
 0x136   : > { %1827 = vmatprep.subr.bf16.mxu0 %v9574_v19  ;;  %1880 = vmatprep.subr.bf16.mxu1 %v9577_v20 }
 0x137   : > { %v11274_v19 = vshrl.u32 %v1933_v18, 7 }
 0x139   : > { %1828 = vmatpush1.bf16.msra.mxu0 %v9572_v22  ;;  %1881 = vmatpush1.bf16.msra.mxu1 %v9575_v23  ;;  %v11277_v20 = vsub.s32 0, %v11274_v19  ;;  %v1943_v21 = vsub.s32 2, %v11274_v19  ;;  %v1931_v22 = vld [vmem:[%s12373_s8] sm:$0xf]  ;;  %v11284_v23 = vsub.s32 1, %v11274_v19  ;;  %v1995_v46 = vadd.s32 8, %v11274_v19 }
 0x13a   : > { %1829 = vmatprep.subr.bf16.mxu0 %v9583_v24  ;;  %1882 = vmatprep.subr.bf16.mxu1 %v9586_v25  ;;  %v1947_v24 = vsub.s32 3, %v11274_v19 }
 0x13b   : > { %v1936_v25 = vrot.slane %v1931_v22, %v11277_v20  ;;  %v1944_v26 = vrot.slane %v1931_v22, %v1943_v21  ;;  %v1940_v27 = vrot.slane %v1931_v22, %v11284_v23 }
 0x13d   : > { %1830 = vmatpush1.bf16.msra.mxu0 %v9581_v28  ;;  %1883 = vmatpush1.bf16.msra.mxu1 %v9584_v29  ;;  %v1948_v28 = vrot.slane %v1931_v22, %v1947_v24 }
 0x13e   : > { %1831 = vmatprep.subr.bf16.mxu0 %v9589_v30  ;;  %1884 = vmatprep.subr.bf16.mxu1 %v9592_v31 }
 0x141   : > { %1832 = vmatpush1.bf16.msra.mxu0 %v9587_v37  ;;  %1885 = vmatpush1.bf16.msra.mxu1 %v9590_v38 }
 0x142   : > { %2691 = vmatprep.subr.bf16.mxu0 %v9597_v53 }
 0x144   : > { %1842 = vmatmul.mubr.bf16.vlgmr.msra.gmra.mrb[0].mxu0 %v1534_v44  ;;  %1895 = vmatmul.mubr.bf16.vlgmr.msra.gmra.mrb[0].mxu1 %v1534_v44 }
 0x145   : > { %8244 = vmatprep.mubr.msk.bf16.mxu0 %vm985_vm0, %v1560_v47  ;;  %8246 = vmatprep.mubr.msk.bf16.mxu1 %vm985_vm0, %v1560_v47  ;;  %vm5471_vm0 = vcmask 1041408  }
 0x146   : > { %2692 = vmatpush1.bf16.msra.mxu0 %v9595_v52 }
 0x147   : > { %2693 = vmatprep.subr.bf16.mxu0 %v9600_v54 }
 0x14a   : > { %2694 = vmatpush1.bf16.msra.mxu0 %v9598_v55 }
 0x14b   : > { %2695 = vmatprep.subr.bf16.mxu0 %v9603_v56 }
 0x14c   : > { %1852 = vmatmul.mubr.bf16.gmra.mrb[4].mxu0 %v1552_v50  ;;  %1905 = vmatmul.mubr.bf16.gmra.mrb[4].mxu1 %v1552_v50 }
 0x14d   : > { %2043 = vmatprep.mubr.bf16.mxu1 %v10828_v51 }
 0x14e   : > { %2696 = vmatpush1.bf16.msra.mxu0 %v9601_v57  ;;  %v1997_v57 = vand.u32 127, %v1933_v18 }
 0x14f   : > { %2697 = vmatprep.subr.bf16.mxu0 %v9606_v58  ;;  %v1998_v58 = vmul.u32 2, %v11274_v19 }
 0x151   : > { %vm2000_vm2 = vcmp.eq.s32.totalorder %v1997_v57, %v1998_v58 }
 0x152   : > { %2698 = vmatpush1.bf16.msra.mxu0 %v9604_v59 }
 0x153   : > { %2699 = vmatprep.subr.bf16.mxu0 %v9609_v60 }
 0x156   : > { %2700 = vmatpush1.bf16.msra.mxu0 %v9607_v61 }
 0x157   : > { %2701 = vmatprep.subr.bf16.mxu0 %v9612_v62 }
 0x15a   : > { %2702 = vmatpush1.bf16.msra.mxu0 %v9610_v63  ;;  %v1999_v63 = vmul.u32 2, %v1995_v46 }
 0x15b   : > { %2703 = vmatprep.subr.bf16.mxu0 %v9615_v0 }
 0x15c   : > { %vm2001_vm3 = vcmp.eq.s32.totalorder %v1997_v57, %v1999_v63 }
 0x15e   : > { %2704 = vmatpush1.bf16.msra.mxu0 %v9613_v1 }
 0x15f   : > { %2705 = vmatprep.subr.bf16.mxu0 %v9618_v2 }
 0x162   : > { %2706 = vmatpush1.bf16.msra.mxu0 %v9616_v3 }
 0x163   : > { %2707 = vmatprep.subr.bf16.mxu0 %v9621_v4 }
 0x166   : > { %2708 = vmatpush1.bf16.msra.mxu0 %v9619_v5 }
 0x167   : > { %2709 = vmatprep.subr.bf16.mxu0 %v9624_v6 }
 0x16a   : > { %2710 = vmatpush1.bf16.msra.mxu0 %v9622_v7 }
 0x16b   : > { %2711 = vmatprep.subr.bf16.mxu0 %v9627_v8 }
 0x16e   : > { %2712 = vmatpush1.bf16.msra.mxu0 %v9625_v9 }
 0x16f   : > { %2713 = vmatprep.subr.bf16.mxu0 %v9630_v10 }
 0x172   : > { %2714 = vmatpush1.bf16.msra.mxu0 %v9628_v11 }
 0x173   : > { %2715 = vmatprep.subr.bf16.mxu0 %v9633_v12 }
 0x176   : > { %2716 = vmatpush1.bf16.msra.mxu0 %v9631_v13 }
 0x177   : > { %2717 = vmatprep.subr.bf16.mxu0 %v9636_v14 }
 0x17a   : > { %2718 = vmatpush1.bf16.msra.mxu0 %v9634_v15 }
 0x17b   : > { %2719 = vmatprep.subr.bf16.mxu0 %v9639_v16 }
 0x17e   : > { %2720 = vmatpush1.bf16.msra.mxu0 %v9637_v17 }
 0x217   : > { %v1843_v29 = vpop.f32.mrb[0].mxu0  ;;  %v1896_v30 = vpop.f32.mrb[0].mxu1 }
 0x218   : > { %v1953_v31 = vadd.f32 %v1936_v25, %v1843_v29  ;;  %v1955_v32 = vadd.f32 %v1944_v26, %v1896_v30  ;;  %v1845_v33 = vpop.f32.mrb[1].mxu0  ;;  %v1898_v34 = vpop.f32.mrb[1].mxu1  ;;  %v10829_v30 = vmov 0.0  }
 0x219   : > { %v1954_v35 = vadd.f32 %v1940_v27, %v1845_v33  ;;  %v1956_v36 = vadd.f32 %v1948_v28, %v1898_v34  ;;  %v1847_v37 = vpop.f32.mrb[2].mxu0  ;;  %v1900_v38 = vpop.f32.mrb[2].mxu1  ;;  %v2102_v33 = vadd.s32 1, %v1999_v63 }
 0x21a   : > { %v1957_v40 = vadd.f32 %v1936_v25, %v1847_v37  ;;  %v1959_v41 = vadd.f32 %v1944_v26, %v1900_v38  ;;  %v1849_v42 = vpop.f32.mrb[3].mxu0  ;;  %v1902_v43 = vpop.f32.mrb[3].mxu1  ;;  %v1969_v45 = vmax.f32 %v1953_v31, 0.0  ;;  %v1971_v47 = vmax.f32 %v1955_v32, 0.0  ;;  %v9642_v37 = vld [vmem:[%s12367_s2 + $0x2f4] ss:$8 sps:$4 sm:$0xff]  }
 0x21b   : > { %v1958_v39 = vadd.f32 %v1940_v27, %v1849_v42  ;;  %v1960_v44 = vadd.f32 %v1948_v28, %v1902_v43  ;;  %v1970_v50 = vmax.f32 %v1954_v35, 0.0  ;;  %v1972_v52 = vmax.f32 %v1956_v36, 0.0  ;;  %v9640_v38 = vld [vmem:[%s12367_s2 + $0x2f0] ss:$8 sps:$4 sm:$0xff]   ;;  %2721 = vmatprep.subr.bf16.mxu0 %v9642_v37  ;;  %v9681_v37 = vld [vmem:[%s12367_s2 + $0x3c4] ss:$8 sps:$4 sm:$0xff]  }
 0x21c   : > { %v1973_v48 = vmax.f32 %v1957_v40, 0.0  ;;  %v1975_v49 = vmax.f32 %v1959_v41, 0.0  ;;  %vm2104_vm6 = vcmp.eq.s32.totalorder %v1997_v57, %v2102_v33  ;;  %2722 = vmatpush1.bf16.msra.mxu0 %v9640_v38  ;;  %v9645_v40 = vld [vmem:[%s12367_s2 + $0x304] ss:$8 sps:$4 sm:$0xff]   ;;  %v9678_v33 = vld [vmem:[%s12367_s2 + $0x3b4] ss:$8 sps:$4 sm:$0xff]  }
 0x21d   : > { %v1974_v53 = vmax.f32 %v1958_v39, 0.0  ;;  %v1976_v54 = vmax.f32 %v1960_v44, 0.0  ;;  %v8252_v35 = vsel %vm2104_vm6, 1.0, %v10829_v30  ;;  %2734 = vmatprep.subr.bf16.mxu0 %v9645_v40  ;;  %vm7942_vm6 = vcmask 73728  }
 0x21e   : > { %v1985_v55 = vpack.c.bf16 %v1973_v48, %v1969_v45  ;;  %v11290_v56 = vpack.c.bf16 %v1975_v49, %v1971_v47  ;;  %v9643_v45 = vld [vmem:[%s12367_s2 + $0x300] ss:$8 sps:$4 sm:$0xff]   ;;  %v9648_v47 = vld [vmem:[%s12367_s2 + $0x314] ss:$8 sps:$4 sm:$0xff]   ;;  %v9646_v48 = vld [vmem:[%s12367_s2 + $0x310] ss:$8 sps:$4 sm:$0xff]  }
 0x21f   : > { %v1986_v59 = vpack.c.bf16 %v1974_v53, %v1970_v50  ;;  %v1988_v60 = vpack.c.bf16 %v1976_v54, %v1972_v52  ;;  %v1853_v61 = vpop.f32.mrb[4].mxu0  ;;  %v1906_v62 = vpop.f32.mrb[4].mxu1  ;;  %v9651_v50 = vld [vmem:[%s12367_s2 + $0x324] ss:$8 sps:$4 sm:$0xff]  }
 0x220   : > { %v1961_v0 = vadd.f32 %v1936_v25, %v1853_v61  ;;  %v1963_v1 = vadd.f32 %v1944_v26, %v1906_v62  ;;  %v1855_v2 = vpop.f32.mrb[5].mxu0  ;;  %v1908_v3 = vpop.f32.mrb[5].mxu1  ;;  %v9657_v61 = vld [vmem:[%s12367_s2 + $0x344] ss:$8 sps:$4 sm:$0xff]  }
 0x221   : > { %v1962_v4 = vadd.f32 %v1940_v27, %v1855_v2  ;;  %v1964_v5 = vadd.f32 %v1948_v28, %v1908_v3  ;;  %v1857_v6 = vpop.f32.mrb[6].mxu0  ;;  %v1910_v7 = vpop.f32.mrb[6].mxu1  ;;  %2011 = vmatprep.subr.bf16.mxu1 %v1986_v59  ;;  %v9655_v2 = vld [vmem:[%s12367_s2 + $0x340] ss:$8 sps:$4 sm:$0xff]  }
 0x222   : > { %v1979_v8 = vmax.f32 %v1963_v1, 0.0  ;;  %v1965_v9 = vadd.f32 %v1936_v25, %v1857_v6  ;;  %v1967_v10 = vadd.f32 %v1944_v26, %v1910_v7  ;;  %v1859_v11 = vpop.f32.mrb[7].mxu0  ;;  %v1912_v12 = vpop.f32.mrb[7].mxu1  ;;  %2012 = vmatpush1.bf16.msra.mxu1 %v1985_v55  ;;  %v1977_v15 = vmax.f32 %v1961_v0, 0.0  ;;  %v9658_v7 = vld [vmem:[%s12367_s2 + $0x350] ss:$8 sps:$4 sm:$0xff]  }
 0x223   : > { %v1966_v13 = vadd.f32 %v1940_v27, %v1859_v11  ;;  %v1968_v14 = vadd.f32 %v1948_v28, %v1912_v12  ;;  %v1978_v18 = vmax.f32 %v1962_v4, 0.0  ;;  %v1980_v19 = vmax.f32 %v1964_v5, 0.0  ;;  %v9660_v4 = vld [vmem:[%s12367_s2 + $0x354] ss:$8 sps:$4 sm:$0xff]  }
 0x224   : > { %v1981_v16 = vmax.f32 %v1965_v9, 0.0  ;;  %v1983_v17 = vmax.f32 %v1967_v10, 0.0  ;;  %v11294_v25 = vsel %vm2000_vm2, 1.0, %v10829_v30  ;;  %v8248_v26 = vsel %vm2001_vm3, 1.0, %v10829_v30  ;;  %v9663_v9 = vld [vmem:[%s12367_s2 + $0x364] ss:$8 sps:$4 sm:$0xff]  }
 0x225   : > { %v1982_v21 = vmax.f32 %v1966_v13, 0.0  ;;  %v1984_v22 = vmax.f32 %v1968_v14, 0.0  ;;  %v2006_v27 = vpack.c.bf16 %v8248_v26, %v11294_v25  ;;  %v2101_v28 = vadd.s32 1, %v1998_v58  ;;  %v9654_v58 = vld [vmem:[%s12367_s2 + $0x334] ss:$8 sps:$4 sm:$0xff]  }
 0x226   : > { %v1989_v24 = vpack.c.bf16 %v1981_v16, %v1977_v15  ;;  %v1991_v29 = vpack.c.bf16 %v1983_v17, %v1979_v8  ;;  %v9661_v13 = vld [vmem:[%s12367_s2 + $0x360] ss:$8 sps:$4 sm:$0xff]   ;;  %v9666_v15 = vld [vmem:[%s12367_s2 + $0x374] ss:$8 sps:$4 sm:$0xff]   ;;  %vm6234_vm2 = vsmask.f32 2304 }
 0x227   : > { %v1990_v31 = vpack.c.bf16 %v1982_v21, %v1978_v18  ;;  %v1992_v32 = vpack.c.bf16 %v1984_v22, %v1980_v19  ;;  %vm2103_vm5 = vcmp.eq.s32.totalorder %v1997_v57, %v2101_v28  ;;  %v9664_v21 = vld [vmem:[%s12367_s2 + $0x370] ss:$8 sps:$4 sm:$0xff]   ;;  %v9669_v22 = vld [vmem:[%s12367_s2 + $0x384] ss:$8 sps:$4 sm:$0xff]   ;;  %v9667_v26 = vld [vmem:[%s12367_s2 + $0x380] ss:$8 sps:$4 sm:$0xff]  }
 0x228   : > { %v11304_v34 = vsel %vm2103_vm5, 1.0, %v10829_v30  ;;  %v9673_v28 = vld [vmem:[%s12367_s2 + $0x3a0] ss:$8 sps:$4 sm:$0xff]   ;;  %v10572_v10 = vld [vmem:[#allocation10 + $0x254] ss:$8 sps:$4 sm:$0xff]   ;;  %vm10831_vm5 = vmmov 0  }
 0x229   : > { %2013 = vmatprep.subr.bf16.mxu1 %v1990_v31  ;;  %v2109_v36 = vpack.c.bf16 %v8252_v35, %v11304_v34  ;;  %v9676_v35 = vld [vmem:[%s12367_s2 + $0x3b0] ss:$8 sps:$4 sm:$0xff]  }
 0x22a   : > { %2014 = vmatpush1.bf16.msra.mxu1 %v1989_v24 }
 0x22b   : > { %2054 = vmatprep.subr.bf16.mxu1 %v1988_v60 }
 0x22d   : > { %8249 = vmatmul.mubr.msk.bf16.vlgmr.msra.gmra.mrb[8].mxu1 %vm2007_vm4, %v2006_v27 }
 0x22e   : > { %2055 = vmatpush1.bf16.msra.mxu1 %v11290_v56  ;;  %2086 = vmatprep.mubr.bf16.mxu1 %v10828_v51 }
 0x22f   : > { %2056 = vmatprep.subr.bf16.mxu1 %v1992_v32 }
 0x232   : > { %2057 = vmatpush1.bf16.msra.mxu1 %v1991_v29 }
 0x233   : > { %2113 = vmatprep.subr.bf16.mxu1 %v1986_v59  ;;  %v9652_v59 = vld [vmem:[%s12367_s2 + $0x330] ss:$8 sps:$4 sm:$0xff]  }
 0x235   : > { %8250 = vmatmul.mubr.msk.bf16.vlgmr.msra.gmra.mrb[12].mxu1 %vm2007_vm4, %v2006_v27  ;;  %v9675_v27 = vld [vmem:[%s12367_s2 + $0x3a4] ss:$8 sps:$4 sm:$0xff]  }
 0x236   : > { %2114 = vmatpush1.bf16.msra.mxu1 %v1985_v55  ;;  %2145 = vmatprep.mubr.bf16.mxu1 %v10828_v51 }
 0x237   : > { %2115 = vmatprep.subr.bf16.mxu1 %v1990_v31  ;;  %v9672_v31 = vld [vmem:[%s12367_s2 + $0x394] ss:$8 sps:$4 sm:$0xff]  }
 0x23a   : > { %2116 = vmatpush1.bf16.msra.mxu1 %v1989_v24 }
 0x23b   : > { %2156 = vmatprep.subr.bf16.mxu1 %v1988_v60 }
 0x23d   : > { %8253 = vmatmul.mubr.msk.bf16.vlgmr.msra.gmra.mrb[16].mxu1 %vm2007_vm4, %v2109_v36 }
 0x23e   : > { %2157 = vmatpush1.bf16.msra.mxu1 %v11290_v56  ;;  %2188 = vmatprep.mubr.bf16.mxu1 %v10828_v51  ;;  %v9649_v56 = vld [vmem:[%s12367_s2 + $0x320] ss:$8 sps:$4 sm:$0xff]  }
 0x23f   : > { %2158 = vmatprep.subr.bf16.mxu1 %v1992_v32  ;;  %v9670_v32 = vld [vmem:[%s12367_s2 + $0x390] ss:$8 sps:$4 sm:$0xff]  }
 0x242   : > { %2159 = vmatpush1.bf16.msra.mxu1 %v1991_v29 }
 0x245   : > { %8254 = vmatmul.mubr.msk.bf16.vlgmr.msra.gmra.mrb[20].mxu1 %vm2007_vm4, %v2109_v36  ;;  %vm6981_vm4 = vcmask 31744  }
 0x246   : > { %3769 = vmatprep.mubr.bf16.mxu1 %v10828_v51 }
 0x300   : > { %v2045_v41 = vpop.f32.mrb[8].mxu1 }
 0x301   : > { %v2047_v42 = vpop.f32.mrb[9].mxu1 }
 0x302   : > { %v2049_v43 = vpop.f32.mrb[10].mxu1 }
 0x303   : > { %v2097_v39 = vpack.c.bf16 %v2049_v43, %v2045_v41  ;;  %v2051_v44 = vpop.f32.mrb[11].mxu1 }
 0x304   : > { %v2098_v46 = vpack.c.bf16 %v2051_v44, %v2047_v42  ;;  %v9679_v42 = vld [vmem:[%s12367_s2 + $0x3c0] ss:$8 sps:$4 sm:$0xff]  }
 0x306   : > { %2723 = vmatprep.mubr.bf16.mxu0 %v2098_v46  ;;  %v9682_v46 = vld [vmem:[%s12367_s2 + $0x3d0] ss:$8 sps:$4 sm:$0xff]  }
 0x307   : > { %2724 = vmatmul.mubr.bf16.vlgmr.msra.gmra.mrb[8].mxu0 %v2097_v39  ;;  %v9684_v39 = vld [vmem:[%s12367_s2 + $0x3d4] ss:$8 sps:$4 sm:$0xff]  }
 0x308   : > { %2735 = vmatpush1.bf16.msra.mxu0 %v9643_v45  ;;  %v11331_v49 = vpop.f32.mrb[12].mxu1  ;;  %v9687_v45 = vld [vmem:[%s12367_s2 + $0x3e4] ss:$8 sps:$4 sm:$0xff]  }
 0x309   : > { %2736 = vmatprep.subr.bf16.mxu0 %v9648_v47  ;;  %v2090_v52 = vpop.f32.mrb[13].mxu1  ;;  %v9685_v47 = vld [vmem:[%s12367_s2 + $0x3e0] ss:$8 sps:$4 sm:$0xff]  }
 0x30a   : > { %v11336_v53 = vpop.f32.mrb[14].mxu1 }
 0x30b   : > { %v2099_v54 = vpack.c.bf16 %v11336_v53, %v11331_v49  ;;  %v2094_v55 = vpop.f32.mrb[15].mxu1  ;;  %v9702_v49 = vld [vmem:[%s12367_s2 + $0x34] ss:$8 sps:$4 sm:$0xff]   ;;  %v9700_v53 = vld [vmem:[%s12367_s2 + $0x30] ss:$8 sps:$4 sm:$0xff]  }
 0x30c   : > { %2737 = vmatpush1.bf16.msra.mxu0 %v9646_v48  ;;  %v2100_v57 = vpack.c.bf16 %v2094_v55, %v2090_v52  ;;  %v9690_v48 = vld [vmem:[%s12367_s2 + $0x3f4] ss:$8 sps:$4 sm:$0xff]   ;;  %v9693_v52 = vld [vmem:[%s12367_s2 + $0x4] ss:$8 sps:$4 sm:$0xff]   ;;  %v9691_v55 = vld [vmem:[%s12367_s2] ss:$8 sps:$4 sm:$0xff]  }
 0x30d   : > { %2738 = vmatprep.subr.bf16.mxu0 %v9651_v50  ;;  %v9688_v50 = vld [vmem:[%s12367_s2 + $0x3f0] ss:$8 sps:$4 sm:$0xff]  }
 0x30e   : > { %2766 = vmatprep.mubr.bf16.mxu0 %v2100_v57  ;;  %v9694_v57 = vld [vmem:[%s12367_s2 + $0x10] ss:$8 sps:$4 sm:$0xff]  }
 0x310   : > { %2739 = vmatpush1.bf16.msra.mxu0 %v9649_v56  ;;  %v2147_v60 = vpop.f32.mrb[16].mxu1  ;;  %v9696_v56 = vld [vmem:[%s12367_s2 + $0x14] ss:$8 sps:$4 sm:$0xff]  }
 0x311   : > { %2740 = vmatprep.subr.bf16.mxu0 %v9654_v58  ;;  %v2149_v62 = vpop.f32.mrb[17].mxu1  ;;  %v9699_v58 = vld [vmem:[%s12367_s2 + $0x24] ss:$8 sps:$4 sm:$0xff]  }
 0x312   : > { %v2151_v63 = vpop.f32.mrb[18].mxu1 }
 0x313   : > { %v11352_v0 = vpack.c.bf16 %v2151_v63, %v2147_v60  ;;  %v2153_v1 = vpop.f32.mrb[19].mxu1  ;;  %v9703_v60 = vld [vmem:[%s12367_s2 + $0x40] ss:$8 sps:$4 sm:$0xff]   ;;  %v9711_v63 = vld [vmem:[%s12367_s2 + $0x64] ss:$8 sps:$4 sm:$0xff]  }
 0x314   : > { %2741 = vmatpush1.bf16.msra.mxu0 %v9652_v59  ;;  %v2200_v3 = vpack.c.bf16 %v2153_v1, %v2149_v62  ;;  %v9697_v59 = vld [vmem:[%s12367_s2 + $0x20] ss:$8 sps:$4 sm:$0xff]   ;;  %v9706_v62 = vld [vmem:[%s12367_s2 + $0x50] ss:$8 sps:$4 sm:$0xff]  }
 0x315   : > { %2742 = vmatprep.subr.bf16.mxu0 %v9657_v61  ;;  %v9708_v61 = vld [vmem:[%s12367_s2 + $0x54] ss:$8 sps:$4 sm:$0xff]   ;;  %v9709_v1 = vld [vmem:[%s12367_s2 + $0x60] ss:$8 sps:$4 sm:$0xff]  }
 0x316   : > { %v2211_v5 = vshrl.u32 %v2200_v3, 16  ;;  %v2214_v6 = vshll.u32 %v2200_v3, 16  ;;  %v9712_v3 = vld [vmem:[%s12367_s2 + $0x70] ss:$8 sps:$4 sm:$0xff]  }
 0x318   : > { %2743 = vmatpush1.bf16.msra.mxu0 %v9655_v2  ;;  %v2213_v8 = vrot.slane %v2211_v5, 7  ;;  %v2190_v36 = vpop.f32.mrb[20].mxu1  ;;  %v9714_v2 = vld [vmem:[%s12367_s2 + $0x74] ss:$8 sps:$4 sm:$0xff]   ;;  %v9715_v5 = vld [vmem:[%s12367_s2 + $0x80] ss:$8 sps:$4 sm:$0xff]  }
 0x319   : > { %2744 = vmatprep.subr.bf16.mxu0 %v9660_v4  ;;  %v2192_v38 = vpop.f32.mrb[21].mxu1  ;;  %v9717_v4 = vld [vmem:[%s12367_s2 + $0x84] ss:$8 sps:$4 sm:$0xff]  }
 0x31a   : > { %v2216_v11 = vor.u32 %v2214_v6, %v2213_v8  ;;  %v3268_v12 = vshll.u32 %v2213_v8, 16  ;;  %v2194_v40 = vpop.f32.mrb[22].mxu1  ;;  %v9720_v6 = vld [vmem:[%s12367_s2 + $0x94] ss:$8 sps:$4 sm:$0xff]   ;;  %v9723_v8 = vld [vmem:[%s12367_s2 + $0xa4] ss:$8 sps:$4 sm:$0xff]  }
 0x31b   : > { %v11412_v41 = vpack.c.bf16 %v2194_v40, %v2190_v36  ;;  %v2196_v43 = vpop.f32.mrb[23].mxu1  ;;  %v9744_v36 = vld [vmem:[%s12367_s2 + $0x114] ss:$8 sps:$4 sm:$0xff]   ;;  %v9742_v40 = vld [vmem:[%s12367_s2 + $0x110] ss:$8 sps:$4 sm:$0xff]  }
 0x31c   : > { %2745 = vmatpush1.bf16.msra.mxu0 %v9658_v7  ;;  %v2239_v14 = vsel %vm11367_vm9, 0, %v2216_v11  ;;  %v3270_v18 = vrot.slane %v3268_v12, 1  ;;  %v11420_v44 = vpack.c.bf16 %v2196_v43, %v2192_v38  ;;  %v9718_v7 = vld [vmem:[%s12367_s2 + $0x90] ss:$8 sps:$4 sm:$0xff]   ;;  %v9726_v11 = vld [vmem:[%s12367_s2 + $0xb4] ss:$8 sps:$4 sm:$0xff]  }
 0x31d   : > { %2746 = vmatprep.subr.bf16.mxu0 %v9663_v9  ;;  %v3261_v16 = vshrl.u32 %v2239_v14, 16  ;;  %v3263_v17 = vshll.u32 %v2239_v14, 16  ;;  %v9721_v9 = vld [vmem:[%s12367_s2 + $0xa0] ss:$8 sps:$4 sm:$0xff]   ;;  %v9724_v12 = vld [vmem:[%s12367_s2 + $0xb0] ss:$8 sps:$4 sm:$0xff]  }
 0x31e   : > { %v9745_v43 = vld [vmem:[%s12367_s2 + $0x120] ss:$8 sps:$4 sm:$0xff]  }
 0x31f   : > { %v3265_v19 = vrot.slane %v3263_v17, 1  ;;  %v9735_v17 = vld [vmem:[%s12367_s2 + $0xe4] ss:$8 sps:$4 sm:$0xff]  }
 0x320   : > { %2747 = vmatpush1.bf16.msra.mxu0 %v9661_v13  ;;  %v9729_v13 = vld [vmem:[%s12367_s2 + $0xc4] ss:$8 sps:$4 sm:$0xff]  }
 0x321   : > { %2748 = vmatprep.subr.bf16.mxu0 %v9666_v15  ;;  %v3266_v24 = vor.u32 %v3265_v19, %v3261_v16  ;;  %v9732_v15 = vld [vmem:[%s12367_s2 + $0xd4] ss:$8 sps:$4 sm:$0xff]   ;;  %v9730_v16 = vld [vmem:[%s12367_s2 + $0xd0] ss:$8 sps:$4 sm:$0xff]   ;;  %v2225_v19 = vshrl.u32 %v11420_v44, 16 }
 0x323   : > { %v11386_v29 = vsel %vm1522_vm1, %v3266_v24, %v3270_v18  ;;  %v2204_v18 = vshrl.u32 %v11352_v0, 16 }
 0x324   : > { %2749 = vmatpush1.bf16.msra.mxu0 %v9664_v21  ;;  %v9733_v21 = vld [vmem:[%s12367_s2 + $0xe0] ss:$8 sps:$4 sm:$0xff]  }
 0x325   : > { %2750 = vmatprep.subr.bf16.mxu0 %v9669_v22  ;;  %v9738_v22 = vld [vmem:[%s12367_s2 + $0xf4] ss:$8 sps:$4 sm:$0xff]   ;;  %v11535_v24 = vrot.slane %v2204_v18, 7 }
 0x326   : > { %v9798_v18 = vld [vmem:[%s12367_s2 + $0x434] ss:$8 sps:$4 sm:$0xff]  }
 0x328   : > { %2751 = vmatpush1.bf16.msra.mxu0 %v9667_v26  ;;  %v2207_v26 = vshll.u32 %v11352_v0, 16  ;;  %v9739_v0 = vld [vmem:[%s12367_s2 + $0x100] ss:$8 sps:$4 sm:$0xff]  }
 0x329   : > { %2752 = vmatprep.subr.bf16.mxu0 %v9672_v31  ;;  %v11538_v31 = vrot.slane %v2225_v19, 7  ;;  %v9801_v19 = vld [vmem:[%s12367_s2 + $0x444] ss:$8 sps:$4 sm:$0xff]  }
 0x32c   : > { %2753 = vmatpush1.bf16.msra.mxu0 %v9670_v32  ;;  %v2228_v32 = vshll.u32 %v11420_v44, 16  ;;  %v9748_v44 = vld [vmem:[%s12367_s2 + $0x130] ss:$8 sps:$4 sm:$0xff]  }
 0x32d   : > { %2754 = vmatprep.subr.bf16.mxu0 %v9675_v27  ;;  %v9736_v27 = vld [vmem:[%s12367_s2 + $0xf0] ss:$8 sps:$4 sm:$0xff]  }
 0x330   : > { %2755 = vmatpush1.bf16.msra.mxu0 %v9673_v28  ;;  %v9741_v28 = vld [vmem:[%s12367_s2 + $0x104] ss:$8 sps:$4 sm:$0xff]  }
 0x331   : > { %2756 = vmatprep.subr.bf16.mxu0 %v9678_v33  ;;  %v2209_v33 = vor.u32 %v2207_v26, %v11535_v24  ;;  %v9802_v26 = vld [vmem:[%s12367_s2 + $0x450] ss:$8 sps:$4 sm:$0xff]  }
 0x334   : > { %2757 = vmatpush1.bf16.msra.mxu0 %v9676_v35  ;;  %v2230_v35 = vor.u32 %v2228_v32, %v11538_v31  ;;  %v9807_v32 = vld [vmem:[%s12367_s2 + $0x464] ss:$8 sps:$4 sm:$0xff]  }
 0x335   : > { %2758 = vmatprep.subr.bf16.mxu0 %v9681_v37  ;;  %v11557_v37 = vsel %vm11367_vm9, 0, %v2209_v33  ;;  %v9808_v33 = vld [vmem:[%s12367_s2 + $0x470] ss:$8 sps:$4 sm:$0xff]  }
 0x336   : > { %v11562_v38 = vsel %vm11367_vm9, 0, %v2230_v35  ;;  %v9813_v35 = vld [vmem:[%s12367_s2 + $0x484] ss:$8 sps:$4 sm:$0xff]  }
 0x338   : > { %2759 = vmatpush1.bf16.msra.mxu0 %v9679_v42  ;;  %v9747_v42 = vld [vmem:[%s12367_s2 + $0x124] ss:$8 sps:$4 sm:$0xff]  }
 0x339   : > { %2760 = vmatprep.subr.bf16.mxu0 %v9684_v39  ;;  %v9750_v39 = vld [vmem:[%s12367_s2 + $0x134] ss:$8 sps:$4 sm:$0xff]  }
 0x33c   : > { %2761 = vmatpush1.bf16.msra.mxu0 %v9682_v46  ;;  %v9753_v46 = vld [vmem:[%s12367_s2 + $0x144] ss:$8 sps:$4 sm:$0xff]  }
 0x33d   : > { %2762 = vmatprep.subr.bf16.mxu0 %v9687_v45  ;;  %v9751_v45 = vld [vmem:[%s12367_s2 + $0x140] ss:$8 sps:$4 sm:$0xff]  }
 0x340   : > { %2763 = vmatpush1.bf16.msra.mxu0 %v9685_v47  ;;  %v9756_v47 = vld [vmem:[%s12367_s2 + $0x154] ss:$8 sps:$4 sm:$0xff]  }
 0x341   : > { %2764 = vmatprep.subr.bf16.mxu0 %v9690_v48  ;;  %v9754_v48 = vld [vmem:[%s12367_s2 + $0x150] ss:$8 sps:$4 sm:$0xff]  }
 0x344   : > { %2765 = vmatpush1.bf16.msra.mxu0 %v9688_v50  ;;  %v9759_v50 = vld [vmem:[%s12367_s2 + $0x164] ss:$8 sps:$4 sm:$0xff]  }
 0x345   : > { %3097 = vmatprep.subr.bf16.mxu0 %v9693_v52  ;;  %v9757_v52 = vld [vmem:[%s12367_s2 + $0x160] ss:$8 sps:$4 sm:$0xff]  }
 0x347   : > { %2767 = vmatmul.mubr.bf16.vlgmr.msra.gmra.mrb[8].mxu0 %v2099_v54  ;;  %v9705_v54 = vld [vmem:[%s12367_s2 + $0x44] ss:$8 sps:$4 sm:$0xff]  }
 0x348   : > { %3098 = vmatpush1.bf16.msra.mxu0 %v9691_v55  ;;  %3129 = vmatprep.mubr.bf16.mxu0 %v2239_v14  ;;  %v9727_v14 = vld [vmem:[%s12367_s2 + $0xc0] ss:$8 sps:$4 sm:$0xff]   ;;  %v9762_v55 = vld [vmem:[%s12367_s2 + $0x174] ss:$8 sps:$4 sm:$0xff]  }
 0x349   : > { %3099 = vmatprep.subr.bf16.mxu0 %v9696_v56  ;;  %v9760_v56 = vld [vmem:[%s12367_s2 + $0x170] ss:$8 sps:$4 sm:$0xff]  }
 0x34c   : > { %3100 = vmatpush1.bf16.msra.mxu0 %v9694_v57  ;;  %v9765_v57 = vld [vmem:[%s12367_s2 + $0x184] ss:$8 sps:$4 sm:$0xff]  }
 0x34d   : > { %3101 = vmatprep.subr.bf16.mxu0 %v9699_v58  ;;  %v9763_v58 = vld [vmem:[%s12367_s2 + $0x180] ss:$8 sps:$4 sm:$0xff]  }
 0x350   : > { %3102 = vmatpush1.bf16.msra.mxu0 %v9697_v59  ;;  %v9768_v59 = vld [vmem:[%s12367_s2 + $0x194] ss:$8 sps:$4 sm:$0xff]  }
 0x351   : > { %3103 = vmatprep.subr.bf16.mxu0 %v9702_v49  ;;  %v9766_v49 = vld [vmem:[%s12367_s2 + $0x190] ss:$8 sps:$4 sm:$0xff]  }
 0x354   : > { %3104 = vmatpush1.bf16.msra.mxu0 %v9700_v53  ;;  %v9771_v53 = vld [vmem:[%s12367_s2 + $0x1a4] ss:$8 sps:$4 sm:$0xff]  }
 0x355   : > { %3105 = vmatprep.subr.bf16.mxu0 %v9705_v54  ;;  %v9769_v54 = vld [vmem:[%s12367_s2 + $0x1a0] ss:$8 sps:$4 sm:$0xff]  }
 0x358   : > { %3106 = vmatpush1.bf16.msra.mxu0 %v9703_v60  ;;  %v9774_v60 = vld [vmem:[%s12367_s2 + $0x1b4] ss:$8 sps:$4 sm:$0xff]  }
 0x359   : > { %3107 = vmatprep.subr.bf16.mxu0 %v9708_v61  ;;  %v9772_v61 = vld [vmem:[%s12367_s2 + $0x1b0] ss:$8 sps:$4 sm:$0xff]  }
 0x35c   : > { %3108 = vmatpush1.bf16.msra.mxu0 %v9706_v62  ;;  %v9777_v62 = vld [vmem:[%s12367_s2 + $0x1c4] ss:$8 sps:$4 sm:$0xff]  }
 0x35d   : > { %3109 = vmatprep.subr.bf16.mxu0 %v9711_v63  ;;  %v9775_v63 = vld [vmem:[%s12367_s2 + $0x1c0] ss:$8 sps:$4 sm:$0xff]  }
 0x360   : > { %3110 = vmatpush1.bf16.msra.mxu0 %v9709_v1  ;;  %v9780_v1 = vld [vmem:[%s12367_s2 + $0x1d4] ss:$8 sps:$4 sm:$0xff]  }
 0x361   : > { %3111 = vmatprep.subr.bf16.mxu0 %v9714_v2  ;;  %v9778_v2 = vld [vmem:[%s12367_s2 + $0x1d0] ss:$8 sps:$4 sm:$0xff]  }
 0x364   : > { %3112 = vmatpush1.bf16.msra.mxu0 %v9712_v3  ;;  %v9783_v3 = vld [vmem:[%s12367_s2 + $0x1e4] ss:$8 sps:$4 sm:$0xff]  }
 0x365   : > { %3113 = vmatprep.subr.bf16.mxu0 %v9717_v4  ;;  %v2218_v4 = vshrl.u32 %v11412_v41, 16 }
 0x368   : > { %3114 = vmatpush1.bf16.msra.mxu0 %v9715_v5  ;;  %v9781_v5 = vld [vmem:[%s12367_s2 + $0x1e0] ss:$8 sps:$4 sm:$0xff]  }
 0x369   : > { %3115 = vmatprep.subr.bf16.mxu0 %v9720_v6  ;;  %v9786_v6 = vld [vmem:[%s12367_s2 + $0x1f4] ss:$8 sps:$4 sm:$0xff]  }
 0x36c   : > { %3116 = vmatpush1.bf16.msra.mxu0 %v9718_v7  ;;  %v11650_v7 = vrot.slane %v2218_v4, 7  ;;  %v9838_v4 = vld [vmem:[%s12367_s2 + $0x510] ss:$8 sps:$4 sm:$0xff]  }
 0x36d   : > { %3117 = vmatprep.subr.bf16.mxu0 %v9723_v8  ;;  %v2221_v8 = vshll.u32 %v11412_v41, 16  ;;  %v9792_v41 = vld [vmem:[%s12367_s2 + $0x414] ss:$8 sps:$4 sm:$0xff]  }
 0x370   : > { %3118 = vmatpush1.bf16.msra.mxu0 %v9721_v9  ;;  %v9784_v9 = vld [vmem:[%s12367_s2 + $0x1f0] ss:$8 sps:$4 sm:$0xff]  }
 0x371   : > { %3119 = vmatprep.subr.bf16.mxu0 %v9726_v11  ;;  %v9789_v11 = vld [vmem:[%s12367_s2 + $0x404] ss:$8 sps:$4 sm:$0xff]  }
 0x374   : > { %3120 = vmatpush1.bf16.msra.mxu0 %v9724_v12  ;;  %v2223_v12 = vor.u32 %v2221_v8, %v11650_v7  ;;  %v9846_v8 = vld [vmem:[%s12367_s2 + $0x534] ss:$8 sps:$4 sm:$0xff]  }
 0x375   : > { %3121 = vmatprep.subr.bf16.mxu0 %v9729_v13  ;;  %v9787_v13 = vld [vmem:[%s12367_s2 + $0x400] ss:$8 sps:$4 sm:$0xff]  }
 0x378   : > { %3122 = vmatpush1.bf16.msra.mxu0 %v9727_v14  ;;  %v11668_v14 = vsel %vm11367_vm9, 0, %v2223_v12  ;;  %v9847_v12 = vld [vmem:[%s12367_s2 + $0x540] ss:$8 sps:$4 sm:$0xff]  }
 0x379   : > { %3123 = vmatprep.subr.bf16.mxu0 %v9732_v15  ;;  %v9790_v15 = vld [vmem:[%s12367_s2 + $0x410] ss:$8 sps:$4 sm:$0xff]  }
 0x37c   : > { %3124 = vmatpush1.bf16.msra.mxu0 %v9730_v16  ;;  %v9795_v16 = vld [vmem:[%s12367_s2 + $0x424] ss:$8 sps:$4 sm:$0xff]  }
 0x37d   : > { %3125 = vmatprep.subr.bf16.mxu0 %v9735_v17  ;;  %v9793_v17 = vld [vmem:[%s12367_s2 + $0x420] ss:$8 sps:$4 sm:$0xff]  }
 0x380   : > { %3126 = vmatpush1.bf16.msra.mxu0 %v9733_v21  ;;  %v9799_v21 = vld [vmem:[%s12367_s2 + $0x440] ss:$8 sps:$4 sm:$0xff]  }
 0x381   : > { %3127 = vmatprep.subr.bf16.mxu0 %v9738_v22  ;;  %v9804_v22 = vld [vmem:[%s12367_s2 + $0x454] ss:$8 sps:$4 sm:$0xff]  }
 0x384   : > { %3128 = vmatpush1.bf16.msra.mxu0 %v9736_v27  ;;  %v9805_v27 = vld [vmem:[%s12367_s2 + $0x460] ss:$8 sps:$4 sm:$0xff]  }
 0x385   : > { %3140 = vmatprep.subr.bf16.mxu0 %v9741_v28  ;;  %v9810_v28 = vld [vmem:[%s12367_s2 + $0x474] ss:$8 sps:$4 sm:$0xff]  }
 0x387   : > { %3130 = vmatmul.mubr.bf16.vlgmr.msra.gmra.mrb[8].mxu0 %v11557_v37 }
 0x388   : > { %3141 = vmatpush1.bf16.msra.mxu0 %v9739_v0  ;;  %3172 = vmatprep.mubr.bf16.mxu0 %v11562_v38  ;;  %v9811_v0 = vld [vmem:[%s12367_s2 + $0x480] ss:$8 sps:$4 sm:$0xff]  }
 0x389   : > { %3142 = vmatprep.subr.bf16.mxu0 %v9744_v36  ;;  %v9816_v36 = vld [vmem:[%s12367_s2 + $0x494] ss:$8 sps:$4 sm:$0xff]  }
 0x38c   : > { %3143 = vmatpush1.bf16.msra.mxu0 %v9742_v40  ;;  %v9814_v40 = vld [vmem:[%s12367_s2 + $0x490] ss:$8 sps:$4 sm:$0xff]  }
 0x38d   : > { %3144 = vmatprep.subr.bf16.mxu0 %v9747_v42  ;;  %v9819_v42 = vld [vmem:[%s12367_s2 + $0x4a4] ss:$8 sps:$4 sm:$0xff]  }
 0x390   : > { %3145 = vmatpush1.bf16.msra.mxu0 %v9745_v43  ;;  %v9817_v43 = vld [vmem:[%s12367_s2 + $0x4a0] ss:$8 sps:$4 sm:$0xff]  }
 0x391   : > { %3146 = vmatprep.subr.bf16.mxu0 %v9750_v39  ;;  %v9822_v39 = vld [vmem:[%s12367_s2 + $0x4b4] ss:$8 sps:$4 sm:$0xff]  }
 0x394   : > { %3147 = vmatpush1.bf16.msra.mxu0 %v9748_v44  ;;  %v9820_v44 = vld [vmem:[%s12367_s2 + $0x4b0] ss:$8 sps:$4 sm:$0xff]  }
 0x395   : > { %3148 = vmatprep.subr.bf16.mxu0 %v9753_v46  ;;  %v9825_v46 = vld [vmem:[%s12367_s2 + $0x4c4] ss:$8 sps:$4 sm:$0xff]  }
 0x398   : > { %3149 = vmatpush1.bf16.msra.mxu0 %v9751_v45  ;;  %v9823_v45 = vld [vmem:[%s12367_s2 + $0x4c0] ss:$8 sps:$4 sm:$0xff]  }
 0x399   : > { %3150 = vmatprep.subr.bf16.mxu0 %v9756_v47  ;;  %v9828_v47 = vld [vmem:[%s12367_s2 + $0x4d4] ss:$8 sps:$4 sm:$0xff]  }
 0x39c   : > { %3151 = vmatpush1.bf16.msra.mxu0 %v9754_v48  ;;  %v9826_v48 = vld [vmem:[%s12367_s2 + $0x4d0] ss:$8 sps:$4 sm:$0xff]  }
 0x39d   : > { %3152 = vmatprep.subr.bf16.mxu0 %v9759_v50  ;;  %v9831_v50 = vld [vmem:[%s12367_s2 + $0x4e4] ss:$8 sps:$4 sm:$0xff]  }
 0x3a0   : > { %3153 = vmatpush1.bf16.msra.mxu0 %v9757_v52  ;;  %v3251_v52 = vshll.u32 %v11557_v37, 16 }
 0x3a1   : > { %3154 = vmatprep.subr.bf16.mxu0 %v9762_v55  ;;  %v3287_v55 = vshll.u32 %v11562_v38, 16 }
 0x3a4   : > { %3155 = vmatpush1.bf16.msra.mxu0 %v9760_v56  ;;  %v9829_v56 = vld [vmem:[%s12367_s2 + $0x4e0] ss:$8 sps:$4 sm:$0xff]  }
 0x3a5   : > { %3156 = vmatprep.subr.bf16.mxu0 %v9765_v57  ;;  %v9834_v57 = vld [vmem:[%s12367_s2 + $0x4f4] ss:$8 sps:$4 sm:$0xff]  }
 0x3a8   : > { %3157 = vmatpush1.bf16.msra.mxu0 %v9763_v58  ;;  %v3256_v58 = vshll.u32 %v11535_v24, 16 }
 0x3a9   : > { %3158 = vmatprep.subr.bf16.mxu0 %v9768_v59  ;;  %v3249_v59 = vshrl.u32 %v11557_v37, 16 }
 0x3ac   : > { %3159 = vmatpush1.bf16.msra.mxu0 %v9766_v49  ;;  %v3253_v49 = vrot.slane %v3251_v52, 1 }
 0x3ad   : > { %3160 = vmatprep.subr.bf16.mxu0 %v9771_v53  ;;  %v3292_v53 = vshll.u32 %v11538_v31, 16  ;;  %v9835_v31 = vld [vmem:[%s12367_s2 + $0x500] ss:$8 sps:$4 sm:$0xff]  }
 0x3ae   : > { %v3254_v24 = vor.u32 %v3253_v49, %v3249_v59 }
 0x3b0   : > { %3161 = vmatpush1.bf16.msra.mxu0 %v9769_v54  ;;  %v3285_v54 = vshrl.u32 %v11562_v38, 16  ;;  %v9840_v38 = vld [vmem:[%s12367_s2 + $0x514] ss:$8 sps:$4 sm:$0xff]  }
 0x3b1   : > { %3162 = vmatprep.subr.bf16.mxu0 %v9774_v60  ;;  %v3289_v60 = vrot.slane %v3287_v55, 1 }
 0x3b3   : > { %v3290_v37 = vor.u32 %v3289_v60, %v3285_v54 }
 0x3b4   : > { %3163 = vmatpush1.bf16.msra.mxu0 %v9772_v61  ;;  %v9832_v61 = vld [vmem:[%s12367_s2 + $0x4f0] ss:$8 sps:$4 sm:$0xff]  }
 0x3b5   : > { %3164 = vmatprep.subr.bf16.mxu0 %v9777_v62  ;;  %v9837_v62 = vld [vmem:[%s12367_s2 + $0x504] ss:$8 sps:$4 sm:$0xff]  }
 0x3b8   : > { %3165 = vmatpush1.bf16.msra.mxu0 %v9775_v63  ;;  %v3258_v63 = vrot.slane %v3256_v58, 1 }
 0x3b9   : > { %3166 = vmatprep.subr.bf16.mxu0 %v9780_v1  ;;  %v3294_v1 = vrot.slane %v3292_v53, 1 }
 0x3bc   : > { %3167 = vmatpush1.bf16.msra.mxu0 %v9778_v2  ;;  %v3259_v2 = vsel %vm1522_vm1, %v3254_v24, %v3258_v63 }
 0x3bd   : > { %3168 = vmatprep.subr.bf16.mxu0 %v9783_v3  ;;  %v3295_v3 = vsel %vm1522_vm1, %v3290_v37, %v3294_v1 }
 0x3c0   : > { %3169 = vmatpush1.bf16.msra.mxu0 %v9781_v5  ;;  %v9843_v5 = vld [vmem:[%s12367_s2 + $0x524] ss:$8 sps:$4 sm:$0xff]  }
 0x3c1   : > { %3170 = vmatprep.subr.bf16.mxu0 %v9786_v6  ;;  %v9841_v6 = vld [vmem:[%s12367_s2 + $0x520] ss:$8 sps:$4 sm:$0xff]  }
 0x3c4   : > { %3171 = vmatpush1.bf16.msra.mxu0 %v9784_v9  ;;  %v9844_v9 = vld [vmem:[%s12367_s2 + $0x530] ss:$8 sps:$4 sm:$0xff]  }
 0x3c5   : > { %3620 = vmatprep.subr.bf16.mxu0 %v9789_v11  ;;  %v9849_v11 = vld [vmem:[%s12367_s2 + $0x544] ss:$8 sps:$4 sm:$0xff]  }
 0x3c7   : > { %3173 = vmatmul.mubr.bf16.vlgmr.msra.gmra.mrb[8].mxu0 %v11668_v14 }
 0x3c8   : > { %3621 = vmatpush1.bf16.msra.mxu0 %v9787_v13  ;;  %3652 = vmatprep.mubr.bf16.mxu0 %v11386_v29  ;;  %v9796_v29 = vld [vmem:[%s12367_s2 + $0x430] ss:$8 sps:$4 sm:$0xff]   ;;  %v9852_v13 = vld [vmem:[%s12367_s2 + $0x554] ss:$8 sps:$4 sm:$0xff]  }
 0x3c9   : > { %3622 = vmatprep.subr.bf16.mxu0 %v9792_v41  ;;  %v9850_v41 = vld [vmem:[%s12367_s2 + $0x550] ss:$8 sps:$4 sm:$0xff]  }
 0x3cc   : > { %3623 = vmatpush1.bf16.msra.mxu0 %v9790_v15  ;;  %v9855_v15 = vld [vmem:[%s12367_s2 + $0x564] ss:$8 sps:$4 sm:$0xff]  }
 0x3cd   : > { %3624 = vmatprep.subr.bf16.mxu0 %v9795_v16  ;;  %v9853_v16 = vld [vmem:[%s12367_s2 + $0x560] ss:$8 sps:$4 sm:$0xff]  }
 0x3d0   : > { %3625 = vmatpush1.bf16.msra.mxu0 %v9793_v17  ;;  %v9858_v17 = vld [vmem:[%s12367_s2 + $0x574] ss:$8 sps:$4 sm:$0xff]  }
 0x3d1   : > { %3626 = vmatprep.subr.bf16.mxu0 %v9798_v18  ;;  %v9856_v18 = vld [vmem:[%s12367_s2 + $0x570] ss:$8 sps:$4 sm:$0xff]  }
 0x3d4   : > { %3627 = vmatpush1.bf16.msra.mxu0 %v9796_v29  ;;  %v9861_v29 = vld [vmem:[%s12367_s2 + $0x584] ss:$8 sps:$4 sm:$0xff]  }
 0x3d5   : > { %3628 = vmatprep.subr.bf16.mxu0 %v9801_v19  ;;  %v9859_v19 = vld [vmem:[%s12367_s2 + $0x580] ss:$8 sps:$4 sm:$0xff]  }
 0x3d8   : > { %3629 = vmatpush1.bf16.msra.mxu0 %v9799_v21  ;;  %v9864_v21 = vld [vmem:[%s12367_s2 + $0x594] ss:$8 sps:$4 sm:$0xff]  }
 0x3d9   : > { %3630 = vmatprep.subr.bf16.mxu0 %v9804_v22  ;;  %v9862_v22 = vld [vmem:[%s12367_s2 + $0x590] ss:$8 sps:$4 sm:$0xff]  }
 0x3dc   : > { %3631 = vmatpush1.bf16.msra.mxu0 %v9802_v26  ;;  %v9867_v26 = vld [vmem:[%s12367_s2 + $0x5a4] ss:$8 sps:$4 sm:$0xff]  }
 0x3dd   : > { %3632 = vmatprep.subr.bf16.mxu0 %v9807_v32  ;;  %v9865_v32 = vld [vmem:[%s12367_s2 + $0x5a0] ss:$8 sps:$4 sm:$0xff]  }
 0x3e0   : > { %3633 = vmatpush1.bf16.msra.mxu0 %v9805_v27  ;;  %v9870_v27 = vld [vmem:[%s12367_s2 + $0x5b4] ss:$8 sps:$4 sm:$0xff]  }
 0x3e1   : > { %3634 = vmatprep.subr.bf16.mxu0 %v9810_v28  ;;  %v9868_v28 = vld [vmem:[%s12367_s2 + $0x5b0] ss:$8 sps:$4 sm:$0xff]  }
 0x3e4   : > { %3635 = vmatpush1.bf16.msra.mxu0 %v9808_v33  ;;  %v9873_v33 = vld [vmem:[%s12367_s2 + $0x5c4] ss:$8 sps:$4 sm:$0xff]  }
 0x3e5   : > { %3636 = vmatprep.subr.bf16.mxu0 %v9813_v35  ;;  %v9871_v35 = vld [vmem:[%s12367_s2 + $0x5c0] ss:$8 sps:$4 sm:$0xff]  }
 0x3e8   : > { %3637 = vmatpush1.bf16.msra.mxu0 %v9811_v0  ;;  %v9876_v0 = vld [vmem:[%s12367_s2 + $0x5d4] ss:$8 sps:$4 sm:$0xff]  }
 0x3e9   : > { %3638 = vmatprep.subr.bf16.mxu0 %v9816_v36  ;;  %v9874_v36 = vld [vmem:[%s12367_s2 + $0x5d0] ss:$8 sps:$4 sm:$0xff]  }
 0x3ec   : > { %3639 = vmatpush1.bf16.msra.mxu0 %v9814_v40  ;;  %v9879_v40 = vld [vmem:[%s12367_s2 + $0x5e4] ss:$8 sps:$4 sm:$0xff]  }
 0x3ed   : > { %3640 = vmatprep.subr.bf16.mxu0 %v9819_v42  ;;  %v3275_v42 = vshll.u32 %v11668_v14, 16 }
 0x3f0   : > { %3641 = vmatpush1.bf16.msra.mxu0 %v9817_v43  ;;  %v9877_v43 = vld [vmem:[%s12367_s2 + $0x5e0] ss:$8 sps:$4 sm:$0xff]  }
 0x3f1   : > { %3642 = vmatprep.subr.bf16.mxu0 %v9822_v39  ;;  %v9882_v39 = vld [vmem:[%s12367_s2 + $0x5f4] ss:$8 sps:$4 sm:$0xff]  }
 0x3f4   : > { %3643 = vmatpush1.bf16.msra.mxu0 %v9820_v44  ;;  %v3280_v44 = vshll.u32 %v11650_v7, 16  ;;  %v3710_v7 = vld [vmem:[%s12374_s9] sm:$0x3] }
 0x3f5   : > { %3644 = vmatprep.subr.bf16.mxu0 %v9825_v46  ;;  %v3273_v46 = vshrl.u32 %v11668_v14, 16  ;;  %v3715_v14 = vrot.slane %v3710_v7, %v11277_v20  ;;  %v3719_v55 = vrot.slane %v3710_v7, %v11284_v23  ;;  %v9936_v7 = vld [vmem:[%s12368_s3 + $0x14] ss:$8 sps:$4 sm:$0xff]  }
 0x3f8   : > { %3645 = vmatpush1.bf16.msra.mxu0 %v9823_v45  ;;  %v3277_v45 = vrot.slane %v3275_v42, 1  ;;  %v9930_v42 = vld [vmem:[%s12368_s3 + $0x1f4] ss:$8 sps:$4 sm:$0xff]  }
 0x3f9   : > { %3646 = vmatprep.subr.bf16.mxu0 %v9828_v47  ;;  %v9880_v47 = vld [vmem:[%s12367_s2 + $0x5f0] ss:$8 sps:$4 sm:$0xff]  }
 0x3fc   : > { %3647 = vmatpush1.bf16.msra.mxu0 %v9826_v48  ;;  %v3282_v48 = vrot.slane %v3280_v44, 1 }
 0x3fd   : > { %3648 = vmatprep.subr.bf16.mxu0 %v9831_v50  ;;  %v3278_v50 = vor.u32 %v3277_v45, %v3273_v46 }
 0x3ff   : > { %v3283_v52 = vsel %vm1522_vm1, %v3278_v50, %v3282_v48  ;;  %v9931_v48 = vld [vmem:[%s12368_s3] ss:$8 sps:$4 sm:$0xff]   ;;  %vm6233_vm1 = vcmask 1042432  }
 0x400   : > { %3649 = vmatpush1.bf16.msra.mxu0 %v9829_v56  ;;  %vm6235_vm3 = vmand %vm6233_vm1, %vm6234_vm2 }
 0x401   : > { %3650 = vmatprep.subr.bf16.mxu0 %v9834_v57 }
 0x404   : > { %3651 = vmatpush1.bf16.msra.mxu0 %v9832_v61 }
 0x405   : > { %3663 = vmatprep.subr.bf16.mxu0 %v9837_v62 }
 0x407   : > { %3653 = vmatmul.mubr.bf16.vlgmr.msra.gmra.mrb[8].mxu0 %v3259_v2  ;;  %v11884_v2 = vpack.c.bf16 %v11304_v34, %v11304_v34  ;;  %v9891_v34 = vld [vmem:[%s12368_s3 + $0x124] ss:$8 sps:$4 sm:$0xff]  }
 0x408   : > { %3664 = vmatpush1.bf16.msra.mxu0 %v9835_v31  ;;  %3695 = vmatprep.mubr.bf16.mxu0 %v3295_v3  ;;  %v11875_v31 = vpack.c.bf16 %v11294_v25, %v11294_v25  ;;  %v9883_v25 = vld [vmem:[%s12368_s3 + $0x100] ss:$8 sps:$4 sm:$0xff]   ;;  %v9888_v3 = vld [vmem:[%s12368_s3 + $0x114] ss:$8 sps:$4 sm:$0xff]  }
 0x409   : > { %3665 = vmatprep.subr.bf16.mxu0 %v9840_v38  ;;  %v9885_v38 = vld [vmem:[%s12368_s3 + $0x104] ss:$8 sps:$4 sm:$0xff]  }
 0x40c   : > { %3666 = vmatpush1.bf16.msra.mxu0 %v9838_v4  ;;  %v9886_v4 = vld [vmem:[%s12368_s3 + $0x110] ss:$8 sps:$4 sm:$0xff]  }
 0x40d   : > { %3667 = vmatprep.subr.bf16.mxu0 %v9843_v5  ;;  %v9889_v5 = vld [vmem:[%s12368_s3 + $0x120] ss:$8 sps:$4 sm:$0xff]  }
 0x410   : > { %3668 = vmatpush1.bf16.msra.mxu0 %v9841_v6  ;;  %v9894_v6 = vld [vmem:[%s12368_s3 + $0x134] ss:$8 sps:$4 sm:$0xff]  }
 0x411   : > { %3669 = vmatprep.subr.bf16.mxu0 %v9846_v8  ;;  %v9892_v8 = vld [vmem:[%s12368_s3 + $0x130] ss:$8 sps:$4 sm:$0xff]  }
 0x414   : > { %3670 = vmatpush1.bf16.msra.mxu0 %v9844_v9  ;;  %v9897_v9 = vld [vmem:[%s12368_s3 + $0x144] ss:$8 sps:$4 sm:$0xff]  }
 0x415   : > { %3671 = vmatprep.subr.bf16.mxu0 %v9849_v11  ;;  %v9895_v11 = vld [vmem:[%s12368_s3 + $0x140] ss:$8 sps:$4 sm:$0xff]  }
 0x418   : > { %3672 = vmatpush1.bf16.msra.mxu0 %v9847_v12  ;;  %v9900_v12 = vld [vmem:[%s12368_s3 + $0x154] ss:$8 sps:$4 sm:$0xff]  }
 0x419   : > { %3673 = vmatprep.subr.bf16.mxu0 %v9852_v13  ;;  %v9898_v13 = vld [vmem:[%s12368_s3 + $0x150] ss:$8 sps:$4 sm:$0xff]  }
 0x41c   : > { %3674 = vmatpush1.bf16.msra.mxu0 %v9850_v41  ;;  %v9903_v41 = vld [vmem:[%s12368_s3 + $0x164] ss:$8 sps:$4 sm:$0xff]  }
 0x41d   : > { %3675 = vmatprep.subr.bf16.mxu0 %v9855_v15  ;;  %v9901_v15 = vld [vmem:[%s12368_s3 + $0x160] ss:$8 sps:$4 sm:$0xff]  }
 0x420   : > { %3676 = vmatpush1.bf16.msra.mxu0 %v9853_v16  ;;  %v9906_v16 = vld [vmem:[%s12368_s3 + $0x174] ss:$8 sps:$4 sm:$0xff]  }
 0x421   : > { %3677 = vmatprep.subr.bf16.mxu0 %v9858_v17  ;;  %v9904_v17 = vld [vmem:[%s12368_s3 + $0x170] ss:$8 sps:$4 sm:$0xff]  }
 0x424   : > { %3678 = vmatpush1.bf16.msra.mxu0 %v9856_v18  ;;  %v9909_v18 = vld [vmem:[%s12368_s3 + $0x184] ss:$8 sps:$4 sm:$0xff]  }
 0x425   : > { %3679 = vmatprep.subr.bf16.mxu0 %v9861_v29  ;;  %v9907_v29 = vld [vmem:[%s12368_s3 + $0x180] ss:$8 sps:$4 sm:$0xff]  }
 0x428   : > { %3680 = vmatpush1.bf16.msra.mxu0 %v9859_v19  ;;  %v9912_v19 = vld [vmem:[%s12368_s3 + $0x194] ss:$8 sps:$4 sm:$0xff]  }
 0x429   : > { %3681 = vmatprep.subr.bf16.mxu0 %v9864_v21  ;;  %v9910_v21 = vld [vmem:[%s12368_s3 + $0x190] ss:$8 sps:$4 sm:$0xff]  }
 0x42c   : > { %3682 = vmatpush1.bf16.msra.mxu0 %v9862_v22  ;;  %v9915_v22 = vld [vmem:[%s12368_s3 + $0x1a4] ss:$8 sps:$4 sm:$0xff]  }
 0x42d   : > { %3683 = vmatprep.subr.bf16.mxu0 %v9867_v26  ;;  %v9913_v26 = vld [vmem:[%s12368_s3 + $0x1a0] ss:$8 sps:$4 sm:$0xff]  }
 0x430   : > { %3684 = vmatpush1.bf16.msra.mxu0 %v9865_v32  ;;  %v9918_v32 = vld [vmem:[%s12368_s3 + $0x1b4] ss:$8 sps:$4 sm:$0xff]  }
 0x431   : > { %3685 = vmatprep.subr.bf16.mxu0 %v9870_v27  ;;  %v9916_v27 = vld [vmem:[%s12368_s3 + $0x1b0] ss:$8 sps:$4 sm:$0xff]  }
 0x434   : > { %3686 = vmatpush1.bf16.msra.mxu0 %v9868_v28  ;;  %v9921_v28 = vld [vmem:[%s12368_s3 + $0x1c4] ss:$8 sps:$4 sm:$0xff]  }
 0x435   : > { %3687 = vmatprep.subr.bf16.mxu0 %v9873_v33  ;;  %v9919_v33 = vld [vmem:[%s12368_s3 + $0x1c0] ss:$8 sps:$4 sm:$0xff]  }
 0x438   : > { %3688 = vmatpush1.bf16.msra.mxu0 %v9871_v35  ;;  %v9924_v35 = vld [vmem:[%s12368_s3 + $0x1d4] ss:$8 sps:$4 sm:$0xff]  }
 0x439   : > { %3689 = vmatprep.subr.bf16.mxu0 %v9876_v0  ;;  %v9922_v0 = vld [vmem:[%s12368_s3 + $0x1d0] ss:$8 sps:$4 sm:$0xff]  }
 0x43c   : > { %3690 = vmatpush1.bf16.msra.mxu0 %v9874_v36  ;;  %v9927_v36 = vld [vmem:[%s12368_s3 + $0x1e4] ss:$8 sps:$4 sm:$0xff]  }
 0x43d   : > { %3691 = vmatprep.subr.bf16.mxu0 %v9879_v40  ;;  %v9925_v40 = vld [vmem:[%s12368_s3 + $0x1e0] ss:$8 sps:$4 sm:$0xff]  }
 0x440   : > { %3692 = vmatpush1.bf16.msra.mxu0 %v9877_v43  ;;  %v9928_v43 = vld [vmem:[%s12368_s3 + $0x1f0] ss:$8 sps:$4 sm:$0xff]  }
 0x441   : > { %3693 = vmatprep.subr.bf16.mxu0 %v9882_v39  ;;  %v9933_v39 = vld [vmem:[%s12368_s3 + $0x4] ss:$8 sps:$4 sm:$0xff]  }
 0x444   : > { %3694 = vmatpush1.bf16.msra.mxu0 %v9880_v47 }
 0x447   : > { %3696 = vmatmul.mubr.bf16.vlgmr.msra.gmra.mrb[8].mxu0 %v3283_v52 }
 0x448   : > { %5397 = vmatprep.mubr.bf16.mxu0 %v10828_v51 }
 0x51a   : > { %v3697_v56 = vpop.f32.mrb[8].mxu0 }
 0x51b   : > { %v3722_v57 = vadd.f32 %v3715_v14, %v3697_v56  ;;  %v3699_v58 = vpop.f32.mrb[9].mxu0 }
 0x51c   : > { %v3723_v59 = vadd.f32 %v3719_v55, %v3699_v58  ;;  %v3701_v49 = vpop.f32.mrb[10].mxu0  ;;  %v9937_v58 = vld [vmem:[%s12368_s3 + $0x20] ss:$8 sps:$4 sm:$0xff]  }
 0x51d   : > { %v3724_v53 = vadd.f32 %v3715_v14, %v3701_v49  ;;  %v3703_v54 = vpop.f32.mrb[11].mxu0  ;;  %v3726_v61 = vmax.f32 %v3722_v57, 0.0  ;;  %v9934_v14 = vld [vmem:[%s12368_s3 + $0x10] ss:$8 sps:$4 sm:$0xff]  }
 0x51e   : > { %v3725_v60 = vadd.f32 %v3719_v55, %v3703_v54  ;;  %v3727_v63 = vmax.f32 %v3723_v59, 0.0  ;;  %v9939_v55 = vld [vmem:[%s12368_s3 + $0x24] ss:$8 sps:$4 sm:$0xff]  }
 0x51f   : > { %v3728_v62 = vmax.f32 %v3724_v53, 0.0  ;;  %v9942_v53 = vld [vmem:[%s12368_s3 + $0x34] ss:$8 sps:$4 sm:$0xff]  }
 0x520   : > { %v3729_v24 = vmax.f32 %v3725_v60, 0.0 }
 0x521   : > { %v3730_v1 = vpack.c.bf16 %v3728_v62, %v3726_v61  ;;  %v9940_v62 = vld [vmem:[%s12368_s3 + $0x30] ss:$8 sps:$4 sm:$0xff]  }
 0x522   : > { %v3731_v37 = vpack.c.bf16 %v3729_v24, %v3727_v63  ;;  %v9945_v24 = vld [vmem:[%s12368_s3 + $0x44] ss:$8 sps:$4 sm:$0xff]  }
 0x524   : > { %3737 = vmatprep.subr.bf16.mxu1 %v3731_v37 }
 0x525   : > { %3738 = vmatpush1.bf16.msra.mxu1 %v3730_v1 }
 0x526   : > { %3784 = vmatprep.subr.bf16.mxu1 %v3731_v37  ;;  %v9943_v37 = vld [vmem:[%s12368_s3 + $0x40] ss:$8 sps:$4 sm:$0xff]  }
 0x528   : > { %8575 = vmatmul.mubr.msk.bf16.vlgmr.msra.gmra.mrb[24].mxu1 %vm3733_vm10, %v11875_v31 }
 0x529   : > { %3785 = vmatpush1.bf16.msra.mxu1 %v3730_v1  ;;  %3816 = vmatprep.mubr.bf16.mxu1 %v10828_v51 }
 0x52a   : > { %4078 = vmatprep.subr.bf16.mxu1 %v9885_v38 }
 0x530   : > { %8576 = vmatmul.mubr.msk.bf16.vlgmr.msra.gmra.mrb[28].mxu1 %vm3733_vm10, %v11884_v2 }
 0x531   : > { %4079 = vmatpush1.bf16.msra.mxu1 %v9883_v25  ;;  %v9948_v25 = vld [vmem:[%s12368_s3 + $0x54] ss:$8 sps:$4 sm:$0xff]  }
 0x532   : > { %4080 = vmatprep.subr.bf16.mxu1 %v9888_v3  ;;  %v9946_v3 = vld [vmem:[%s12368_s3 + $0x50] ss:$8 sps:$4 sm:$0xff]  }
 0x535   : > { %4081 = vmatpush1.bf16.msra.mxu1 %v9886_v4  ;;  %v9951_v4 = vld [vmem:[%s12368_s3 + $0x64] ss:$8 sps:$4 sm:$0xff]  }
 0x536   : > { %4082 = vmatprep.subr.bf16.mxu1 %v9891_v34  ;;  %v9949_v34 = vld [vmem:[%s12368_s3 + $0x60] ss:$8 sps:$4 sm:$0xff]  }
 0x539   : > { %4083 = vmatpush1.bf16.msra.mxu1 %v9889_v5  ;;  %v9954_v5 = vld [vmem:[%s12368_s3 + $0x74] ss:$8 sps:$4 sm:$0xff]  }
 0x53a   : > { %4084 = vmatprep.subr.bf16.mxu1 %v9894_v6  ;;  %v9952_v6 = vld [vmem:[%s12368_s3 + $0x70] ss:$8 sps:$4 sm:$0xff]  }
 0x53d   : > { %4085 = vmatpush1.bf16.msra.mxu1 %v9892_v8  ;;  %v9957_v8 = vld [vmem:[%s12368_s3 + $0x84] ss:$8 sps:$4 sm:$0xff]  }
 0x53e   : > { %4086 = vmatprep.subr.bf16.mxu1 %v9897_v9  ;;  %v9955_v9 = vld [vmem:[%s12368_s3 + $0x80] ss:$8 sps:$4 sm:$0xff]  }
 0x541   : > { %4087 = vmatpush1.bf16.msra.mxu1 %v9895_v11  ;;  %v9960_v11 = vld [vmem:[%s12368_s3 + $0x94] ss:$8 sps:$4 sm:$0xff]  }
 0x542   : > { %4088 = vmatprep.subr.bf16.mxu1 %v9900_v12  ;;  %v9958_v12 = vld [vmem:[%s12368_s3 + $0x90] ss:$8 sps:$4 sm:$0xff]  }
 0x545   : > { %4089 = vmatpush1.bf16.msra.mxu1 %v9898_v13  ;;  %v9963_v13 = vld [vmem:[%s12368_s3 + $0xa4] ss:$8 sps:$4 sm:$0xff]  }
 0x546   : > { %4090 = vmatprep.subr.bf16.mxu1 %v9903_v41  ;;  %v9961_v41 = vld [vmem:[%s12368_s3 + $0xa0] ss:$8 sps:$4 sm:$0xff]  }
 0x549   : > { %4091 = vmatpush1.bf16.msra.mxu1 %v9901_v15  ;;  %v9966_v15 = vld [vmem:[%s12368_s3 + $0xb4] ss:$8 sps:$4 sm:$0xff]  }
 0x54a   : > { %4092 = vmatprep.subr.bf16.mxu1 %v9906_v16  ;;  %v9964_v16 = vld [vmem:[%s12368_s3 + $0xb0] ss:$8 sps:$4 sm:$0xff]  }
 0x54d   : > { %4093 = vmatpush1.bf16.msra.mxu1 %v9904_v17  ;;  %v9969_v17 = vld [vmem:[%s12368_s3 + $0xc4] ss:$8 sps:$4 sm:$0xff]  }
 0x54e   : > { %4094 = vmatprep.subr.bf16.mxu1 %v9909_v18  ;;  %v9967_v18 = vld [vmem:[%s12368_s3 + $0xc0] ss:$8 sps:$4 sm:$0xff]  }
 0x551   : > { %4095 = vmatpush1.bf16.msra.mxu1 %v9907_v29  ;;  %v9972_v29 = vld [vmem:[%s12368_s3 + $0xd4] ss:$8 sps:$4 sm:$0xff]  }
 0x552   : > { %4096 = vmatprep.subr.bf16.mxu1 %v9912_v19 }
 0x555   : > { %4097 = vmatpush1.bf16.msra.mxu1 %v9910_v21  ;;  %v9970_v21 = vld [vmem:[%s12368_s3 + $0xd0] ss:$8 sps:$4 sm:$0xff]  }
 0x556   : > { %4098 = vmatprep.subr.bf16.mxu1 %v9915_v22  ;;  %v9975_v22 = vld [vmem:[%s12368_s3 + $0xe4] ss:$8 sps:$4 sm:$0xff]  }
 0x559   : > { %4099 = vmatpush1.bf16.msra.mxu1 %v9913_v26 }
 0x55a   : > { %4100 = vmatprep.subr.bf16.mxu1 %v9918_v32  ;;  %v9973_v32 = vld [vmem:[%s12368_s3 + $0xe0] ss:$8 sps:$4 sm:$0xff]  }
 0x55d   : > { %4101 = vmatpush1.bf16.msra.mxu1 %v9916_v27 }
 0x55e   : > { %4102 = vmatprep.subr.bf16.mxu1 %v9921_v28  ;;  %v9978_v28 = vld [vmem:[%s12368_s3 + $0xf4] ss:$8 sps:$4 sm:$0xff]  }
 0x561   : > { %4103 = vmatpush1.bf16.msra.mxu1 %v9919_v33 }
 0x562   : > { %4104 = vmatprep.subr.bf16.mxu1 %v9924_v35 }
 0x565   : > { %4105 = vmatpush1.bf16.msra.mxu1 %v9922_v0  ;;  %v9976_v0 = vld [vmem:[%s12368_s3 + $0xf0] ss:$8 sps:$4 sm:$0xff]  }
 0x566   : > { %4106 = vmatprep.subr.bf16.mxu1 %v9927_v36 }
 0x569   : > { %4107 = vmatpush1.bf16.msra.mxu1 %v9925_v40 }
 0x56a   : > { %4108 = vmatprep.subr.bf16.mxu1 %v9930_v42  ;;  %v9981_v42 = vld [vmem:[%s12368_s3 + $0x204] ss:$8 sps:$4 sm:$0xff]  }
 0x56d   : > { %4109 = vmatpush1.bf16.msra.mxu1 %v9928_v43 }
 0x56e   : > { %4279 = vmatprep.subr.bf16.mxu1 %v9933_v39  ;;  %v9979_v39 = vld [vmem:[%s12368_s3 + $0x200] ss:$8 sps:$4 sm:$0xff]  }
 0x5fb   : > { %v3771_v44 = vpop.f32.mrb[24].mxu1 }
 0x5fc   : > { %v3773_v46 = vpop.f32.mrb[25].mxu1  ;;  %v3778_v50 = vpack.c.bf16 %v3771_v44, %v3771_v44 }
 0x5fd   : > { %v3779_v45 = vpack.c.bf16 %v3773_v46, %v3773_v46  ;;  %v3775_v47 = vpop.f32.mrb[26].mxu1  ;;  %v9984_v46 = vld [vmem:[%s12368_s3 + $0x214] ss:$8 sps:$4 sm:$0xff]  }
 0x5fe   : > { %v3776_v52 = vpop.f32.mrb[27].mxu1  ;;  %v9982_v47 = vld [vmem:[%s12368_s3 + $0x210] ss:$8 sps:$4 sm:$0xff]  }
 0x5ff   : > { %8641 = vmatprep.mubr.msk.bf16.mxu1 %vm3845_vm11, %v3779_v45  ;;  %v9990_v52 = vld [vmem:[%s12368_s3 + $0x234] ss:$8 sps:$4 sm:$0xff]  }
 0x600   : > { %8642 = vmatmul.mubr.msk.bf16.vlgmr.msra.gmra.mrb[32].mxu1 %vm3845_vm11, %v3778_v50  ;;  %v9985_v50 = vld [vmem:[%s12368_s3 + $0x220] ss:$8 sps:$4 sm:$0xff]  }
 0x601   : > { %4280 = vmatpush1.bf16.msra.mxu1 %v9931_v48  ;;  %v9987_v48 = vld [vmem:[%s12368_s3 + $0x224] ss:$8 sps:$4 sm:$0xff]  }
 0x602   : > { %4281 = vmatprep.subr.bf16.mxu1 %v9936_v7  ;;  %v9988_v7 = vld [vmem:[%s12368_s3 + $0x230] ss:$8 sps:$4 sm:$0xff]  }
 0x603   : > { %v3818_v56 = vpop.f32.mrb[28].mxu1 }
 0x604   : > { %v3820_v57 = vpop.f32.mrb[29].mxu1  ;;  %v3825_v19 = vpack.c.bf16 %v3818_v56, %v3818_v56  ;;  %v9996_v56 = vld [vmem:[%s12368_s3 + $0x254] ss:$8 sps:$4 sm:$0xff]  }
 0x605   : > { %4282 = vmatpush1.bf16.msra.mxu1 %v9934_v14  ;;  %v3826_v59 = vpack.c.bf16 %v3820_v57, %v3820_v57  ;;  %v3822_v49 = vpop.f32.mrb[30].mxu1  ;;  %v9993_v14 = vld [vmem:[%s12368_s3 + $0x244] ss:$8 sps:$4 sm:$0xff]   ;;  %v9994_v57 = vld [vmem:[%s12368_s3 + $0x250] ss:$8 sps:$4 sm:$0xff]  }
 0x606   : > { %4283 = vmatprep.subr.bf16.mxu1 %v9939_v55  ;;  %v3823_v54 = vpop.f32.mrb[31].mxu1  ;;  %v3828_v26 = vshrl.u32 %v3825_v19, 16  ;;  %v3831_v35 = vshll.u32 %v3825_v19, 16  ;;  %v9991_v55 = vld [vmem:[%s12368_s3 + $0x240] ss:$8 sps:$4 sm:$0xff]  }
 0x607   : > { %v3835_v60 = vshrl.u32 %v3826_v59, 16  ;;  %v3838_v61 = vshll.u32 %v3826_v59, 16  ;;  %v9997_v59 = vld [vmem:[%s12368_s3 + $0x260] ss:$8 sps:$4 sm:$0xff]   ;;  %v10002_v49 = vld [vmem:[%s12368_s3 + $0x274] ss:$8 sps:$4 sm:$0xff]  }
 0x608   : > { %v3830_v33 = vrot.slane %v3828_v26, 7  ;;  %v10005_v54 = vld [vmem:[%s12368_s3 + $0x284] ss:$8 sps:$4 sm:$0xff]   ;;  %v10038_v19 = vld [vmem:[#allocation5 + $0x134] ss:$8 sps:$4 sm:$0xff]  }
 0x609   : > { %4284 = vmatpush1.bf16.msra.mxu1 %v9937_v58  ;;  %v3837_v63 = vrot.slane %v3835_v60, 7  ;;  %v9999_v58 = vld [vmem:[%s12368_s3 + $0x264] ss:$8 sps:$4 sm:$0xff]   ;;  %v10003_v60 = vld [vmem:[%s12368_s3 + $0x280] ss:$8 sps:$4 sm:$0xff]  }
 0x60a   : > { %4285 = vmatprep.subr.bf16.mxu1 %v9942_v53  ;;  %v3833_v43 = vor.u32 %v3831_v35, %v3830_v33  ;;  %v10000_v53 = vld [vmem:[%s12368_s3 + $0x270] ss:$8 sps:$4 sm:$0xff]   ;;  %v10039_v26 = vld [vmem:[#allocation5 + $0x140] ss:$8 sps:$4 sm:$0xff]   ;;  %v10050_v35 = vld [vmem:[#allocation5 + $0x174] ss:$8 sps:$4 sm:$0xff]  }
 0x60b   : > { %v3840_v1 = vor.u32 %v3838_v61, %v3837_v63  ;;  %v10008_v61 = vld [vmem:[%s12368_s3 + $0x294] ss:$8 sps:$4 sm:$0xff]   ;;  %v10011_v63 = vld [vmem:[%s12368_s3 + $0x2a4] ss:$8 sps:$4 sm:$0xff]   ;;  %v10045_v33 = vld [vmem:[#allocation5 + $0x160] ss:$8 sps:$4 sm:$0xff]  }
 0x60c   : > { %v12091_v45 = vsel %vm11367_vm9, 0, %v3833_v43  ;;  %v10054_v43 = vld [vmem:[#allocation5 + $0x190] ss:$8 sps:$4 sm:$0xff]  }
 0x60d   : > { %4286 = vmatpush1.bf16.msra.mxu1 %v9940_v62  ;;  %v3844_v38 = vsel %vm11367_vm9, 0, %v3840_v1  ;;  %v10006_v62 = vld [vmem:[%s12368_s3 + $0x290] ss:$8 sps:$4 sm:$0xff]   ;;  %v10014_v1 = vld [vmem:[%s12368_s3 + $0x2b4] ss:$8 sps:$4 sm:$0xff]  }
 0x60e   : > { %4287 = vmatprep.subr.bf16.mxu1 %v9945_v24  ;;  %4311 = vmatprep.mubr.bf16.mxu1 %v3844_v38  ;;  %v4363_v27 = vshll.u32 %v3844_v38, 16  ;;  %v4361_v36 = vshrl.u32 %v3844_v38, 16  ;;  %v10009_v24 = vld [vmem:[%s12368_s3 + $0x2a0] ss:$8 sps:$4 sm:$0xff]   ;;  %v10017_v38 = vld [vmem:[%s12368_s3 + $0x2c4] ss:$8 sps:$4 sm:$0xff]  }
 0x610   : > { %v4365_v40 = vrot.slane %v4363_v27, 1  ;;  %v10042_v27 = vld [vmem:[#allocation5 + $0x150] ss:$8 sps:$4 sm:$0xff]  }
 0x611   : > { %4288 = vmatpush1.bf16.msra.mxu1 %v9943_v37  ;;  %v10012_v37 = vld [vmem:[%s12368_s3 + $0x2b0] ss:$8 sps:$4 sm:$0xff]  }
 0x612   : > { %4289 = vmatprep.subr.bf16.mxu1 %v9948_v25  ;;  %v4366_v44 = vor.u32 %v4365_v40, %v4361_v36  ;;  %v10015_v25 = vld [vmem:[%s12368_s3 + $0x2c0] ss:$8 sps:$4 sm:$0xff]   ;;  %v10053_v36 = vld [vmem:[#allocation5 + $0x184] ss:$8 sps:$4 sm:$0xff]  }
 0x613   : > { %v10051_v40 = vld [vmem:[#allocation5 + $0x180] ss:$8 sps:$4 sm:$0xff]  }
 0x615   : > { %4290 = vmatpush1.bf16.msra.mxu1 %v9946_v3  ;;  %v10020_v3 = vld [vmem:[%s12368_s3 + $0x2d4] ss:$8 sps:$4 sm:$0xff]  }
 0x616   : > { %4291 = vmatprep.subr.bf16.mxu1 %v9951_v4  ;;  %v10018_v4 = vld [vmem:[%s12368_s3 + $0x2d0] ss:$8 sps:$4 sm:$0xff]  }
 0x619   : > { %4292 = vmatpush1.bf16.msra.mxu1 %v9949_v34  ;;  %v10023_v34 = vld [vmem:[%s12368_s3 + $0x2e4] ss:$8 sps:$4 sm:$0xff]  }
 0x61a   : > { %4293 = vmatprep.subr.bf16.mxu1 %v9954_v5  ;;  %v10021_v5 = vld [vmem:[%s12368_s3 + $0x2e0] ss:$8 sps:$4 sm:$0xff]  }
 0x61d   : > { %4294 = vmatpush1.bf16.msra.mxu1 %v9952_v6  ;;  %v4356_v6 = vshll.u32 %v12091_v45, 16 }
 0x61e   : > { %4295 = vmatprep.subr.bf16.mxu1 %v9957_v8  ;;  %v10026_v8 = vld [vmem:[%s12368_s3 + $0x2f4] ss:$8 sps:$4 sm:$0xff]  }
 0x621   : > { %4296 = vmatpush1.bf16.msra.mxu1 %v9955_v9  ;;  %v10024_v9 = vld [vmem:[%s12368_s3 + $0x2f0] ss:$8 sps:$4 sm:$0xff]  }
 0x622   : > { %4297 = vmatprep.subr.bf16.mxu1 %v9960_v11  ;;  %v4354_v11 = vshrl.u32 %v12091_v45, 16 }
 0x625   : > { %4298 = vmatpush1.bf16.msra.mxu1 %v9958_v12  ;;  %v4358_v12 = vrot.slane %v4356_v6, 1 }
 0x626   : > { %4299 = vmatprep.subr.bf16.mxu1 %v9963_v13 }
 0x627   : > { %v4359_v13 = vor.u32 %v4358_v12, %v4354_v11 }
 0x629   : > { %4300 = vmatpush1.bf16.msra.mxu1 %v9961_v41  ;;  %v10027_v41 = vld [vmem:[#allocation5 + $0x100] ss:$8 sps:$4 sm:$0xff]  }
 0x62a   : > { %4301 = vmatprep.subr.bf16.mxu1 %v9966_v15  ;;  %v10029_v15 = vld [vmem:[#allocation5 + $0x104] ss:$8 sps:$4 sm:$0xff]  }
 0x62d   : > { %4302 = vmatpush1.bf16.msra.mxu1 %v9964_v16  ;;  %v10032_v16 = vld [vmem:[#allocation5 + $0x114] ss:$8 sps:$4 sm:$0xff]  }
 0x62e   : > { %4303 = vmatprep.subr.bf16.mxu1 %v9969_v17  ;;  %v10030_v17 = vld [vmem:[#allocation5 + $0x110] ss:$8 sps:$4 sm:$0xff]  }
 0x631   : > { %4304 = vmatpush1.bf16.msra.mxu1 %v9967_v18  ;;  %v10035_v18 = vld [vmem:[#allocation5 + $0x124] ss:$8 sps:$4 sm:$0xff]  }
 0x632   : > { %4305 = vmatprep.subr.bf16.mxu1 %v9972_v29  ;;  %v10033_v29 = vld [vmem:[#allocation5 + $0x120] ss:$8 sps:$4 sm:$0xff]  }
 0x635   : > { %4306 = vmatpush1.bf16.msra.mxu1 %v9970_v21  ;;  %v10036_v21 = vld [vmem:[#allocation5 + $0x130] ss:$8 sps:$4 sm:$0xff]  }
 0x636   : > { %4307 = vmatprep.subr.bf16.mxu1 %v9975_v22  ;;  %v10041_v22 = vld [vmem:[#allocation5 + $0x144] ss:$8 sps:$4 sm:$0xff]  }
 0x639   : > { %4308 = vmatpush1.bf16.msra.mxu1 %v9973_v32  ;;  %v10044_v32 = vld [vmem:[#allocation5 + $0x154] ss:$8 sps:$4 sm:$0xff]  }
 0x63a   : > { %4309 = vmatprep.subr.bf16.mxu1 %v9978_v28  ;;  %v10047_v28 = vld [vmem:[#allocation5 + $0x164] ss:$8 sps:$4 sm:$0xff]  }
 0x63d   : > { %4310 = vmatpush1.bf16.msra.mxu1 %v9976_v0  ;;  %v10048_v0 = vld [vmem:[#allocation5 + $0x170] ss:$8 sps:$4 sm:$0xff]  }
 0x63e   : > { %4529 = vmatprep.subr.bf16.mxu1 %v9981_v42  ;;  %v10056_v42 = vld [vmem:[#allocation5 + $0x194] ss:$8 sps:$4 sm:$0xff]  }
 0x640   : > { %4312 = vmatmul.mubr.bf16.vlgmr.msra.gmra.mrb[36].mxu1 %v12091_v45 }
 0x641   : > { %4530 = vmatpush1.bf16.msra.mxu1 %v9979_v39  ;;  %4561 = vmatprep.mubr.bf16.mxu1 %v4366_v44  ;;  %v10059_v39 = vld [vmem:[#allocation5 + $0x1a4] ss:$8 sps:$4 sm:$0xff]   ;;  %v10057_v44 = vld [vmem:[#allocation5 + $0x1a0] ss:$8 sps:$4 sm:$0xff]  }
 0x642   : > { %4531 = vmatprep.subr.bf16.mxu1 %v9984_v46 }
 0x645   : > { %4532 = vmatpush1.bf16.msra.mxu1 %v9982_v47 }
 0x646   : > { %4533 = vmatprep.subr.bf16.mxu1 %v9987_v48  ;;  %v10062_v48 = vld [vmem:[#allocation5 + $0x1b4] ss:$8 sps:$4 sm:$0xff]  }
 0x649   : > { %4534 = vmatpush1.bf16.msra.mxu1 %v9985_v50 }
 0x64a   : > { %4535 = vmatprep.subr.bf16.mxu1 %v9990_v52  ;;  %v10060_v52 = vld [vmem:[#allocation5 + $0x1b0] ss:$8 sps:$4 sm:$0xff]  }
 0x64d   : > { %4536 = vmatpush1.bf16.msra.mxu1 %v9988_v7  ;;  %v10065_v7 = vld [vmem:[#allocation5 + $0x1c4] ss:$8 sps:$4 sm:$0xff]  }
 0x64e   : > { %4537 = vmatprep.subr.bf16.mxu1 %v9993_v14  ;;  %v10063_v14 = vld [vmem:[#allocation5 + $0x1c0] ss:$8 sps:$4 sm:$0xff]  }
 0x651   : > { %4538 = vmatpush1.bf16.msra.mxu1 %v9991_v55  ;;  %v10068_v55 = vld [vmem:[#allocation5 + $0x1d4] ss:$8 sps:$4 sm:$0xff]  }
 0x652   : > { %4539 = vmatprep.subr.bf16.mxu1 %v9996_v56  ;;  %v10066_v56 = vld [vmem:[#allocation5 + $0x1d0] ss:$8 sps:$4 sm:$0xff]  }
 0x655   : > { %4540 = vmatpush1.bf16.msra.mxu1 %v9994_v57  ;;  %v10071_v57 = vld [vmem:[#allocation5 + $0x1e4] ss:$8 sps:$4 sm:$0xff]  }
 0x656   : > { %4541 = vmatprep.subr.bf16.mxu1 %v9999_v58  ;;  %v10069_v58 = vld [vmem:[#allocation5 + $0x1e0] ss:$8 sps:$4 sm:$0xff]  }
 0x659   : > { %4542 = vmatpush1.bf16.msra.mxu1 %v9997_v59  ;;  %v10074_v59 = vld [vmem:[#allocation5 + $0x1f4] ss:$8 sps:$4 sm:$0xff]  }
 0x65a   : > { %4543 = vmatprep.subr.bf16.mxu1 %v10002_v49  ;;  %v10072_v49 = vld [vmem:[#allocation5 + $0x1f0] ss:$8 sps:$4 sm:$0xff]  }
 0x65d   : > { %4544 = vmatpush1.bf16.msra.mxu1 %v10000_v53  ;;  %v10077_v53 = vld [vmem:[#allocation5 + $0x4] ss:$8 sps:$4 sm:$0xff]  }
 0x65e   : > { %4545 = vmatprep.subr.bf16.mxu1 %v10005_v54 }
 0x661   : > { %4546 = vmatpush1.bf16.msra.mxu1 %v10003_v60 }
 0x662   : > { %4547 = vmatprep.subr.bf16.mxu1 %v10008_v61 }
 0x665   : > { %4548 = vmatpush1.bf16.msra.mxu1 %v10006_v62 }
 0x666   : > { %4549 = vmatprep.subr.bf16.mxu1 %v10011_v63 }
 0x669   : > { %4550 = vmatpush1.bf16.msra.mxu1 %v10009_v24 }
 0x66a   : > { %4551 = vmatprep.subr.bf16.mxu1 %v10014_v1  ;;  %v4572_v1 = vld [vmem:[%s12375_s10] sm:$0x3] }
 0x66d   : > { %4552 = vmatpush1.bf16.msra.mxu1 %v10012_v37  ;;  %v4577_v37 = vrot.slane %v4572_v1, %v11277_v20 }
 0x66e   : > { %4553 = vmatprep.subr.bf16.mxu1 %v10017_v38 }
 0x671   : > { %4554 = vmatpush1.bf16.msra.mxu1 %v10015_v25  ;;  %v4581_v25 = vrot.slane %v4572_v1, %v11284_v23  ;;  %v10108_v1 = vld [vmem:[#allocation5 + $0xb0] ss:$8 sps:$4 sm:$0xff]  }
 0x672   : > { %4555 = vmatprep.subr.bf16.mxu1 %v10020_v3 }
 0x675   : > { %4556 = vmatpush1.bf16.msra.mxu1 %v10018_v4 }
 0x676   : > { %4557 = vmatprep.subr.bf16.mxu1 %v10023_v34 }
 0x679   : > { %4558 = vmatpush1.bf16.msra.mxu1 %v10021_v5 }
 0x67a   : > { %4559 = vmatprep.subr.bf16.mxu1 %v10026_v8 }
 0x67d   : > { %4560 = vmatpush1.bf16.msra.mxu1 %v10024_v9 }
 0x67e   : > { %4854 = vmatprep.subr.bf16.mxu1 %v10029_v15 }
 0x680   : > { %4562 = vmatmul.mubr.bf16.vlgmr.msra.gmra.mrb[40].mxu1 %v4359_v13 }
 0x681   : > { %4855 = vmatpush1.bf16.msra.mxu1 %v10027_v41 }
 0x682   : > { %4856 = vmatprep.subr.bf16.mxu1 %v10032_v16 }
 0x685   : > { %4857 = vmatpush1.bf16.msra.mxu1 %v10030_v17 }
 0x686   : > { %4858 = vmatprep.subr.bf16.mxu1 %v10035_v18 }
 0x689   : > { %4859 = vmatpush1.bf16.msra.mxu1 %v10033_v29 }
 0x68a   : > { %4860 = vmatprep.subr.bf16.mxu1 %v10038_v19 }
 0x68d   : > { %4861 = vmatpush1.bf16.msra.mxu1 %v10036_v21 }
 0x68e   : > { %4862 = vmatprep.subr.bf16.mxu1 %v10041_v22 }
 0x691   : > { %4863 = vmatpush1.bf16.msra.mxu1 %v10039_v26 }
 0x692   : > { %4864 = vmatprep.subr.bf16.mxu1 %v10044_v32 }
 0x695   : > { %4865 = vmatpush1.bf16.msra.mxu1 %v10042_v27 }
 0x696   : > { %4866 = vmatprep.subr.bf16.mxu1 %v10047_v28 }
 0x699   : > { %4867 = vmatpush1.bf16.msra.mxu1 %v10045_v33 }
 0x69a   : > { %4868 = vmatprep.subr.bf16.mxu1 %v10050_v35 }
 0x69d   : > { %4869 = vmatpush1.bf16.msra.mxu1 %v10048_v0 }
 0x69e   : > { %4870 = vmatprep.subr.bf16.mxu1 %v10053_v36 }
 0x6a1   : > { %4871 = vmatpush1.bf16.msra.mxu1 %v10051_v40 }
 0x6a2   : > { %4872 = vmatprep.subr.bf16.mxu1 %v10056_v42 }
 0x6a5   : > { %4873 = vmatpush1.bf16.msra.mxu1 %v10054_v43 }
 0x6a6   : > { %4874 = vmatprep.subr.bf16.mxu1 %v10059_v39  ;;  %v10075_v39 = vld [vmem:[#allocation5] ss:$8 sps:$4 sm:$0xff]  }
 0x6a9   : > { %4875 = vmatpush1.bf16.msra.mxu1 %v10057_v44 }
 0x6aa   : > { %4876 = vmatprep.subr.bf16.mxu1 %v10062_v48  ;;  %v10081_v48 = vld [vmem:[#allocation5 + $0x20] ss:$8 sps:$4 sm:$0xff]  }
 0x6ad   : > { %4877 = vmatpush1.bf16.msra.mxu1 %v10060_v52  ;;  %v10084_v52 = vld [vmem:[#allocation5 + $0x30] ss:$8 sps:$4 sm:$0xff]  }
 0x6ae   : > { %4878 = vmatprep.subr.bf16.mxu1 %v10065_v7  ;;  %v10089_v7 = vld [vmem:[#allocation5 + $0x44] ss:$8 sps:$4 sm:$0xff]  }
 0x6b1   : > { %4879 = vmatpush1.bf16.msra.mxu1 %v10063_v14  ;;  %v10087_v14 = vld [vmem:[#allocation5 + $0x40] ss:$8 sps:$4 sm:$0xff]  }
 0x6b2   : > { %4880 = vmatprep.subr.bf16.mxu1 %v10068_v55  ;;  %v10092_v55 = vld [vmem:[#allocation5 + $0x54] ss:$8 sps:$4 sm:$0xff]  }
 0x6b5   : > { %4881 = vmatpush1.bf16.msra.mxu1 %v10066_v56  ;;  %v10090_v56 = vld [vmem:[#allocation5 + $0x50] ss:$8 sps:$4 sm:$0xff]  }
 0x6b6   : > { %4882 = vmatprep.subr.bf16.mxu1 %v10071_v57  ;;  %v10095_v57 = vld [vmem:[#allocation5 + $0x64] ss:$8 sps:$4 sm:$0xff]  }
 0x6b9   : > { %4883 = vmatpush1.bf16.msra.mxu1 %v10069_v58  ;;  %v10093_v58 = vld [vmem:[#allocation5 + $0x60] ss:$8 sps:$4 sm:$0xff]  }
 0x6ba   : > { %4884 = vmatprep.subr.bf16.mxu1 %v10074_v59  ;;  %v10098_v59 = vld [vmem:[#allocation5 + $0x74] ss:$8 sps:$4 sm:$0xff]  }
 0x6bd   : > { %4885 = vmatpush1.bf16.msra.mxu1 %v10072_v49  ;;  %v10096_v49 = vld [vmem:[#allocation5 + $0x70] ss:$8 sps:$4 sm:$0xff]  }
 0x6be   : > { %5055 = vmatprep.subr.bf16.mxu1 %v10077_v53  ;;  %v10101_v53 = vld [vmem:[#allocation5 + $0x84] ss:$8 sps:$4 sm:$0xff]  }
 0x6d3   : > { %v4112_v46 = vpop.f32.mrb[32].mxu1 }
 0x6d4   : > { %v4114_v45 = vpop.f32.mrb[33].mxu1 }
 0x6d5   : > { %v4116_v47 = vpop.f32.mrb[34].mxu1 }
 0x6d6   : > { %v4117_v50 = vpop.f32.mrb[35].mxu1  ;;  %v10083_v47 = vld [vmem:[#allocation5 + $0x24] ss:$8 sps:$4 sm:$0xff]  }
 0x6d7   : > { %v10086_v50 = vld [vmem:[#allocation5 + $0x34] ss:$8 sps:$4 sm:$0xff]  }
 0x713   : > { %v4313_v54 = vpop.f32.mrb[36].mxu1 }
 0x714   : > { %v4314_v60 = vadd.f32 %v4313_v54, %v4112_v46  ;;  %v4315_v61 = vpop.f32.mrb[37].mxu1  ;;  %v10080_v46 = vld [vmem:[#allocation5 + $0x14] ss:$8 sps:$4 sm:$0xff]   ;;  %v10099_v54 = vld [vmem:[#allocation5 + $0x80] ss:$8 sps:$4 sm:$0xff]  }
 0x715   : > { %v4316_v62 = vadd.f32 %v4315_v61, %v4114_v45  ;;  %v4317_v63 = vpop.f32.mrb[38].mxu1  ;;  %v10078_v45 = vld [vmem:[#allocation5 + $0x10] ss:$8 sps:$4 sm:$0xff]  }
 0x716   : > { %v4318_v24 = vpop.f32.mrb[39].mxu1  ;;  %v10102_v61 = vld [vmem:[#allocation5 + $0x90] ss:$8 sps:$4 sm:$0xff]   ;;  %v10105_v63 = vld [vmem:[#allocation5 + $0xa0] ss:$8 sps:$4 sm:$0xff]  }
 0x717   : > { %v10110_v24 = vld [vmem:[#allocation5 + $0xb4] ss:$8 sps:$4 sm:$0xff]  }
 0x753   : > { %v4563_v38 = vpop.f32.mrb[40].mxu1 }
 0x754   : > { %v4570_v3 = vadd.f32 %v4563_v38, %v4314_v60  ;;  %v4565_v4 = vpop.f32.mrb[41].mxu1  ;;  %v10104_v60 = vld [vmem:[#allocation5 + $0x94] ss:$8 sps:$4 sm:$0xff]   ;;  %v10111_v38 = vld [vmem:[#allocation5 + $0xc0] ss:$8 sps:$4 sm:$0xff]  }
 0x755   : > { %v4571_v34 = vadd.f32 %v4565_v4, %v4316_v62  ;;  %v4567_v5 = vpop.f32.mrb[42].mxu1  ;;  %v10107_v62 = vld [vmem:[#allocation5 + $0xa4] ss:$8 sps:$4 sm:$0xff]  }
 0x756   : > { %v4584_v6 = vadd.f32 %v4577_v37, %v4570_v3  ;;  %v4568_v8 = vpop.f32.mrb[43].mxu1  ;;  %v10113_v37 = vld [vmem:[#allocation5 + $0xc4] ss:$8 sps:$4 sm:$0xff]   ;;  %v10114_v3 = vld [vmem:[#allocation5 + $0xd0] ss:$8 sps:$4 sm:$0xff]  }
 0x757   : > { %v4585_v9 = vadd.f32 %v4581_v25, %v4571_v34  ;;  %v10116_v25 = vld [vmem:[#allocation5 + $0xd4] ss:$8 sps:$4 sm:$0xff]   ;;  %v10119_v4 = vld [vmem:[#allocation5 + $0xe4] ss:$8 sps:$4 sm:$0xff]   ;;  %v10117_v34 = vld [vmem:[#allocation5 + $0xe0] ss:$8 sps:$4 sm:$0xff]  }
 0x758   : > { %v4586_v11 = vmax.f32 %v4584_v6, 0.0  ;;  %v10122_v5 = vld [vmem:[#allocation5 + $0xf4] ss:$8 sps:$4 sm:$0xff]   ;;  %v10120_v6 = vld [vmem:[#allocation5 + $0xf0] ss:$8 sps:$4 sm:$0xff]  }
 0x759   : > { %v4587_v12 = vmax.f32 %v4585_v9, 0.0  ;;  %v10125_v8 = vld [vmem:[#allocation5 + $0x204] ss:$8 sps:$4 sm:$0xff]   ;;  %v10123_v9 = vld [vmem:[#allocation5 + $0x200] ss:$8 sps:$4 sm:$0xff]  }
 0x75a   : > { %v4588_v13 = vpack.c.bf16 %v4586_v11, %v4586_v11  ;;  %v10128_v11 = vld [vmem:[#allocation5 + $0x214] ss:$8 sps:$4 sm:$0xff]  }
 0x75b   : > { %v4589_v41 = vpack.c.bf16 %v4587_v12, %v4587_v12 }
 0x75c   : > { %v4591_v15 = vshrl.u32 %v4588_v13, 16  ;;  %v4594_v18 = vshll.u32 %v4588_v13, 16  ;;  %v10126_v13 = vld [vmem:[#allocation5 + $0x210] ss:$8 sps:$4 sm:$0xff]  }
 0x75d   : > { %v4598_v16 = vshrl.u32 %v4589_v41, 16  ;;  %v4601_v19 = vshll.u32 %v4589_v41, 16  ;;  %v10131_v41 = vld [vmem:[#allocation5 + $0x224] ss:$8 sps:$4 sm:$0xff]  }
 0x75e   : > { %v4593_v17 = vrot.slane %v4591_v15, 7  ;;  %v10129_v15 = vld [vmem:[#allocation5 + $0x220] ss:$8 sps:$4 sm:$0xff]  }
 0x75f   : > { %v4600_v29 = vrot.slane %v4598_v16, 7  ;;  %v10134_v16 = vld [vmem:[#allocation5 + $0x234] ss:$8 sps:$4 sm:$0xff]  }
 0x760   : > { %v4596_v21 = vor.u32 %v4594_v18, %v4593_v17  ;;  %v10132_v17 = vld [vmem:[#allocation5 + $0x230] ss:$8 sps:$4 sm:$0xff]   ;;  %v10137_v18 = vld [vmem:[#allocation5 + $0x244] ss:$8 sps:$4 sm:$0xff]  }
 0x761   : > { %v4603_v22 = vor.u32 %v4601_v19, %v4600_v29  ;;  %v10135_v29 = vld [vmem:[#allocation5 + $0x240] ss:$8 sps:$4 sm:$0xff]   ;;  %v10140_v19 = vld [vmem:[#allocation5 + $0x254] ss:$8 sps:$4 sm:$0xff]  }
 0x762   : > { %v4606_v26 = vsel %vm11367_vm9, 0, %v4596_v21  ;;  %v10138_v21 = vld [vmem:[#allocation5 + $0x250] ss:$8 sps:$4 sm:$0xff]  }
 0x763   : > { %v12190_v32 = vsel %vm4610_vm14, %v4606_v26, 0  ;;  %v4607_v27 = vsel %vm11367_vm9, 0, %v4603_v22  ;;  %v10143_v22 = vld [vmem:[#allocation5 + $0x264] ss:$8 sps:$4 sm:$0xff]   ;;  %v10141_v26 = vld [vmem:[#allocation5 + $0x260] ss:$8 sps:$4 sm:$0xff]  }
 0x764   : > { %v12194_v28 = vsel %vm4610_vm14, %v4607_v27, 0  ;;  %v4681_v33 = vshll.u32 %v12190_v32, 16  ;;  %v4679_v42 = vshrl.u32 %v12190_v32, 16  ;;  %v10146_v27 = vld [vmem:[#allocation5 + $0x274] ss:$8 sps:$4 sm:$0xff]  }
 0x765   : > { %v4688_v35 = vshll.u32 %v12194_v28, 16  ;;  %v4686_v36 = vshrl.u32 %v12194_v28, 16  ;;  %v5132_v12 = vrot.slane %v12194_v28, 1 }
 0x766   : > { %v4683_v0 = vrot.slane %v4681_v33, 1  ;;  %v10149_v33 = vld [vmem:[#allocation5 + $0x284] ss:$8 sps:$4 sm:$0xff]  }
 0x767   : > { %v4690_v40 = vrot.slane %v4688_v35, 1  ;;  %v10147_v35 = vld [vmem:[#allocation5 + $0x280] ss:$8 sps:$4 sm:$0xff]  }
 0x768   : > { %v4684_v44 = vor.u32 %v4683_v0, %v4679_v42  ;;  %v10152_v0 = vld [vmem:[#allocation5 + $0x294] ss:$8 sps:$4 sm:$0xff]   ;;  %v10153_v42 = vld [vmem:[#allocation5 + $0x2a0] ss:$8 sps:$4 sm:$0xff]  }
 0x769   : > { %v4691_v43 = vor.u32 %v4690_v40, %v4686_v36  ;;  %v10150_v36 = vld [vmem:[#allocation5 + $0x290] ss:$8 sps:$4 sm:$0xff]   ;;  %v10155_v40 = vld [vmem:[#allocation5 + $0x2a4] ss:$8 sps:$4 sm:$0xff]  }
 0x76b   : > { %4886 = vmatprep.mubr.bf16.mxu1 %v4691_v43  ;;  %v10158_v43 = vld [vmem:[#allocation5 + $0x2b4] ss:$8 sps:$4 sm:$0xff]  }
 0x76c   : > { %4887 = vmatmul.mubr.bf16.vlgmr.msra.gmra.mrb[44].mxu1 %v4684_v44  ;;  %v10161_v44 = vld [vmem:[#allocation5 + $0x2c4] ss:$8 sps:$4 sm:$0xff]  }
 0x76d   : > { %5056 = vmatpush1.bf16.msra.mxu1 %v10075_v39  ;;  %5087 = vmatprep.mubr.bf16.mxu1 %v12194_v28  ;;  %v10144_v28 = vld [vmem:[#allocation5 + $0x270] ss:$8 sps:$4 sm:$0xff]  }
 0x76e   : > { %5057 = vmatprep.subr.bf16.mxu1 %v10080_v46  ;;  %v10156_v39 = vld [vmem:[#allocation5 + $0x2b0] ss:$8 sps:$4 sm:$0xff]   ;;  %v10159_v46 = vld [vmem:[#allocation5 + $0x2c0] ss:$8 sps:$4 sm:$0xff]  }
 0x771   : > { %5058 = vmatpush1.bf16.msra.mxu1 %v10078_v45  ;;  %v10164_v45 = vld [vmem:[#allocation5 + $0x2d4] ss:$8 sps:$4 sm:$0xff]  }
 0x772   : > { %5059 = vmatprep.subr.bf16.mxu1 %v10083_v47  ;;  %v10162_v47 = vld [vmem:[#allocation5 + $0x2d0] ss:$8 sps:$4 sm:$0xff]  }
 0x775   : > { %5060 = vmatpush1.bf16.msra.mxu1 %v10081_v48  ;;  %v10167_v48 = vld [vmem:[#allocation5 + $0x2e4] ss:$8 sps:$4 sm:$0xff]  }
 0x776   : > { %5061 = vmatprep.subr.bf16.mxu1 %v10086_v50  ;;  %v10165_v50 = vld [vmem:[#allocation5 + $0x2e0] ss:$8 sps:$4 sm:$0xff]  }
 0x779   : > { %5062 = vmatpush1.bf16.msra.mxu1 %v10084_v52  ;;  %v10170_v52 = vld [vmem:[#allocation5 + $0x2f4] ss:$8 sps:$4 sm:$0xff]  }
 0x77a   : > { %5063 = vmatprep.subr.bf16.mxu1 %v10089_v7  ;;  %v10168_v7 = vld [vmem:[#allocation5 + $0x2f0] ss:$8 sps:$4 sm:$0xff]  }
 0x77d   : > { %5064 = vmatpush1.bf16.msra.mxu1 %v10087_v14  ;;  %v5131_v14 = vrot.slane %v12190_v32, 1 }
 0x77e   : > { %5065 = vmatprep.subr.bf16.mxu1 %v10092_v55 }
 0x781   : > { %5066 = vmatpush1.bf16.msra.mxu1 %v10090_v56 }
 0x782   : > { %5067 = vmatprep.subr.bf16.mxu1 %v10095_v57 }
 0x785   : > { %5068 = vmatpush1.bf16.msra.mxu1 %v10093_v58 }
 0x786   : > { %5069 = vmatprep.subr.bf16.mxu1 %v10098_v59  ;;  %v10186_v59 = vld [vmem:[#allocation7] ss:$8 sps:$4 sm:$0xff]  }
 0x789   : > { %5070 = vmatpush1.bf16.msra.mxu1 %v10096_v49  ;;  %v10188_v49 = vld [vmem:[#allocation7 + $0x4] ss:$8 sps:$4 sm:$0xff]  }
 0x78a   : > { %5071 = vmatprep.subr.bf16.mxu1 %v10101_v53  ;;  %v10192_v53 = vld [vmem:[#allocation7 + $0x10] ss:$8 sps:$4 sm:$0xff]  }
 0x78d   : > { %5072 = vmatpush1.bf16.msra.mxu1 %v10099_v54  ;;  %v10194_v54 = vld [vmem:[#allocation7 + $0x14] ss:$8 sps:$4 sm:$0xff]  }
 0x78e   : > { %5073 = vmatprep.subr.bf16.mxu1 %v10104_v60  ;;  %v10198_v60 = vld [vmem:[#allocation7 + $0x20] ss:$8 sps:$4 sm:$0xff]  }
 0x791   : > { %5074 = vmatpush1.bf16.msra.mxu1 %v10102_v61  ;;  %v10200_v61 = vld [vmem:[#allocation7 + $0x24] ss:$8 sps:$4 sm:$0xff]  }
 0x792   : > { %5075 = vmatprep.subr.bf16.mxu1 %v10107_v62  ;;  %v10204_v62 = vld [vmem:[#allocation7 + $0x30] ss:$8 sps:$4 sm:$0xff]  }
 0x795   : > { %5076 = vmatpush1.bf16.msra.mxu1 %v10105_v63  ;;  %v10206_v63 = vld [vmem:[#allocation7 + $0x34] ss:$8 sps:$4 sm:$0xff]  }
 0x796   : > { %5077 = vmatprep.subr.bf16.mxu1 %v10110_v24  ;;  %v10212_v24 = vld [vmem:[#allocation7 + $0x44] ss:$8 sps:$4 sm:$0xff]  }
 0x799   : > { %5078 = vmatpush1.bf16.msra.mxu1 %v10108_v1  ;;  %v10216_v1 = vld [vmem:[#allocation7 + $0x50] ss:$8 sps:$4 sm:$0xff]  }
 0x79a   : > { %5079 = vmatprep.subr.bf16.mxu1 %v10113_v37  ;;  %v10218_v37 = vld [vmem:[#allocation7 + $0x54] ss:$8 sps:$4 sm:$0xff]  }
 0x79d   : > { %5080 = vmatpush1.bf16.msra.mxu1 %v10111_v38  ;;  %v10222_v38 = vld [vmem:[#allocation7 + $0x60] ss:$8 sps:$4 sm:$0xff]  }
 0x79e   : > { %5081 = vmatprep.subr.bf16.mxu1 %v10116_v25  ;;  %v10224_v25 = vld [vmem:[#allocation7 + $0x64] ss:$8 sps:$4 sm:$0xff]  }
 0x7a1   : > { %5082 = vmatpush1.bf16.msra.mxu1 %v10114_v3 }
 0x7a2   : > { %5083 = vmatprep.subr.bf16.mxu1 %v10119_v4  ;;  %v10228_v4 = vld [vmem:[#allocation7 + $0x70] ss:$8 sps:$4 sm:$0xff]  }
 0x7a5   : > { %5084 = vmatpush1.bf16.msra.mxu1 %v10117_v34  ;;  %v10230_v34 = vld [vmem:[#allocation7 + $0x74] ss:$8 sps:$4 sm:$0xff]  }
 0x7a6   : > { %5085 = vmatprep.subr.bf16.mxu1 %v10122_v5 }
 0x7a9   : > { %5086 = vmatpush1.bf16.msra.mxu1 %v10120_v6 }
 0x7aa   : > { %5295 = vmatprep.subr.bf16.mxu1 %v10125_v8 }
 0x7ac   : > { %5088 = vmatmul.mubr.bf16.vlgmr.msra.gmra.mrb[48].mxu1 %v12190_v32  ;;  %v10210_v32 = vld [vmem:[#allocation7 + $0x40] ss:$8 sps:$4 sm:$0xff]  }
 0x7ad   : > { %5296 = vmatpush1.bf16.msra.mxu1 %v10123_v9  ;;  %5327 = vmatprep.mubr.bf16.mxu1 %v5132_v12  ;;  %v10234_v12 = vld [vmem:[#allocation7 + $0x80] ss:$8 sps:$4 sm:$0xff]  }
 0x7ae   : > { %5297 = vmatprep.subr.bf16.mxu1 %v10128_v11 }
 0x7b1   : > { %5298 = vmatpush1.bf16.msra.mxu1 %v10126_v13  ;;  %v10236_v13 = vld [vmem:[#allocation7 + $0x84] ss:$8 sps:$4 sm:$0xff]  }
 0x7b2   : > { %5299 = vmatprep.subr.bf16.mxu1 %v10131_v41  ;;  %v10240_v41 = vld [vmem:[#allocation7 + $0x90] ss:$8 sps:$4 sm:$0xff]  }
 0x7b5   : > { %5300 = vmatpush1.bf16.msra.mxu1 %v10129_v15  ;;  %v10242_v15 = vld [vmem:[#allocation7 + $0x94] ss:$8 sps:$4 sm:$0xff]  }
 0x7b6   : > { %5301 = vmatprep.subr.bf16.mxu1 %v10134_v16  ;;  %v10246_v16 = vld [vmem:[#allocation7 + $0xa0] ss:$8 sps:$4 sm:$0xff]  }
 0x7b9   : > { %5302 = vmatpush1.bf16.msra.mxu1 %v10132_v17  ;;  %v10248_v17 = vld [vmem:[#allocation7 + $0xa4] ss:$8 sps:$4 sm:$0xff]  }
 0x7ba   : > { %5303 = vmatprep.subr.bf16.mxu1 %v10137_v18  ;;  %v5338_v18 = vld [vmem:[%s12376_s11] sm:$0x3] }
 0x7bd   : > { %5304 = vmatpush1.bf16.msra.mxu1 %v10135_v29  ;;  %v5343_v29 = vrot.slane %v5338_v18, %v11277_v20 }
 0x7be   : > { %5305 = vmatprep.subr.bf16.mxu1 %v10140_v19 }
 0x7c1   : > { %5306 = vmatpush1.bf16.msra.mxu1 %v10138_v21  ;;  %v5347_v21 = vrot.slane %v5338_v18, %v11284_v23  ;;  %v10273_v18 = vld [vmem:[#allocation7 + $0xf0] ss:$8 sps:$4 sm:$0xff]  }
 0x7c2   : > { %5307 = vmatprep.subr.bf16.mxu1 %v10143_v22 }
 0x7c5   : > { %5308 = vmatpush1.bf16.msra.mxu1 %v10141_v26 }
 0x7c6   : > { %5309 = vmatprep.subr.bf16.mxu1 %v10146_v27 }
 0x7c9   : > { %5310 = vmatpush1.bf16.msra.mxu1 %v10144_v28 }
 0x7ca   : > { %5311 = vmatprep.subr.bf16.mxu1 %v10149_v33 }
 0x7cd   : > { %5312 = vmatpush1.bf16.msra.mxu1 %v10147_v35 }
 0x7ce   : > { %5313 = vmatprep.subr.bf16.mxu1 %v10152_v0 }
 0x7d1   : > { %5314 = vmatpush1.bf16.msra.mxu1 %v10150_v36 }
 0x7d2   : > { %5315 = vmatprep.subr.bf16.mxu1 %v10155_v40 }
 0x7d5   : > { %5316 = vmatpush1.bf16.msra.mxu1 %v10153_v42 }
 0x7d6   : > { %5317 = vmatprep.subr.bf16.mxu1 %v10158_v43 }
 0x7d9   : > { %5318 = vmatpush1.bf16.msra.mxu1 %v10156_v39 }
 0x7da   : > { %5319 = vmatprep.subr.bf16.mxu1 %v10161_v44  ;;  %v10173_v44 = vld [vmem:[#allocation7 + $0x104] ss:$8 sps:$4 sm:$0xff]  }
 0x7dd   : > { %5320 = vmatpush1.bf16.msra.mxu1 %v10159_v46  ;;  %v10171_v46 = vld [vmem:[#allocation7 + $0x100] ss:$8 sps:$4 sm:$0xff]  }
 0x7de   : > { %5321 = vmatprep.subr.bf16.mxu1 %v10164_v45  ;;  %v10176_v45 = vld [vmem:[#allocation7 + $0x114] ss:$8 sps:$4 sm:$0xff]  }
 0x7e1   : > { %5322 = vmatpush1.bf16.msra.mxu1 %v10162_v47  ;;  %v10174_v47 = vld [vmem:[#allocation7 + $0x110] ss:$8 sps:$4 sm:$0xff]  }
 0x7e2   : > { %5323 = vmatprep.subr.bf16.mxu1 %v10167_v48  ;;  %v10179_v48 = vld [vmem:[#allocation7 + $0x124] ss:$8 sps:$4 sm:$0xff]  }
 0x7e5   : > { %5324 = vmatpush1.bf16.msra.mxu1 %v10165_v50  ;;  %v10177_v50 = vld [vmem:[#allocation7 + $0x120] ss:$8 sps:$4 sm:$0xff]  }
 0x7e6   : > { %5325 = vmatprep.subr.bf16.mxu1 %v10170_v52  ;;  %v10182_v52 = vld [vmem:[#allocation7 + $0x134] ss:$8 sps:$4 sm:$0xff]  }
 0x7e9   : > { %5326 = vmatpush1.bf16.msra.mxu1 %v10168_v7  ;;  %v10180_v7 = vld [vmem:[#allocation7 + $0x130] ss:$8 sps:$4 sm:$0xff]  }
 0x7ea   : > { %5904 = vmatprep.subr.bf16.mxu1 %v10188_v49  ;;  %v10203_v49 = vld [vmem:[#allocation7 + $0x174] ss:$8 sps:$4 sm:$0xff]  }
 0x7ec   : > { %5328 = vmatmul.mubr.bf16.vlgmr.msra.gmra.mrb[52].mxu1 %v5131_v14  ;;  %v10185_v14 = vld [vmem:[#allocation7 + $0x144] ss:$8 sps:$4 sm:$0xff]  }
 0x7ed   : > { %5905 = vmatpush1.bf16.msra.mxu1 %v10186_v59  ;;  %v10195_v59 = vld [vmem:[#allocation7 + $0x160] ss:$8 sps:$4 sm:$0xff]  }
 0x7ee   : > { %5906 = vmatprep.subr.bf16.mxu1 %v10194_v54  ;;  %v10209_v54 = vld [vmem:[#allocation7 + $0x184] ss:$8 sps:$4 sm:$0xff]  }
 0x7f1   : > { %5907 = vmatpush1.bf16.msra.mxu1 %v10192_v53  ;;  %v10201_v53 = vld [vmem:[#allocation7 + $0x170] ss:$8 sps:$4 sm:$0xff]  }
 0x7f2   : > { %5908 = vmatprep.subr.bf16.mxu1 %v10200_v61  ;;  %v10215_v61 = vld [vmem:[#allocation7 + $0x194] ss:$8 sps:$4 sm:$0xff]  }
 0x7f5   : > { %5909 = vmatpush1.bf16.msra.mxu1 %v10198_v60  ;;  %v10207_v60 = vld [vmem:[#allocation7 + $0x180] ss:$8 sps:$4 sm:$0xff]  }
 0x7f6   : > { %5910 = vmatprep.subr.bf16.mxu1 %v10206_v63  ;;  %v10221_v63 = vld [vmem:[#allocation7 + $0x1a4] ss:$8 sps:$4 sm:$0xff]  }
 0x7f9   : > { %5911 = vmatpush1.bf16.msra.mxu1 %v10204_v62  ;;  %v10213_v62 = vld [vmem:[#allocation7 + $0x190] ss:$8 sps:$4 sm:$0xff]  }
 0x7fa   : > { %5912 = vmatprep.subr.bf16.mxu1 %v10212_v24  ;;  %v10227_v24 = vld [vmem:[#allocation7 + $0x1b4] ss:$8 sps:$4 sm:$0xff]  }
 0x7fd   : > { %5913 = vmatpush1.bf16.msra.mxu1 %v10210_v32  ;;  %v10219_v32 = vld [vmem:[#allocation7 + $0x1a0] ss:$8 sps:$4 sm:$0xff]  }
 0x7fe   : > { %5914 = vmatprep.subr.bf16.mxu1 %v10218_v37  ;;  %v10233_v37 = vld [vmem:[#allocation7 + $0x1c4] ss:$8 sps:$4 sm:$0xff]  }
 0x801   : > { %5915 = vmatpush1.bf16.msra.mxu1 %v10216_v1  ;;  %v10225_v1 = vld [vmem:[#allocation7 + $0x1b0] ss:$8 sps:$4 sm:$0xff]  }
 0x802   : > { %5916 = vmatprep.subr.bf16.mxu1 %v10224_v25  ;;  %v10239_v25 = vld [vmem:[#allocation7 + $0x1d4] ss:$8 sps:$4 sm:$0xff]  }
 0x805   : > { %5917 = vmatpush1.bf16.msra.mxu1 %v10222_v38  ;;  %v10231_v38 = vld [vmem:[#allocation7 + $0x1c0] ss:$8 sps:$4 sm:$0xff]  }
 0x806   : > { %5918 = vmatprep.subr.bf16.mxu1 %v10230_v34  ;;  %v10243_v34 = vld [vmem:[#allocation7 + $0x1e0] ss:$8 sps:$4 sm:$0xff]  }
 0x809   : > { %5919 = vmatpush1.bf16.msra.mxu1 %v10228_v4  ;;  %v10245_v4 = vld [vmem:[#allocation7 + $0x1e4] ss:$8 sps:$4 sm:$0xff]  }
 0x80a   : > { %5920 = vmatprep.subr.bf16.mxu1 %v10236_v13  ;;  %v10255_v13 = vld [vmem:[#allocation7 + $0xc0] ss:$8 sps:$4 sm:$0xff]  }
 0x80d   : > { %5921 = vmatpush1.bf16.msra.mxu1 %v10234_v12  ;;  %v10260_v12 = vld [vmem:[#allocation7 + $0x204] ss:$8 sps:$4 sm:$0xff]  }
 0x80e   : > { %5922 = vmatprep.subr.bf16.mxu1 %v10242_v15  ;;  %v10261_v15 = vld [vmem:[#allocation7 + $0xd0] ss:$8 sps:$4 sm:$0xff]  }
 0x811   : > { %5923 = vmatpush1.bf16.msra.mxu1 %v10240_v41  ;;  %v10263_v41 = vld [vmem:[#allocation7 + $0xd4] ss:$8 sps:$4 sm:$0xff]  }
 0x812   : > { %5924 = vmatprep.subr.bf16.mxu1 %v10248_v17  ;;  %v10267_v17 = vld [vmem:[#allocation7 + $0xe0] ss:$8 sps:$4 sm:$0xff]  }
 0x815   : > { %5925 = vmatpush1.bf16.msra.mxu1 %v10246_v16  ;;  %v10269_v16 = vld [vmem:[#allocation7 + $0xe4] ss:$8 sps:$4 sm:$0xff]  }
 0x83f   : > { %v4888_v55 = vpop.f32.mrb[44].mxu1 }
 0x840   : > { %v4890_v56 = vpop.f32.mrb[45].mxu1 }
 0x841   : > { %v4892_v57 = vpop.f32.mrb[46].mxu1 }
 0x842   : > { %v4893_v58 = vpop.f32.mrb[47].mxu1  ;;  %v10189_v57 = vld [vmem:[#allocation7 + $0x150] ss:$8 sps:$4 sm:$0xff]  }
 0x843   : > { %v10197_v58 = vld [vmem:[#allocation7 + $0x164] ss:$8 sps:$4 sm:$0xff]  }
 0x87f   : > { %v5089_v3 = vpop.f32.mrb[48].mxu1 }
 0x880   : > { %v5090_v5 = vadd.f32 %v5089_v3, %v4888_v55  ;;  %v5091_v6 = vpop.f32.mrb[49].mxu1  ;;  %v10183_v55 = vld [vmem:[#allocation7 + $0x140] ss:$8 sps:$4 sm:$0xff]   ;;  %v10237_v3 = vld [vmem:[#allocation7 + $0x1d0] ss:$8 sps:$4 sm:$0xff]  }
 0x881   : > { %v5092_v8 = vadd.f32 %v5091_v6, %v4890_v56  ;;  %v5093_v9 = vpop.f32.mrb[50].mxu1  ;;  %v10191_v56 = vld [vmem:[#allocation7 + $0x154] ss:$8 sps:$4 sm:$0xff]  }
 0x882   : > { %v5094_v11 = vpop.f32.mrb[51].mxu1  ;;  %v10254_v6 = vld [vmem:[#allocation7 + $0xb4] ss:$8 sps:$4 sm:$0xff]   ;;  %v10252_v9 = vld [vmem:[#allocation7 + $0xb0] ss:$8 sps:$4 sm:$0xff]  }
 0x883   : > { %5926 = vmatprep.subr.bf16.mxu1 %v10254_v6  ;;  %v10257_v11 = vld [vmem:[#allocation7 + $0xc4] ss:$8 sps:$4 sm:$0xff]  }
 0x884   : > { %5927 = vmatpush1.bf16.msra.mxu1 %v10252_v9  ;;  %v10299_v6 = vld [vmem:[#allocation7 + $0x2a4] ss:$8 sps:$4 sm:$0xff]   ;;  %v10302_v9 = vld [vmem:[#allocation7 + $0x2b4] ss:$8 sps:$4 sm:$0xff]  }
 0x885   : > { %5928 = vmatprep.subr.bf16.mxu1 %v10257_v11  ;;  %v10300_v11 = vld [vmem:[#allocation7 + $0x2b0] ss:$8 sps:$4 sm:$0xff]  }
 0x888   : > { %5929 = vmatpush1.bf16.msra.mxu1 %v10255_v13  ;;  %v10303_v13 = vld [vmem:[#allocation7 + $0x2c0] ss:$8 sps:$4 sm:$0xff]  }
 0x889   : > { %5930 = vmatprep.subr.bf16.mxu1 %v10263_v41  ;;  %v10308_v41 = vld [vmem:[#allocation7 + $0x2d4] ss:$8 sps:$4 sm:$0xff]  }
 0x88c   : > { %5931 = vmatpush1.bf16.msra.mxu1 %v10261_v15  ;;  %v10306_v15 = vld [vmem:[#allocation7 + $0x2d0] ss:$8 sps:$4 sm:$0xff]  }
 0x88d   : > { %5932 = vmatprep.subr.bf16.mxu1 %v10269_v16  ;;  %v10311_v16 = vld [vmem:[#allocation7 + $0x2e4] ss:$8 sps:$4 sm:$0xff]  }
 0x890   : > { %5933 = vmatpush1.bf16.msra.mxu1 %v10267_v17  ;;  %v10309_v17 = vld [vmem:[#allocation7 + $0x2e0] ss:$8 sps:$4 sm:$0xff]  }
 0x8bf   : > { %v5329_v19 = vpop.f32.mrb[52].mxu1 }
 0x8c0   : > { %v5336_v22 = vadd.f32 %v5329_v19, %v5090_v5  ;;  %v5331_v26 = vpop.f32.mrb[53].mxu1  ;;  %v10251_v5 = vld [vmem:[#allocation7 + $0x1f4] ss:$8 sps:$4 sm:$0xff]  }
 0x8c1   : > { %v5337_v27 = vadd.f32 %v5331_v26, %v5092_v8  ;;  %v5333_v28 = vpop.f32.mrb[54].mxu1  ;;  %v10249_v8 = vld [vmem:[#allocation7 + $0x1f0] ss:$8 sps:$4 sm:$0xff]  }
 0x8c2   : > { %v5350_v33 = vadd.f32 %v5343_v29, %v5336_v22  ;;  %v5334_v35 = vpop.f32.mrb[55].mxu1  ;;  %v10275_v29 = vld [vmem:[#allocation7 + $0xf4] ss:$8 sps:$4 sm:$0xff]  }
 0x8c3   : > { %v5351_v0 = vadd.f32 %v5347_v21, %v5337_v27  ;;  %5934 = vmatprep.subr.bf16.mxu1 %v10275_v29  ;;  %v10258_v27 = vld [vmem:[#allocation7 + $0x200] ss:$8 sps:$4 sm:$0xff]   ;;  %v10266_v35 = vld [vmem:[#allocation7 + $0x214] ss:$8 sps:$4 sm:$0xff]  }
 0x8c4   : > { %v5352_v36 = vmax.f32 %v5350_v33, 0.0  ;;  %5935 = vmatpush1.bf16.msra.mxu1 %v10273_v18  ;;  %v10314_v29 = vld [vmem:[#allocation7 + $0x2f4] ss:$8 sps:$4 sm:$0xff]  }
 0x8c5   : > { %v5353_v40 = vmax.f32 %v5351_v0, 0.0  ;;  %v10264_v0 = vld [vmem:[#allocation7 + $0x210] ss:$8 sps:$4 sm:$0xff]  }
 0x8c6   : > { %v5354_v42 = vpack.c.bf16 %v5352_v36, %v5352_v36  ;;  %v10272_v36 = vld [vmem:[#allocation7 + $0x224] ss:$8 sps:$4 sm:$0xff]  }
 0x8c7   : > { %v5355_v43 = vpack.c.bf16 %v5353_v40, %v5353_v40 }
 0x8c8   : > { %v5360_v39 = vsel %vm3845_vm11, %v5354_v42, 0 }
 0x8c9   : > { %8835 = vmatprep.subr.msk.bf16.mxu0 %vm3845_vm11, %v5355_v43 }
 0x8ca   : > { %5366 = vmatpush1.bf16.msra.mxu0 %v5360_v39 }
 0x8cb   : > { %8837 = vmatprep.subr.msk.bf16.mxu0 %vm3845_vm11, %v5355_v43 }
 0x8cd   : > { %8836 = vmatmul.mubr.msk.bf16.vlgmr.msra.gmra.mrb[12].mxu0 %vm5356_vm15, %v11875_v31 }
 0x8ce   : > { %5411 = vmatpush1.bf16.msra.mxu0 %v5360_v39  ;;  %5442 = vmatprep.mubr.bf16.mxu0 %v10828_v51 }
 0x8cf   : > { %5703 = vmatprep.subr.bf16.mxu0 %v10173_v44  ;;  %v10270_v44 = vld [vmem:[#allocation7 + $0x220] ss:$8 sps:$4 sm:$0xff]  }
 0x8d5   : > { %8838 = vmatmul.mubr.msk.bf16.vlgmr.msra.gmra.mrb[16].mxu0 %vm5356_vm15, %v11884_v2 }
 0x8d6   : > { %5704 = vmatpush1.bf16.msra.mxu0 %v10171_v46 }
 0x8d7   : > { %5705 = vmatprep.subr.bf16.mxu0 %v10176_v45 }
 0x8da   : > { %5706 = vmatpush1.bf16.msra.mxu0 %v10174_v47 }
 0x8db   : > { %5707 = vmatprep.subr.bf16.mxu0 %v10179_v48  ;;  %v10278_v48 = vld [vmem:[#allocation7 + $0x234] ss:$8 sps:$4 sm:$0xff]  }
 0x8de   : > { %5708 = vmatpush1.bf16.msra.mxu0 %v10177_v50 }
 0x8df   : > { %5709 = vmatprep.subr.bf16.mxu0 %v10182_v52 }
 0x8e2   : > { %5710 = vmatpush1.bf16.msra.mxu0 %v10180_v7 }
 0x8e3   : > { %5711 = vmatprep.subr.bf16.mxu0 %v10185_v14 }
 0x8e6   : > { %5712 = vmatpush1.bf16.msra.mxu0 %v10183_v55 }
 0x8e7   : > { %5713 = vmatprep.subr.bf16.mxu0 %v10191_v56  ;;  %v10276_v56 = vld [vmem:[#allocation7 + $0x230] ss:$8 sps:$4 sm:$0xff]  }
 0x8ea   : > { %5714 = vmatpush1.bf16.msra.mxu0 %v10189_v57 }
 0x8eb   : > { %5715 = vmatprep.subr.bf16.mxu0 %v10197_v58  ;;  %v10281_v58 = vld [vmem:[#allocation7 + $0x244] ss:$8 sps:$4 sm:$0xff]  }
 0x8ee   : > { %5716 = vmatpush1.bf16.msra.mxu0 %v10195_v59 }
 0x8ef   : > { %5717 = vmatprep.subr.bf16.mxu0 %v10203_v49 }
 0x8f2   : > { %5718 = vmatpush1.bf16.msra.mxu0 %v10201_v53 }
 0x8f3   : > { %5719 = vmatprep.subr.bf16.mxu0 %v10209_v54  ;;  %v10279_v54 = vld [vmem:[#allocation7 + $0x240] ss:$8 sps:$4 sm:$0xff]  }
 0x8f6   : > { %5720 = vmatpush1.bf16.msra.mxu0 %v10207_v60 }
 0x8f7   : > { %5721 = vmatprep.subr.bf16.mxu0 %v10215_v61 }
 0x8fa   : > { %5722 = vmatpush1.bf16.msra.mxu0 %v10213_v62  ;;  %v10284_v62 = vld [vmem:[#allocation7 + $0x254] ss:$8 sps:$4 sm:$0xff]  }
 0x8fb   : > { %5723 = vmatprep.subr.bf16.mxu0 %v10221_v63 }
 0x8fe   : > { %5724 = vmatpush1.bf16.msra.mxu0 %v10219_v32  ;;  %v10282_v32 = vld [vmem:[#allocation7 + $0x250] ss:$8 sps:$4 sm:$0xff]  }
 0x8ff   : > { %5725 = vmatprep.subr.bf16.mxu0 %v10227_v24  ;;  %v10287_v24 = vld [vmem:[#allocation7 + $0x264] ss:$8 sps:$4 sm:$0xff]  }
 0x902   : > { %5726 = vmatpush1.bf16.msra.mxu0 %v10225_v1 }
 0x903   : > { %5727 = vmatprep.subr.bf16.mxu0 %v10233_v37  ;;  %v10285_v37 = vld [vmem:[#allocation7 + $0x260] ss:$8 sps:$4 sm:$0xff]  }
 0x906   : > { %5728 = vmatpush1.bf16.msra.mxu0 %v10231_v38  ;;  %v10290_v38 = vld [vmem:[#allocation7 + $0x274] ss:$8 sps:$4 sm:$0xff]  }
 0x907   : > { %5729 = vmatprep.subr.bf16.mxu0 %v10239_v25  ;;  %v10288_v25 = vld [vmem:[#allocation7 + $0x270] ss:$8 sps:$4 sm:$0xff]  }
 0x90a   : > { %5730 = vmatpush1.bf16.msra.mxu0 %v10237_v3  ;;  %v10293_v3 = vld [vmem:[#allocation7 + $0x284] ss:$8 sps:$4 sm:$0xff]  }
 0x90b   : > { %5731 = vmatprep.subr.bf16.mxu0 %v10245_v4  ;;  %v10291_v4 = vld [vmem:[#allocation7 + $0x280] ss:$8 sps:$4 sm:$0xff]  }
 0x90e   : > { %5732 = vmatpush1.bf16.msra.mxu0 %v10243_v34  ;;  %v10296_v34 = vld [vmem:[#allocation7 + $0x294] ss:$8 sps:$4 sm:$0xff]  }
 0x90f   : > { %5733 = vmatprep.subr.bf16.mxu0 %v10251_v5  ;;  %v10294_v5 = vld [vmem:[#allocation7 + $0x290] ss:$8 sps:$4 sm:$0xff]  }
 0x912   : > { %5734 = vmatpush1.bf16.msra.mxu0 %v10249_v8  ;;  %v10297_v8 = vld [vmem:[#allocation7 + $0x2a0] ss:$8 sps:$4 sm:$0xff]  }
 0x913   : > { %6154 = vmatprep.subr.bf16.mxu0 %v10260_v12  ;;  %v10305_v12 = vld [vmem:[#allocation7 + $0x2c4] ss:$8 sps:$4 sm:$0xff]  }
 0x9a0   : > { %v5399_v19 = vpop.f32.mrb[12].mxu0 }
 0x9a1   : > { %v5401_v21 = vpop.f32.mrb[13].mxu0  ;;  %v5406_v28 = vpack.c.bf16 %v5399_v19, %v5399_v19  ;;  %v10312_v19 = vld [vmem:[#allocation7 + $0x2f0] ss:$8 sps:$4 sm:$0xff]  }
 0x9a2   : > { %v5407_v22 = vpack.c.bf16 %v5401_v21, %v5401_v21  ;;  %v5403_v26 = vpop.f32.mrb[14].mxu0 }
 0x9a3   : > { %v5404_v33 = vpop.f32.mrb[15].mxu0 }
 0x9a4   : > { %8871 = vmatprep.mubr.msk.bf16.mxu0 %vm5471_vm0, %v5407_v22  ;;  %v10320_v33 = vld [vmem:[#allocation8 + $0x14] ss:$8 sps:$4 sm:$0xff]  }
 0x9a5   : > { %8872 = vmatmul.mubr.msk.bf16.vlgmr.msra.gmra.mrb[20].mxu0 %vm5471_vm0, %v5406_v28  ;;  %v10317_v28 = vld [vmem:[#allocation8 + $0x4] ss:$8 sps:$4 sm:$0xff]  }
 0x9a6   : > { %6155 = vmatpush1.bf16.msra.mxu0 %v10258_v27  ;;  %v10315_v27 = vld [vmem:[#allocation8] ss:$8 sps:$4 sm:$0xff]  }
 0x9a7   : > { %6156 = vmatprep.subr.bf16.mxu0 %v10266_v35  ;;  %v10321_v35 = vld [vmem:[#allocation8 + $0x100] ss:$8 sps:$4 sm:$0xff]  }
 0x9a8   : > { %v5444_v40 = vpop.f32.mrb[16].mxu0 }
 0x9a9   : > { %v5451_v42 = vpack.c.bf16 %v5444_v40, %v5444_v40  ;;  %v5446_v43 = vpop.f32.mrb[17].mxu0  ;;  %v10329_v40 = vld [vmem:[#allocation8 + $0x114] ss:$8 sps:$4 sm:$0xff]  }
 0x9aa   : > { %v5452_v39 = vpack.c.bf16 %v5446_v43, %v5446_v43  ;;  %6157 = vmatpush1.bf16.msra.mxu0 %v10264_v0  ;;  %v5448_v46 = vpop.f32.mrb[18].mxu0  ;;  %v10323_v0 = vld [vmem:[#allocation8 + $0x104] ss:$8 sps:$4 sm:$0xff]   ;;  %v10327_v43 = vld [vmem:[#allocation8 + $0x110] ss:$8 sps:$4 sm:$0xff]  }
 0x9ab   : > { %v5454_v45 = vshrl.u32 %v5451_v42, 16  ;;  %v5457_v47 = vshll.u32 %v5451_v42, 16  ;;  %6158 = vmatprep.subr.bf16.mxu0 %v10272_v36  ;;  %v5449_v50 = vpop.f32.mrb[19].mxu0  ;;  %v10318_v36 = vld [vmem:[#allocation8 + $0x10] ss:$8 sps:$4 sm:$0xff]   ;;  %6479 = vmatprep.subr.bf16.mxu1 %v10323_v0 }
 0x9ac   : > { %v5461_v52 = vshrl.u32 %v5452_v39, 16  ;;  %v5464_v7 = vshll.u32 %v5452_v39, 16  ;;  %v10326_v42 = vld [vmem:[#allocation8 + $0x24] ss:$8 sps:$4 sm:$0xff]   ;;  %v10332_v46 = vld [vmem:[#allocation8 + $0x34] ss:$8 sps:$4 sm:$0xff]  }
 0x9ad   : > { %v5456_v14 = vrot.slane %v5454_v45, 7  ;;  %v10335_v39 = vld [vmem:[#allocation8 + $0x124] ss:$8 sps:$4 sm:$0xff]   ;;  %v10333_v45 = vld [vmem:[#allocation8 + $0x120] ss:$8 sps:$4 sm:$0xff]  }
 0x9ae   : > { %v5463_v55 = vrot.slane %v5461_v52, 7  ;;  %6159 = vmatpush1.bf16.msra.mxu0 %v10270_v44  ;;  %v10324_v44 = vld [vmem:[#allocation8 + $0x20] ss:$8 sps:$4 sm:$0xff]   ;;  %v10338_v50 = vld [vmem:[#allocation8 + $0x44] ss:$8 sps:$4 sm:$0xff]  }
 0x9af   : > { %v5459_v57 = vor.u32 %v5457_v47, %v5456_v14  ;;  %6160 = vmatprep.subr.bf16.mxu0 %v10278_v48  ;;  %v10341_v47 = vld [vmem:[#allocation8 + $0x134] ss:$8 sps:$4 sm:$0xff]   ;;  %v10330_v48 = vld [vmem:[#allocation8 + $0x30] ss:$8 sps:$4 sm:$0xff]   ;;  %v10336_v14 = vld [vmem:[#allocation8 + $0x40] ss:$8 sps:$4 sm:$0xff]  }
 0x9b0   : > { %v5466_v59 = vor.u32 %v5464_v7, %v5463_v55  ;;  %v10339_v52 = vld [vmem:[#allocation8 + $0x130] ss:$8 sps:$4 sm:$0xff]   ;;  %v10347_v7 = vld [vmem:[#allocation8 + $0x144] ss:$8 sps:$4 sm:$0xff]   ;;  %v10344_v55 = vld [vmem:[#allocation8 + $0x54] ss:$8 sps:$4 sm:$0xff]  }
 0x9b1   : > { %v5469_v49 = vsel %vm11367_vm9, 0, %v5459_v57  ;;  %v10353_v57 = vld [vmem:[#allocation8 + $0x154] ss:$8 sps:$4 sm:$0xff]   ;;  %v10407_v0 = vld [vmem:[#allocation8 + $0x1e4] ss:$8 sps:$4 sm:$0xff]  }
 0x9b2   : > { %6161 = vmatpush1.bf16.msra.mxu0 %v10276_v56  ;;  %v5470_v53 = vsel %vm11367_vm9, 0, %v5466_v59  ;;  %v5981_v18 = vshll.u32 %v5469_v49, 16  ;;  %v5979_v21 = vshrl.u32 %v5469_v49, 16  ;;  %v10345_v56 = vld [vmem:[#allocation8 + $0x140] ss:$8 sps:$4 sm:$0xff]  }
 0x9b3   : > { %5936 = vmatprep.mubr.bf16.mxu1 %v5470_v53  ;;  %v5986_v60 = vshrl.u32 %v5470_v53, 16  ;;  %v5988_v61 = vshll.u32 %v5470_v53, 16  ;;  %6162 = vmatprep.subr.bf16.mxu0 %v10281_v58  ;;  %v10342_v58 = vld [vmem:[#allocation8 + $0x50] ss:$8 sps:$4 sm:$0xff]   ;;  %v10350_v59 = vld [vmem:[#allocation8 + $0x64] ss:$8 sps:$4 sm:$0xff]  }
 0x9b4   : > { %5937 = vmatmul.mubr.bf16.vlgmr.msra.gmra.mrb[56].mxu1 %v5469_v49  ;;  %v5983_v22 = vrot.slane %v5981_v18, 1  ;;  %v10351_v49 = vld [vmem:[#allocation8 + $0x150] ss:$8 sps:$4 sm:$0xff]   ;;  %v10359_v53 = vld [vmem:[#allocation8 + $0x164] ss:$8 sps:$4 sm:$0xff]  }
 0x9b5   : > { %v5990_v63 = vrot.slane %v5988_v61, 1  ;;  %6480 = vmatpush1.bf16.msra.mxu1 %v10321_v35  ;;  %v10357_v61 = vld [vmem:[#allocation8 + $0x160] ss:$8 sps:$4 sm:$0xff]   ;;  %v10390_v18 = vld [vmem:[#allocation8 + $0xd0] ss:$8 sps:$4 sm:$0xff]  }
 0x9b6   : > { %6163 = vmatpush1.bf16.msra.mxu0 %v10279_v54  ;;  %v5984_v26 = vor.u32 %v5983_v22, %v5979_v21  ;;  %6481 = vmatprep.subr.bf16.mxu1 %v10329_v40  ;;  %v10348_v54 = vld [vmem:[#allocation8 + $0x60] ss:$8 sps:$4 sm:$0xff]   ;;  %v10398_v21 = vld [vmem:[#allocation8 + $0xe4] ss:$8 sps:$4 sm:$0xff]   ;;  %v10408_v40 = vld [vmem:[#allocation8 + $0x1f0] ss:$8 sps:$4 sm:$0xff]  }
 0x9b7   : > { %6164 = vmatprep.subr.bf16.mxu0 %v10284_v62  ;;  %v5991_v1 = vor.u32 %v5990_v63, %v5986_v60  ;;  %v10356_v60 = vld [vmem:[#allocation8 + $0x74] ss:$8 sps:$4 sm:$0xff]   ;;  %v10354_v63 = vld [vmem:[#allocation8 + $0x70] ss:$8 sps:$4 sm:$0xff]   ;;  %v10396_v22 = vld [vmem:[#allocation8 + $0xe0] ss:$8 sps:$4 sm:$0xff]  }
 0x9b8   : > { %v10365_v62 = vld [vmem:[#allocation8 + $0x174] ss:$8 sps:$4 sm:$0xff]   ;;  %v10405_v35 = vld [vmem:[#allocation8 + $0x1e0] ss:$8 sps:$4 sm:$0xff]  }
 0x9b9   : > { %6186 = vmatprep.mubr.bf16.mxu0 %v5991_v1  ;;  %6482 = vmatpush1.bf16.msra.mxu1 %v10327_v43  ;;  %v10371_v1 = vld [vmem:[#allocation8 + $0x184] ss:$8 sps:$4 sm:$0xff]  }
 0x9ba   : > { %6165 = vmatpush1.bf16.msra.mxu0 %v10282_v32  ;;  %6483 = vmatprep.subr.bf16.mxu1 %v10335_v39  ;;  %v10362_v32 = vld [vmem:[#allocation8 + $0x84] ss:$8 sps:$4 sm:$0xff]  }
 0x9bb   : > { %6166 = vmatprep.subr.bf16.mxu0 %v10287_v24  ;;  %v10363_v24 = vld [vmem:[#allocation8 + $0x170] ss:$8 sps:$4 sm:$0xff]  }
 0x9bd   : > { %6484 = vmatpush1.bf16.msra.mxu1 %v10333_v45 }
 0x9be   : > { %6167 = vmatpush1.bf16.msra.mxu0 %v10285_v37  ;;  %6485 = vmatprep.subr.bf16.mxu1 %v10341_v47  ;;  %v10360_v37 = vld [vmem:[#allocation8 + $0x80] ss:$8 sps:$4 sm:$0xff]  }
 0x9bf   : > { %6168 = vmatprep.subr.bf16.mxu0 %v10290_v38  ;;  %v10368_v38 = vld [vmem:[#allocation8 + $0x94] ss:$8 sps:$4 sm:$0xff]  }
 0x9c1   : > { %6486 = vmatpush1.bf16.msra.mxu1 %v10339_v52 }
 0x9c2   : > { %6169 = vmatpush1.bf16.msra.mxu0 %v10288_v25  ;;  %6487 = vmatprep.subr.bf16.mxu1 %v10347_v7  ;;  %v10369_v25 = vld [vmem:[#allocation8 + $0x180] ss:$8 sps:$4 sm:$0xff]  }
 0x9c3   : > { %6170 = vmatprep.subr.bf16.mxu0 %v10293_v3  ;;  %v10377_v3 = vld [vmem:[#allocation8 + $0x194] ss:$8 sps:$4 sm:$0xff]  }
 0x9c5   : > { %6488 = vmatpush1.bf16.msra.mxu1 %v10345_v56 }
 0x9c6   : > { %6171 = vmatpush1.bf16.msra.mxu0 %v10291_v4  ;;  %6489 = vmatprep.subr.bf16.mxu1 %v10353_v57  ;;  %v10366_v4 = vld [vmem:[#allocation8 + $0x90] ss:$8 sps:$4 sm:$0xff]  }
 0x9c7   : > { %6172 = vmatprep.subr.bf16.mxu0 %v10296_v34  ;;  %v10374_v34 = vld [vmem:[#allocation8 + $0xa4] ss:$8 sps:$4 sm:$0xff]  }
 0x9c9   : > { %6490 = vmatpush1.bf16.msra.mxu1 %v10351_v49 }
 0x9ca   : > { %6173 = vmatpush1.bf16.msra.mxu0 %v10294_v5  ;;  %6491 = vmatprep.subr.bf16.mxu1 %v10359_v53  ;;  %v10375_v5 = vld [vmem:[#allocation8 + $0x190] ss:$8 sps:$4 sm:$0xff]  }
 0x9cb   : > { %6174 = vmatprep.subr.bf16.mxu0 %v10299_v6  ;;  %v10372_v6 = vld [vmem:[#allocation8 + $0xa0] ss:$8 sps:$4 sm:$0xff]  }
 0x9cd   : > { %6492 = vmatpush1.bf16.msra.mxu1 %v10357_v61 }
 0x9ce   : > { %6175 = vmatpush1.bf16.msra.mxu0 %v10297_v8  ;;  %6493 = vmatprep.subr.bf16.mxu1 %v10365_v62  ;;  %v10380_v8 = vld [vmem:[#allocation8 + $0xb4] ss:$8 sps:$4 sm:$0xff]  }
 0x9cf   : > { %6176 = vmatprep.subr.bf16.mxu0 %v10302_v9  ;;  %v10378_v9 = vld [vmem:[#allocation8 + $0xb0] ss:$8 sps:$4 sm:$0xff]  }
 0x9d1   : > { %6494 = vmatpush1.bf16.msra.mxu1 %v10363_v24 }
 0x9d2   : > { %6177 = vmatpush1.bf16.msra.mxu0 %v10300_v11  ;;  %6495 = vmatprep.subr.bf16.mxu1 %v10371_v1  ;;  %v10383_v11 = vld [vmem:[#allocation8 + $0x1a4] ss:$8 sps:$4 sm:$0xff]  }
 0x9d3   : > { %6178 = vmatprep.subr.bf16.mxu0 %v10305_v12  ;;  %v10381_v12 = vld [vmem:[#allocation8 + $0x1a0] ss:$8 sps:$4 sm:$0xff]  }
 0x9d5   : > { %6496 = vmatpush1.bf16.msra.mxu1 %v10369_v25 }
 0x9d6   : > { %6179 = vmatpush1.bf16.msra.mxu0 %v10303_v13  ;;  %6497 = vmatprep.subr.bf16.mxu1 %v10377_v3  ;;  %v10386_v13 = vld [vmem:[#allocation8 + $0xc4] ss:$8 sps:$4 sm:$0xff]  }
 0x9d7   : > { %6180 = vmatprep.subr.bf16.mxu0 %v10308_v41  ;;  %v10384_v41 = vld [vmem:[#allocation8 + $0xc0] ss:$8 sps:$4 sm:$0xff]  }
 0x9d9   : > { %6498 = vmatpush1.bf16.msra.mxu1 %v10375_v5 }
 0x9da   : > { %6181 = vmatpush1.bf16.msra.mxu0 %v10306_v15  ;;  %6499 = vmatprep.subr.bf16.mxu1 %v10383_v11  ;;  %v10389_v15 = vld [vmem:[#allocation8 + $0x1b4] ss:$8 sps:$4 sm:$0xff]  }
 0x9db   : > { %6182 = vmatprep.subr.bf16.mxu0 %v10311_v16  ;;  %v10387_v16 = vld [vmem:[#allocation8 + $0x1b0] ss:$8 sps:$4 sm:$0xff]  }
 0x9dd   : > { %6500 = vmatpush1.bf16.msra.mxu1 %v10381_v12 }
 0x9de   : > { %6183 = vmatpush1.bf16.msra.mxu0 %v10309_v17  ;;  %6501 = vmatprep.subr.bf16.mxu1 %v10389_v15  ;;  %v10392_v17 = vld [vmem:[#allocation8 + $0xd4] ss:$8 sps:$4 sm:$0xff]  }
 0x9df   : > { %6184 = vmatprep.subr.bf16.mxu0 %v10314_v29  ;;  %v10395_v29 = vld [vmem:[#allocation8 + $0x1c4] ss:$8 sps:$4 sm:$0xff]  }
 0x9e1   : > { %6502 = vmatpush1.bf16.msra.mxu1 %v10387_v16 }
 0x9e2   : > { %6185 = vmatpush1.bf16.msra.mxu0 %v10312_v19  ;;  %v10393_v19 = vld [vmem:[#allocation8 + $0x1c0] ss:$8 sps:$4 sm:$0xff]   ;;  %6503 = vmatprep.subr.bf16.mxu1 %v10395_v29 }
 0x9e3   : > { %6680 = vmatprep.subr.bf16.mxu0 %v10317_v28  ;;  %v10402_v28 = vld [vmem:[#allocation8 + $0xf0] ss:$8 sps:$4 sm:$0xff]   ;;  %v10411_v29 = vld [vmem:[#allocation8 + $0x200] ss:$8 sps:$4 sm:$0xff]  }
 0x9e5   : > { %6187 = vmatmul.mubr.bf16.vlgmr.msra.gmra.mrb[24].mxu0 %v5984_v26  ;;  %6504 = vmatpush1.bf16.msra.mxu1 %v10393_v19  ;;  %v10401_v26 = vld [vmem:[#allocation8 + $0x1d4] ss:$8 sps:$4 sm:$0xff]  }
 0x9e6   : > { %6681 = vmatpush1.bf16.msra.mxu0 %v10315_v27  ;;  %v10399_v27 = vld [vmem:[#allocation8 + $0x1d0] ss:$8 sps:$4 sm:$0xff]   ;;  %6505 = vmatprep.subr.bf16.mxu1 %v10401_v26 }
 0x9e7   : > { %6682 = vmatprep.subr.bf16.mxu0 %v10320_v33  ;;  %v10404_v33 = vld [vmem:[#allocation8 + $0xf4] ss:$8 sps:$4 sm:$0xff]   ;;  %v10414_v26 = vld [vmem:[#allocation8 + $0x210] ss:$8 sps:$4 sm:$0xff]  }
 0x9e9   : > { %6506 = vmatpush1.bf16.msra.mxu1 %v10399_v27  ;;  %v10419_v27 = vld [vmem:[#allocation8 + $0x224] ss:$8 sps:$4 sm:$0xff]  }
 0x9ea   : > { %6683 = vmatpush1.bf16.msra.mxu0 %v10318_v36  ;;  %6507 = vmatprep.subr.bf16.mxu1 %v10407_v0  ;;  %v10410_v36 = vld [vmem:[#allocation8 + $0x1f4] ss:$8 sps:$4 sm:$0xff]   ;;  %v10425_v0 = vld [vmem:[#allocation8 + $0x244] ss:$8 sps:$4 sm:$0xff]  }
 0x9eb   : > { %6684 = vmatprep.subr.bf16.mxu0 %v10326_v42  ;;  %v10413_v42 = vld [vmem:[#allocation8 + $0x204] ss:$8 sps:$4 sm:$0xff]  }
 0x9ed   : > { %6508 = vmatpush1.bf16.msra.mxu1 %v10405_v35  ;;  %v10420_v35 = vld [vmem:[#allocation8 + $0x230] ss:$8 sps:$4 sm:$0xff]  }
 0x9ee   : > { %6685 = vmatpush1.bf16.msra.mxu0 %v10324_v44  ;;  %6509 = vmatprep.subr.bf16.mxu1 %v10410_v36  ;;  %v10423_v36 = vld [vmem:[#allocation8 + $0x240] ss:$8 sps:$4 sm:$0xff]  }
 0x9ef   : > { %6686 = vmatprep.subr.bf16.mxu0 %v10332_v46 }
 0x9f1   : > { %6510 = vmatpush1.bf16.msra.mxu1 %v10408_v40  ;;  %v10428_v40 = vld [vmem:[#allocation8 + $0x254] ss:$8 sps:$4 sm:$0xff]  }
 0x9f2   : > { %6687 = vmatpush1.bf16.msra.mxu0 %v10330_v48  ;;  %6920 = vmatprep.subr.bf16.mxu1 %v10413_v42  ;;  %v10426_v42 = vld [vmem:[#allocation8 + $0x250] ss:$8 sps:$4 sm:$0xff]  }
 0x9f3   : > { %6688 = vmatprep.subr.bf16.mxu0 %v10338_v50 }
 0x9f6   : > { %6689 = vmatpush1.bf16.msra.mxu0 %v10336_v14  ;;  %v6197_v14 = vld [vmem:[%s12377_s12] sm:$0x3] }
 0x9f7   : > { %6690 = vmatprep.subr.bf16.mxu0 %v10344_v55  ;;  %v6202_v55 = vrot.slane %v6197_v14, %v11277_v20  ;;  %v6206_v57 = vrot.slane %v6197_v14, %v11284_v23  ;;  %v10446_v14 = vld [vmem:[#allocation8 + $0x2b4] ss:$8 sps:$4 sm:$0xff]  }
 0x9fa   : > { %6691 = vmatpush1.bf16.msra.mxu0 %v10342_v58 }
 0x9fb   : > { %6692 = vmatprep.subr.bf16.mxu0 %v10350_v59 }
 0x9fe   : > { %6693 = vmatpush1.bf16.msra.mxu0 %v10348_v54 }
 0x9ff   : > { %6694 = vmatprep.subr.bf16.mxu0 %v10356_v60 }
 0xa02   : > { %6695 = vmatpush1.bf16.msra.mxu0 %v10354_v63 }
 0xa03   : > { %6696 = vmatprep.subr.bf16.mxu0 %v10362_v32 }
 0xa06   : > { %6697 = vmatpush1.bf16.msra.mxu0 %v10360_v37 }
 0xa07   : > { %6698 = vmatprep.subr.bf16.mxu0 %v10368_v38 }
 0xa0a   : > { %6699 = vmatpush1.bf16.msra.mxu0 %v10366_v4 }
 0xa0b   : > { %6700 = vmatprep.subr.bf16.mxu0 %v10374_v34 }
 0xa0e   : > { %6701 = vmatpush1.bf16.msra.mxu0 %v10372_v6 }
 0xa0f   : > { %6702 = vmatprep.subr.bf16.mxu0 %v10380_v8 }
 0xa12   : > { %6703 = vmatpush1.bf16.msra.mxu0 %v10378_v9 }
 0xa13   : > { %6704 = vmatprep.subr.bf16.mxu0 %v10386_v13 }
 0xa16   : > { %6705 = vmatpush1.bf16.msra.mxu0 %v10384_v41 }
 0xa17   : > { %6706 = vmatprep.subr.bf16.mxu0 %v10392_v17 }
 0xa1a   : > { %6707 = vmatpush1.bf16.msra.mxu0 %v10390_v18 }
 0xa1b   : > { %6708 = vmatprep.subr.bf16.mxu0 %v10398_v21  ;;  %v10416_v21 = vld [vmem:[#allocation8 + $0x214] ss:$8 sps:$4 sm:$0xff]  }
 0xa1e   : > { %6709 = vmatpush1.bf16.msra.mxu0 %v10396_v22 }
 0xa1f   : > { %6710 = vmatprep.subr.bf16.mxu0 %v10404_v33  ;;  %v10422_v33 = vld [vmem:[#allocation8 + $0x234] ss:$8 sps:$4 sm:$0xff]  }
 0xa22   : > { %6711 = vmatpush1.bf16.msra.mxu0 %v10402_v28  ;;  %v10417_v28 = vld [vmem:[#allocation8 + $0x220] ss:$8 sps:$4 sm:$0xff]  }
 0xa78   : > { %v5737_v43 = vpop.f32.mrb[20].mxu0 }
 0xa79   : > { %v5739_v39 = vpop.f32.mrb[21].mxu0 }
 0xa7a   : > { %v5741_v44 = vpop.f32.mrb[22].mxu0 }
 0xa7b   : > { %v5742_v46 = vpop.f32.mrb[23].mxu0  ;;  %v10434_v44 = vld [vmem:[#allocation8 + $0x274] ss:$8 sps:$4 sm:$0xff]  }
 0xa7c   : > { %v10432_v46 = vld [vmem:[#allocation8 + $0x270] ss:$8 sps:$4 sm:$0xff]  }
 0xa87   : > { %v5938_v45 = vpop.f32.mrb[56].mxu1 }
 0xa88   : > { %v5939_v47 = vadd.f32 %v5938_v45, %v5737_v43  ;;  %v5940_v48 = vpop.f32.mrb[57].mxu1  ;;  %v10431_v43 = vld [vmem:[#allocation8 + $0x264] ss:$8 sps:$4 sm:$0xff]  }
 0xa89   : > { %v5941_v50 = vadd.f32 %v5940_v48, %v5739_v39  ;;  %v5942_v52 = vpop.f32.mrb[58].mxu1  ;;  %v10429_v39 = vld [vmem:[#allocation8 + $0x260] ss:$8 sps:$4 sm:$0xff]   ;;  %v10437_v45 = vld [vmem:[#allocation8 + $0x284] ss:$8 sps:$4 sm:$0xff]  }
 0xa8a   : > { %v5943_v7 = vpop.f32.mrb[59].mxu1  ;;  %v10440_v48 = vld [vmem:[#allocation8 + $0x294] ss:$8 sps:$4 sm:$0xff]   ;;  %v10443_v52 = vld [vmem:[#allocation8 + $0x2a4] ss:$8 sps:$4 sm:$0xff]  }
 0xa8b   : > { %v10441_v7 = vld [vmem:[#allocation8 + $0x2a0] ss:$8 sps:$4 sm:$0xff]  }
 0xab8   : > { %v6188_v56 = vpop.f32.mrb[24].mxu0 }
 0xab9   : > { %v6195_v58 = vadd.f32 %v6188_v56, %v5939_v47  ;;  %v6190_v59 = vpop.f32.mrb[25].mxu0  ;;  %v10435_v47 = vld [vmem:[#allocation8 + $0x280] ss:$8 sps:$4 sm:$0xff]   ;;  %v10449_v56 = vld [vmem:[#allocation8 + $0x2c4] ss:$8 sps:$4 sm:$0xff]  }
 0xaba   : > { %v6196_v49 = vadd.f32 %v6190_v59, %v5941_v50  ;;  %v6192_v53 = vpop.f32.mrb[26].mxu0  ;;  %v10438_v50 = vld [vmem:[#allocation8 + $0x290] ss:$8 sps:$4 sm:$0xff]  }
 0xabb   : > { %v6209_v54 = vadd.f32 %v6202_v55, %v6195_v58  ;;  %v6193_v60 = vpop.f32.mrb[27].mxu0  ;;  %v10444_v55 = vld [vmem:[#allocation8 + $0x2b0] ss:$8 sps:$4 sm:$0xff]   ;;  %v10452_v58 = vld [vmem:[#allocation8 + $0x2d4] ss:$8 sps:$4 sm:$0xff]  }
 0xabc   : > { %v6210_v61 = vadd.f32 %v6206_v57, %v6196_v49  ;;  %v10447_v57 = vld [vmem:[#allocation8 + $0x2c0] ss:$8 sps:$4 sm:$0xff]   ;;  %v10450_v59 = vld [vmem:[#allocation8 + $0x2d0] ss:$8 sps:$4 sm:$0xff]   ;;  %v10455_v49 = vld [vmem:[#allocation8 + $0x2e4] ss:$8 sps:$4 sm:$0xff]  }
 0xabd   : > { %v6211_v62 = vmax.f32 %v6209_v54, 0.0  ;;  %v10453_v53 = vld [vmem:[#allocation8 + $0x2e0] ss:$8 sps:$4 sm:$0xff]   ;;  %v10458_v54 = vld [vmem:[#allocation8 + $0x2f4] ss:$8 sps:$4 sm:$0xff]  }
 0xabe   : > { %v6212_v63 = vmax.f32 %v6210_v61, 0.0  ;;  %v10456_v60 = vld [vmem:[#allocation8 + $0x2f0] ss:$8 sps:$4 sm:$0xff]  }
 0xabf   : > { %v6213_v32 = vpack.c.bf16 %v6211_v62, %v6211_v62 }
 0xac0   : > { %v6214_v24 = vpack.c.bf16 %v6212_v63, %v6212_v63 }
 0xac1   : > { %v6216_v1 = vshrl.u32 %v6213_v32, 16  ;;  %v6219_v25 = vshll.u32 %v6213_v32, 16 }
 0xac2   : > { %v6223_v37 = vshrl.u32 %v6214_v24, 16  ;;  %v6226_v4 = vshll.u32 %v6214_v24, 16 }
 0xac3   : > { %v6218_v38 = vrot.slane %v6216_v1, 7 }
 0xac4   : > { %v6225_v3 = vrot.slane %v6223_v37, 7 }
 0xac5   : > { %v6221_v34 = vor.u32 %v6219_v25, %v6218_v38 }
 0xac6   : > { %v6228_v5 = vor.u32 %v6226_v4, %v6225_v3 }
 0xac7   : > { %v6231_v6 = vsel %vm11367_vm9, 0, %v6221_v34  ;;  %v6963_v34 = vld [vmem:[%s12378_s13] sm:$0x3] }
 0xac8   : > { %v6232_v8 = vsel %vm11367_vm9, 0, %v6228_v5  ;;  %v12230_v9 = vsel %vm6235_vm3, %v6231_v6, 0  ;;  %v6968_v5 = vrot.slane %v6963_v34, %v11277_v20 }
 0xac9   : > { %v6237_v11 = vsel %vm6235_vm3, %v6232_v8, 0  ;;  %v6306_v12 = vshll.u32 %v12230_v9, 16  ;;  %v6304_v17 = vshrl.u32 %v12230_v9, 16  ;;  %v6756_v61 = vrot.slane %v12230_v9, 1 }
 0xaca   : > { %6712 = vmatprep.mubr.bf16.mxu0 %v6237_v11  ;;  %v6313_v13 = vshll.u32 %v6237_v11, 16  ;;  %v6311_v15 = vshrl.u32 %v6237_v11, 16  ;;  %v6757_v22 = vrot.slane %v6237_v11, 1  ;;  %v6972_v8 = vrot.slane %v6963_v34, %v11284_v23  ;;  %v10521_v34 = vld [vmem:[#allocation10 + $0x1b4] ss:$8 sps:$4 sm:$0xff]  }
 0xacb   : > { %v6308_v41 = vrot.slane %v6306_v12, 1  ;;  %6713 = vmatmul.mubr.bf16.vlgmr.msra.gmra.mrb[28].mxu0 %v12230_v9 }
 0xacc   : > { %v6315_v16 = vrot.slane %v6313_v13, 1  ;;  %7022 = vmatprep.mubr.bf16.mxu0 %v10828_v51 }
 0xacd   : > { %v6309_v19 = vor.u32 %v6308_v41, %v6304_v17 }
 0xace   : > { %v6316_v18 = vor.u32 %v6315_v16, %v6311_v15 }
 0xad0   : > { %6511 = vmatprep.mubr.bf16.mxu1 %v6316_v18 }
 0xad1   : > { %6512 = vmatmul.mubr.bf16.vlgmr.msra.gmra.mrb[60].mxu1 %v6309_v19  ;;  %v10461_v19 = vld [vmem:[#allocation10 + $0x104] ss:$8 sps:$4 sm:$0xff]  }
 0xad2   : > { %6921 = vmatpush1.bf16.msra.mxu1 %v10411_v29  ;;  %6952 = vmatprep.mubr.bf16.mxu1 %v6757_v22 }
 0xad3   : > { %6922 = vmatprep.subr.bf16.mxu1 %v10416_v21  ;;  %v10470_v21 = vld [vmem:[#allocation10 + $0x4] ss:$8 sps:$4 sm:$0xff]  }
 0xad6   : > { %6923 = vmatpush1.bf16.msra.mxu1 %v10414_v26  ;;  %v10459_v26 = vld [vmem:[#allocation10 + $0x100] ss:$8 sps:$4 sm:$0xff]  }
 0xad7   : > { %6924 = vmatprep.subr.bf16.mxu1 %v10419_v27  ;;  %v10468_v27 = vld [vmem:[#allocation10] ss:$8 sps:$4 sm:$0xff]  }
 0xada   : > { %6925 = vmatpush1.bf16.msra.mxu1 %v10417_v28  ;;  %v10464_v28 = vld [vmem:[#allocation10 + $0x114] ss:$8 sps:$4 sm:$0xff]  }
 0xadb   : > { %6926 = vmatprep.subr.bf16.mxu1 %v10422_v33  ;;  %v10476_v33 = vld [vmem:[#allocation10 + $0x14] ss:$8 sps:$4 sm:$0xff]  }
 0xade   : > { %6927 = vmatpush1.bf16.msra.mxu1 %v10420_v35  ;;  %v10462_v35 = vld [vmem:[#allocation10 + $0x110] ss:$8 sps:$4 sm:$0xff]  }
 0xadf   : > { %6928 = vmatprep.subr.bf16.mxu1 %v10425_v0  ;;  %v10474_v0 = vld [vmem:[#allocation10 + $0x10] ss:$8 sps:$4 sm:$0xff]  }
 0xae2   : > { %6929 = vmatpush1.bf16.msra.mxu1 %v10423_v36  ;;  %v10467_v36 = vld [vmem:[#allocation10 + $0x124] ss:$8 sps:$4 sm:$0xff]  }
 0xae3   : > { %6930 = vmatprep.subr.bf16.mxu1 %v10428_v40  ;;  %v10482_v40 = vld [vmem:[#allocation10 + $0x24] ss:$8 sps:$4 sm:$0xff]  }
 0xae6   : > { %6931 = vmatpush1.bf16.msra.mxu1 %v10426_v42  ;;  %v10465_v42 = vld [vmem:[#allocation10 + $0x120] ss:$8 sps:$4 sm:$0xff]  }
 0xae7   : > { %6932 = vmatprep.subr.bf16.mxu1 %v10431_v43  ;;  %v10480_v43 = vld [vmem:[#allocation10 + $0x20] ss:$8 sps:$4 sm:$0xff]  }
 0xaea   : > { %6933 = vmatpush1.bf16.msra.mxu1 %v10429_v39  ;;  %v10473_v39 = vld [vmem:[#allocation10 + $0x134] ss:$8 sps:$4 sm:$0xff]  }
 0xaeb   : > { %6934 = vmatprep.subr.bf16.mxu1 %v10434_v44  ;;  %v10488_v44 = vld [vmem:[#allocation10 + $0x34] ss:$8 sps:$4 sm:$0xff]  }
 0xaee   : > { %6935 = vmatpush1.bf16.msra.mxu1 %v10432_v46  ;;  %v10479_v46 = vld [vmem:[#allocation10 + $0x144] ss:$8 sps:$4 sm:$0xff]  }
 0xaef   : > { %6936 = vmatprep.subr.bf16.mxu1 %v10437_v45  ;;  %v10494_v45 = vld [vmem:[#allocation10 + $0x44] ss:$8 sps:$4 sm:$0xff]  }
 0xaf2   : > { %6937 = vmatpush1.bf16.msra.mxu1 %v10435_v47  ;;  %v10477_v47 = vld [vmem:[#allocation10 + $0x140] ss:$8 sps:$4 sm:$0xff]  }
 0xaf3   : > { %6938 = vmatprep.subr.bf16.mxu1 %v10440_v48  ;;  %v10492_v48 = vld [vmem:[#allocation10 + $0x40] ss:$8 sps:$4 sm:$0xff]  }
 0xaf6   : > { %6939 = vmatpush1.bf16.msra.mxu1 %v10438_v50  ;;  %v10485_v50 = vld [vmem:[#allocation10 + $0x154] ss:$8 sps:$4 sm:$0xff]  }
 0xaf7   : > { %6940 = vmatprep.subr.bf16.mxu1 %v10443_v52  ;;  %v10500_v52 = vld [vmem:[#allocation10 + $0x54] ss:$8 sps:$4 sm:$0xff]  }
 0xafa   : > { %6941 = vmatpush1.bf16.msra.mxu1 %v10441_v7  ;;  %v10483_v7 = vld [vmem:[#allocation10 + $0x150] ss:$8 sps:$4 sm:$0xff]  }
 0xafb   : > { %6942 = vmatprep.subr.bf16.mxu1 %v10446_v14  ;;  %v10498_v14 = vld [vmem:[#allocation10 + $0x50] ss:$8 sps:$4 sm:$0xff]  }
 0xafe   : > { %6943 = vmatpush1.bf16.msra.mxu1 %v10444_v55  ;;  %v10491_v55 = vld [vmem:[#allocation10 + $0x164] ss:$8 sps:$4 sm:$0xff]  }
 0xaff   : > { %6944 = vmatprep.subr.bf16.mxu1 %v10449_v56  ;;  %v10506_v56 = vld [vmem:[#allocation10 + $0x64] ss:$8 sps:$4 sm:$0xff]  }
 0xb02   : > { %6945 = vmatpush1.bf16.msra.mxu1 %v10447_v57  ;;  %v10489_v57 = vld [vmem:[#allocation10 + $0x160] ss:$8 sps:$4 sm:$0xff]  }
 0xb03   : > { %6946 = vmatprep.subr.bf16.mxu1 %v10452_v58  ;;  %v10504_v58 = vld [vmem:[#allocation10 + $0x60] ss:$8 sps:$4 sm:$0xff]  }
 0xb06   : > { %6947 = vmatpush1.bf16.msra.mxu1 %v10450_v59  ;;  %v10497_v59 = vld [vmem:[#allocation10 + $0x174] ss:$8 sps:$4 sm:$0xff]  }
 0xb07   : > { %6948 = vmatprep.subr.bf16.mxu1 %v10455_v49  ;;  %v10512_v49 = vld [vmem:[#allocation10 + $0x74] ss:$8 sps:$4 sm:$0xff]  }
 0xb0a   : > { %6949 = vmatpush1.bf16.msra.mxu1 %v10453_v53  ;;  %v10495_v53 = vld [vmem:[#allocation10 + $0x170] ss:$8 sps:$4 sm:$0xff]  }
 0xb0b   : > { %6950 = vmatprep.subr.bf16.mxu1 %v10458_v54  ;;  %v10510_v54 = vld [vmem:[#allocation10 + $0x70] ss:$8 sps:$4 sm:$0xff]  }
 0xb0e   : > { %6951 = vmatpush1.bf16.msra.mxu1 %v10456_v60  ;;  %v10503_v60 = vld [vmem:[#allocation10 + $0x184] ss:$8 sps:$4 sm:$0xff]  }
 0xb11   : > { %6953 = vmatmul.mubr.bf16.vlgmr.msra.gmra.mrb[64].mxu1 %v6756_v61  ;;  %v10518_v61 = vld [vmem:[#allocation10 + $0x84] ss:$8 sps:$4 sm:$0xff]  }
 0xb12   : > { %7067 = vmatprep.mubr.bf16.mxu1 %v10828_v51 }
 0xb9e   : > { %v6714_v62 = vpop.f32.mrb[28].mxu0 }
 0xb9f   : > { %v6716_v63 = vpop.f32.mrb[29].mxu0 }
 0xba0   : > { %v6718_v32 = vpop.f32.mrb[30].mxu0 }
 0xba1   : > { %v6719_v24 = vpop.f32.mrb[31].mxu0  ;;  %v10509_v32 = vld [vmem:[#allocation10 + $0x194] ss:$8 sps:$4 sm:$0xff]  }
 0xba2   : > { %v10524_v24 = vld [vmem:[#allocation10 + $0x94] ss:$8 sps:$4 sm:$0xff]  }
 0xba4   : > { %v6513_v1 = vpop.f32.mrb[60].mxu1 }
 0xba5   : > { %v6715_v37 = vadd.f32 %v6714_v62, %v6513_v1  ;;  %v6515_v38 = vpop.f32.mrb[61].mxu1  ;;  %v10501_v62 = vld [vmem:[#allocation10 + $0x180] ss:$8 sps:$4 sm:$0xff]   ;;  %v10507_v1 = vld [vmem:[#allocation10 + $0x190] ss:$8 sps:$4 sm:$0xff]  }
 0xba6   : > { %v6717_v25 = vadd.f32 %v6716_v63, %v6515_v38  ;;  %v6517_v3 = vpop.f32.mrb[62].mxu1  ;;  %v10516_v63 = vld [vmem:[#allocation10 + $0x80] ss:$8 sps:$4 sm:$0xff]   ;;  %v10515_v38 = vld [vmem:[#allocation10 + $0x1a4] ss:$8 sps:$4 sm:$0xff]  }
 0xba7   : > { %v6518_v4 = vpop.f32.mrb[63].mxu1  ;;  %v10513_v3 = vld [vmem:[#allocation10 + $0x1a0] ss:$8 sps:$4 sm:$0xff]  }
 0xba8   : > { %v10528_v4 = vld [vmem:[#allocation10 + $0xa0] ss:$8 sps:$4 sm:$0xff]  }
 0xbe4   : > { %v6954_v6 = vpop.f32.mrb[64].mxu1 }
 0xbe5   : > { %v6961_v51 = vadd.f32 %v6954_v6, %v6715_v37  ;;  %v6956_v9 = vpop.f32.mrb[65].mxu1  ;;  %v10522_v37 = vld [vmem:[#allocation10 + $0x90] ss:$8 sps:$4 sm:$0xff]  }
 0xbe6   : > { %v6962_v11 = vadd.f32 %v6956_v9, %v6717_v25  ;;  %v6958_v12 = vpop.f32.mrb[66].mxu1  ;;  %v10530_v25 = vld [vmem:[#allocation10 + $0xa4] ss:$8 sps:$4 sm:$0xff]   ;;  %v10519_v6 = vld [vmem:[#allocation10 + $0x1b0] ss:$8 sps:$4 sm:$0xff]  }
 0xbe7   : > { %v6975_v13 = vadd.f32 %v6968_v5, %v6961_v51  ;;  %v6959_v41 = vpop.f32.mrb[67].mxu1  ;;  %v10536_v5 = vld [vmem:[#allocation10 + $0xb4] ss:$8 sps:$4 sm:$0xff]   ;;  %v10527_v51 = vld [vmem:[#allocation10 + $0x1c4] ss:$8 sps:$4 sm:$0xff]  }
 0xbe8   : > { %v6976_v15 = vadd.f32 %v6972_v8, %v6962_v11  ;;  %v10534_v8 = vld [vmem:[#allocation10 + $0xb0] ss:$8 sps:$4 sm:$0xff]   ;;  %v10542_v9 = vld [vmem:[#allocation10 + $0xc4] ss:$8 sps:$4 sm:$0xff]   ;;  %v10525_v11 = vld [vmem:[#allocation10 + $0x1c0] ss:$8 sps:$4 sm:$0xff]  }
 0xbe9   : > { %v6977_v16 = vmax.f32 %v6975_v13, 0.0  ;;  %v10540_v12 = vld [vmem:[#allocation10 + $0xc0] ss:$8 sps:$4 sm:$0xff]   ;;  %v10533_v13 = vld [vmem:[#allocation10 + $0x1d4] ss:$8 sps:$4 sm:$0xff]  }
 0xbea   : > { %v6978_v17 = vmax.f32 %v6976_v15, 0.0  ;;  %v10531_v41 = vld [vmem:[#allocation10 + $0x1d0] ss:$8 sps:$4 sm:$0xff]   ;;  %v10539_v15 = vld [vmem:[#allocation10 + $0x1e4] ss:$8 sps:$4 sm:$0xff]  }
 0xbeb   : > { %v6979_v18 = vpack.c.bf16 %v6977_v16, %v6977_v16  ;;  %v10537_v16 = vld [vmem:[#allocation10 + $0x1e0] ss:$8 sps:$4 sm:$0xff]  }
 0xbec   : > { %v6980_v29 = vpack.c.bf16 %v6978_v17, %v6978_v17  ;;  %v10545_v17 = vld [vmem:[#allocation10 + $0x1f4] ss:$8 sps:$4 sm:$0xff]  }
 0xbed   : > { %v6985_v22 = vsel %vm5471_vm0, %v6979_v18, 0  ;;  %v10548_v18 = vld [vmem:[#allocation10 + $0xd4] ss:$8 sps:$4 sm:$0xff]  }
 0xbee   : > { %9033 = vmatprep.subr.msk.bf16.mxu0 %vm5471_vm0, %v6980_v29  ;;  %9035 = vmatprep.subr.msk.bf16.mxu1 %vm5471_vm0, %v6980_v29  ;;  %v10543_v29 = vld [vmem:[#allocation10 + $0x1f0] ss:$8 sps:$4 sm:$0xff]  }
 0xbef   : > { %6991 = vmatpush1.bf16.msra.mxu0 %v6985_v22  ;;  %7036 = vmatpush1.bf16.msra.mxu1 %v6985_v22  ;;  %v10554_v22 = vld [vmem:[#allocation10 + $0x204] ss:$8 sps:$4 sm:$0xff]  }
 0xbf0   : > { %7328 = vmatprep.subr.bf16.mxu0 %v10461_v19  ;;  %7529 = vmatprep.subr.bf16.mxu1 %v10470_v21  ;;  %v10546_v19 = vld [vmem:[#allocation10 + $0xd0] ss:$8 sps:$4 sm:$0xff]   ;;  %v10551_v21 = vld [vmem:[#allocation10 + $0xe4] ss:$8 sps:$4 sm:$0xff]  }
 0xbf2   : > { %9034 = vmatmul.mubr.msk.bf16.vlgmr.msra.gmra.mrb[32].mxu0 %vm6981_vm4, %v11875_v31  ;;  %9036 = vmatmul.mubr.msk.bf16.vlgmr.msra.gmra.mrb[68].mxu1 %vm6981_vm4, %v11884_v2  ;;  %v10471_v31 = vld [vmem:[#allocation10 + $0x130] ss:$8 sps:$4 sm:$0xff]  }
 0xbf3   : > { %7329 = vmatpush1.bf16.msra.mxu0 %v10459_v26  ;;  %7530 = vmatpush1.bf16.msra.mxu1 %v10468_v27  ;;  %v10486_v2 = vld [vmem:[#allocation10 + $0x30] ss:$8 sps:$4 sm:$0xff]   ;;  %v10549_v26 = vld [vmem:[#allocation10 + $0xe0] ss:$8 sps:$4 sm:$0xff]  }
 0xbf4   : > { %7330 = vmatprep.subr.bf16.mxu0 %v10464_v28  ;;  %7531 = vmatprep.subr.bf16.mxu1 %v10476_v33  ;;  %v10555_v27 = vld [vmem:[#allocation10 + $0xf0] ss:$8 sps:$4 sm:$0xff]   ;;  %v10557_v28 = vld [vmem:[#allocation10 + $0xf4] ss:$8 sps:$4 sm:$0xff]  }
 0xbf7   : > { %7331 = vmatpush1.bf16.msra.mxu0 %v10462_v35  ;;  %7532 = vmatpush1.bf16.msra.mxu1 %v10474_v0 }
 0xbf8   : > { %7332 = vmatprep.subr.bf16.mxu0 %v10467_v36  ;;  %7533 = vmatprep.subr.bf16.mxu1 %v10482_v40 }
 0xbfb   : > { %7333 = vmatpush1.bf16.msra.mxu0 %v10465_v42  ;;  %7534 = vmatpush1.bf16.msra.mxu1 %v10480_v43 }
 0xbfc   : > { %7334 = vmatprep.subr.bf16.mxu0 %v10473_v39  ;;  %7535 = vmatprep.subr.bf16.mxu1 %v10488_v44  ;;  %v10552_v44 = vld [vmem:[#allocation10 + $0x200] ss:$8 sps:$4 sm:$0xff]  }
 0xbff   : > { %7335 = vmatpush1.bf16.msra.mxu0 %v10471_v31  ;;  %7536 = vmatpush1.bf16.msra.mxu1 %v10486_v2 }
 0xc00   : > { %7336 = vmatprep.subr.bf16.mxu0 %v10479_v46  ;;  %7537 = vmatprep.subr.bf16.mxu1 %v10494_v45 }
 0xc03   : > { %7337 = vmatpush1.bf16.msra.mxu0 %v10477_v47  ;;  %7538 = vmatpush1.bf16.msra.mxu1 %v10492_v48  ;;  %v10560_v48 = vld [vmem:[#allocation10 + $0x214] ss:$8 sps:$4 sm:$0xff]  }
 0xc04   : > { %7338 = vmatprep.subr.bf16.mxu0 %v10485_v50  ;;  %7539 = vmatprep.subr.bf16.mxu1 %v10500_v52 }
 0xc07   : > { %7339 = vmatpush1.bf16.msra.mxu0 %v10483_v7  ;;  %7540 = vmatpush1.bf16.msra.mxu1 %v10498_v14 }
 0xc08   : > { %7340 = vmatprep.subr.bf16.mxu0 %v10491_v55  ;;  %7541 = vmatprep.subr.bf16.mxu1 %v10506_v56  ;;  %v10558_v56 = vld [vmem:[#allocation10 + $0x210] ss:$8 sps:$4 sm:$0xff]  }
 0xc0b   : > { %7341 = vmatpush1.bf16.msra.mxu0 %v10489_v57  ;;  %7542 = vmatpush1.bf16.msra.mxu1 %v10504_v58  ;;  %v10563_v58 = vld [vmem:[#allocation10 + $0x224] ss:$8 sps:$4 sm:$0xff]  }
 0xc0c   : > { %7342 = vmatprep.subr.bf16.mxu0 %v10497_v59  ;;  %7543 = vmatprep.subr.bf16.mxu1 %v10512_v49 }
 0xc0f   : > { %7343 = vmatpush1.bf16.msra.mxu0 %v10495_v53  ;;  %7544 = vmatpush1.bf16.msra.mxu1 %v10510_v54  ;;  %v10561_v54 = vld [vmem:[#allocation10 + $0x220] ss:$8 sps:$4 sm:$0xff]  }
 0xc10   : > { %7344 = vmatprep.subr.bf16.mxu0 %v10503_v60  ;;  %7545 = vmatprep.subr.bf16.mxu1 %v10518_v61 }
 0xc13   : > { %7345 = vmatpush1.bf16.msra.mxu0 %v10501_v62  ;;  %7546 = vmatpush1.bf16.msra.mxu1 %v10516_v63  ;;  %v10566_v62 = vld [vmem:[#allocation10 + $0x234] ss:$8 sps:$4 sm:$0xff]  }
 0xc14   : > { %7346 = vmatprep.subr.bf16.mxu0 %v10509_v32  ;;  %7547 = vmatprep.subr.bf16.mxu1 %v10524_v24  ;;  %v10564_v32 = vld [vmem:[#allocation10 + $0x230] ss:$8 sps:$4 sm:$0xff]   ;;  %v10569_v24 = vld [vmem:[#allocation10 + $0x244] ss:$8 sps:$4 sm:$0xff]  }
 0xc17   : > { %7347 = vmatpush1.bf16.msra.mxu0 %v10507_v1  ;;  %7548 = vmatpush1.bf16.msra.mxu1 %v10522_v37  ;;  %v10567_v37 = vld [vmem:[#allocation10 + $0x240] ss:$8 sps:$4 sm:$0xff]  }
 0xc18   : > { %7348 = vmatprep.subr.bf16.mxu0 %v10515_v38  ;;  %7549 = vmatprep.subr.bf16.mxu1 %v10530_v25  ;;  %v10570_v38 = vld [vmem:[#allocation10 + $0x250] ss:$8 sps:$4 sm:$0xff]   ;;  %v10575_v25 = vld [vmem:[#allocation10 + $0x264] ss:$8 sps:$4 sm:$0xff]  }
 0xc1b   : > { %7349 = vmatpush1.bf16.msra.mxu0 %v10513_v3  ;;  %7550 = vmatpush1.bf16.msra.mxu1 %v10528_v4  ;;  %v10573_v3 = vld [vmem:[#allocation10 + $0x260] ss:$8 sps:$4 sm:$0xff]   ;;  %v10578_v4 = vld [vmem:[#allocation10 + $0x274] ss:$8 sps:$4 sm:$0xff]  }
 0xc1c   : > { %7350 = vmatprep.subr.bf16.mxu0 %v10521_v34  ;;  %7551 = vmatprep.subr.bf16.mxu1 %v10536_v5  ;;  %v10576_v34 = vld [vmem:[#allocation10 + $0x270] ss:$8 sps:$4 sm:$0xff]   ;;  %v10581_v5 = vld [vmem:[#allocation10 + $0x284] ss:$8 sps:$4 sm:$0xff]  }
 0xc1f   : > { %7351 = vmatpush1.bf16.msra.mxu0 %v10519_v6  ;;  %7552 = vmatpush1.bf16.msra.mxu1 %v10534_v8  ;;  %v10579_v6 = vld [vmem:[#allocation10 + $0x280] ss:$8 sps:$4 sm:$0xff]   ;;  %v10584_v8 = vld [vmem:[#allocation10 + $0x294] ss:$8 sps:$4 sm:$0xff]  }
 0xc20   : > { %7352 = vmatprep.subr.bf16.mxu0 %v10527_v51  ;;  %7553 = vmatprep.subr.bf16.mxu1 %v10542_v9  ;;  %v10582_v51 = vld [vmem:[#allocation10 + $0x290] ss:$8 sps:$4 sm:$0xff]   ;;  %v10587_v9 = vld [vmem:[#allocation10 + $0x2a4] ss:$8 sps:$4 sm:$0xff]  }
 0xc23   : > { %7353 = vmatpush1.bf16.msra.mxu0 %v10525_v11  ;;  %7554 = vmatpush1.bf16.msra.mxu1 %v10540_v12  ;;  %v10585_v11 = vld [vmem:[#allocation10 + $0x2a0] ss:$8 sps:$4 sm:$0xff]   ;;  %v10590_v12 = vld [vmem:[#allocation10 + $0x2b4] ss:$8 sps:$4 sm:$0xff]  }
 0xc24   : > { %7354 = vmatprep.subr.bf16.mxu0 %v10533_v13  ;;  %7555 = vmatprep.subr.bf16.mxu1 %v10548_v18  ;;  %v10588_v13 = vld [vmem:[#allocation10 + $0x2b0] ss:$8 sps:$4 sm:$0xff]   ;;  %v10599_v18 = vld [vmem:[#allocation10 + $0x2e4] ss:$8 sps:$4 sm:$0xff]  }
 0xc27   : > { %7355 = vmatpush1.bf16.msra.mxu0 %v10531_v41  ;;  %7556 = vmatpush1.bf16.msra.mxu1 %v10546_v19  ;;  %v10593_v41 = vld [vmem:[#allocation10 + $0x2c4] ss:$8 sps:$4 sm:$0xff]  }
 0xc28   : > { %7356 = vmatprep.subr.bf16.mxu0 %v10539_v15  ;;  %7557 = vmatprep.subr.bf16.mxu1 %v10551_v21  ;;  %v10591_v15 = vld [vmem:[#allocation10 + $0x2c0] ss:$8 sps:$4 sm:$0xff]   ;;  %v10602_v21 = vld [vmem:[#allocation10 + $0x2f4] ss:$8 sps:$4 sm:$0xff]  }
 0xc2b   : > { %7357 = vmatpush1.bf16.msra.mxu0 %v10537_v16  ;;  %7558 = vmatpush1.bf16.msra.mxu1 %v10549_v26  ;;  %v10596_v16 = vld [vmem:[#allocation10 + $0x2d4] ss:$8 sps:$4 sm:$0xff]  }
 0xc2c   : > { %7358 = vmatprep.subr.bf16.mxu0 %v10545_v17  ;;  %7559 = vmatprep.subr.bf16.mxu1 %v10557_v28  ;;  %v10594_v17 = vld [vmem:[#allocation10 + $0x2d0] ss:$8 sps:$4 sm:$0xff]  }
 0xc2f   : > { %7359 = vmatpush1.bf16.msra.mxu0 %v10543_v29  ;;  %7560 = vmatpush1.bf16.msra.mxu1 %v10555_v27  ;;  %v10597_v29 = vld [vmem:[#allocation10 + $0x2e0] ss:$8 sps:$4 sm:$0xff]  }
 0xc30   : > { %7779 = vmatprep.subr.bf16.mxu0 %v10554_v22  ;;  %v10600_v22 = vld [vmem:[#allocation10 + $0x2f0] ss:$8 sps:$4 sm:$0xff]  }
 0xcc5   : > { %v7024_v33 = vpop.f32.mrb[32].mxu0  ;;  %v7069_v35 = vpop.f32.mrb[68].mxu1 }
 0xcc6   : > { %v7076_v0 = vpack.c.bf16 %v7069_v35, %v7069_v35  ;;  %v7026_v36 = vpop.f32.mrb[33].mxu0  ;;  %v7071_v40 = vpop.f32.mrb[69].mxu1  ;;  %v7031_v2 = vpack.c.bf16 %v7024_v33, %v7024_v33  ;;  %v7855_v33 = vld [vmem:[%s12438_s6] sm:$0xff]  ;;  %v7856_v35 = vld [vmem:[%s12438_s6 + $0x8] sm:$0xff] }
 0xcc7   : > { %v7032_v42 = vpack.c.bf16 %v7026_v36, %v7026_v36  ;;  %v7077_v43 = vpack.c.bf16 %v7071_v40, %v7071_v40  ;;  %v7028_v39 = vpop.f32.mrb[34].mxu0  ;;  %v7073_v31 = vpop.f32.mrb[70].mxu1  ;;  %v9191_v36 = vpack.c.bf16 %v7856_v35, %v7855_v33  ;;  %v7857_v40 = vld [vmem:[%s12438_s6 + $0x10] sm:$0xff]  ;;  %v7871_v33 = vld [vmem:[%s12442_s18] sm:$0x1] }
 0xcc8   : > { %v7079_v46 = vshrl.u32 %v7076_v0, 16  ;;  %v7082_v45 = vshll.u32 %v7076_v0, 16  ;;  %v7029_v47 = vpop.f32.mrb[35].mxu0  ;;  %v7074_v50 = vpop.f32.mrb[71].mxu1  ;;  %v10830_v0 = vmov 0.0|0.0   ;;  %v7859_v39 = vld [vmem:[%s12438_s6 + $0x20] sm:$0xff] }
 0xcc9   : > { %v7086_v52 = vshrl.u32 %v7077_v43, 16  ;;  %v7089_v7 = vshll.u32 %v7077_v43, 16  ;;  %9069 = vmatprep.mubr.msk.bf16.mxu0 %vm2235_vm7, %v7032_v42  ;;  %9190 = vmatprep.subr.bf16.mxu1 %v10830_v0  ;;  %v7858_v42 = vld [vmem:[%s12438_s6 + $0x18] sm:$0xff]  ;;  %v7863_v47 = vld [vmem:[%s12438_s6 + $0x40] sm:$0xff] }
 0xcca   : > { %v7081_v14 = vrot.slane %v7079_v46, 7  ;;  %9070 = vmatmul.mubr.msk.bf16.vlgmr.msra.gmra.mrb[36].mxu0 %vm2235_vm7, %v7031_v2  ;;  %v9194_v43 = vpack.c.bf16 %v7858_v42, %v7857_v40  ;;  %v7861_v2 = vld [vmem:[%s12438_s6 + $0x30] sm:$0xff]  ;;  %v7862_v46 = vld [vmem:[%s12438_s6 + $0x38] sm:$0xff] }
 0xccb   : > { %v7088_v55 = vrot.slane %v7086_v52, 7  ;;  %7780 = vmatpush1.bf16.msra.mxu0 %v10552_v44  ;;  %v7860_v44 = vld [vmem:[%s12438_s6 + $0x28] sm:$0xff]  ;;  %v7865_v52 = vld [vmem:[%s12438_s6 + $0x50] sm:$0xff] }
 0xccc   : > { %v7084_v57 = vor.u32 %v7082_v45, %v7081_v14  ;;  %7781 = vmatprep.subr.bf16.mxu0 %v10560_v48  ;;  %v9197_v31 = vpack.c.bf16 %v7860_v44, %v7859_v39  ;;  %v9200_v45 = vpack.c.bf16 %v7862_v46, %v7861_v2  ;;  %v7864_v48 = vld [vmem:[%s12438_s6 + $0x48] sm:$0xff] }
 0xccd   : > { %v7091_v59 = vor.u32 %v7089_v7, %v7088_v55  ;;  %v9203_v50 = vpack.c.bf16 %v7864_v48, %v7863_v47  ;;  %v7866_v7 = vld [vmem:[%s12438_s6 + $0x58] sm:$0xff]  ;;  %v7867_v55 = vld [vmem:[%s12438_s6 + $0x60] sm:$0xff] }
 0xcce   : > { %v12252_v49 = vsel %vm11367_vm9, 0, %v7084_v57  ;;  %v9206_v14 = vpack.c.bf16 %v7866_v7, %v7865_v52 }
 0xccf   : > { %7782 = vmatpush1.bf16.msra.mxu0 %v10558_v56  ;;  %v7095_v53 = vsel %vm11367_vm9, 0, %v7091_v59  ;;  %v7606_v19 = vshll.u32 %v12252_v49, 16  ;;  %v7604_v26 = vshrl.u32 %v12252_v49, 16  ;;  %v7868_v56 = vld [vmem:[%s12438_s6 + $0x68] sm:$0xff]  ;;  %v7870_v59 = vld [vmem:[%s12438_s6 + $0x78] sm:$0xff] }
 0xcd0   : > { %7561 = vmatprep.mubr.bf16.mxu1 %v7095_v53  ;;  %v7611_v60 = vshrl.u32 %v7095_v53, 16  ;;  %v7613_v61 = vshll.u32 %v7095_v53, 16  ;;  %7783 = vmatprep.subr.bf16.mxu0 %v10563_v58  ;;  %v9209_v57 = vpack.c.bf16 %v7868_v56, %v7867_v55  ;;  %v7869_v58 = vld [vmem:[%s12438_s6 + $0x70] sm:$0xff] }
 0xcd1   : > { %7562 = vmatmul.mubr.bf16.vlgmr.msra.gmra.mrb[72].mxu1 %v12252_v49  ;;  %v7608_v27 = vrot.slane %v7606_v19, 1  ;;  %v9212_v49 = vpack.c.bf16 %v7870_v59, %v7869_v58 }
 0xcd2   : > { %v7615_v63 = vrot.slane %v7613_v61, 1  ;;  %9192 = vmatpush3.bf16.msra.mxu1 %v9191_v36  ;;  %9187 = vmatprep.mubr.msk.f32.mxu1 %vm10831_vm5, %v10829_v30 }
 0xcd3   : > { %7784 = vmatpush1.bf16.msra.mxu0 %v10561_v54  ;;  %v7609_v28 = vor.u32 %v7608_v27, %v7604_v26  ;;  %9193 = vmatprep.subr.bf16.mxu1 %v10830_v0 }
 0xcd4   : > { %7785 = vmatprep.subr.bf16.mxu0 %v10566_v62  ;;  %v7616_v1 = vor.u32 %v7615_v63, %v7611_v60 }
 0xcd6   : > { %7811 = vmatprep.mubr.bf16.mxu0 %v7616_v1  ;;  %9195 = vmatpush3.bf16.msra.mxu1 %v9194_v43 }
 0xcd7   : > { %7786 = vmatpush1.bf16.msra.mxu0 %v10564_v32  ;;  %9196 = vmatprep.subr.bf16.mxu1 %v10830_v0 }
 0xcd8   : > { %7787 = vmatprep.subr.bf16.mxu0 %v10569_v24 }
 0xcda   : > { %9198 = vmatpush3.bf16.msra.mxu1 %v9197_v31 }
 0xcdb   : > { %7788 = vmatpush1.bf16.msra.mxu0 %v10567_v37  ;;  %9199 = vmatprep.subr.bf16.mxu1 %v10830_v0 }
 0xcdc   : > { %7789 = vmatprep.subr.bf16.mxu0 %v10572_v10  ;;  %v7822_v10 = vld [vmem:[%s12439_s24] sm:$0x3] }
 0xcdd   : > { %v7831_v30 = vrot.slane %v7822_v10, %v11284_v23 }
 0xcde   : > { %9201 = vmatpush3.bf16.msra.mxu1 %v9200_v45 }
 0xcdf   : > { %7790 = vmatpush1.bf16.msra.mxu0 %v10570_v38  ;;  %9202 = vmatprep.subr.bf16.mxu1 %v10830_v0  ;;  %v7827_v38 = vrot.slane %v7822_v10, %v11277_v20 }
 0xce0   : > { %7791 = vmatprep.subr.bf16.mxu0 %v10575_v25 }
 0xce2   : > { %9204 = vmatpush3.bf16.msra.mxu1 %v9203_v50 }
 0xce3   : > { %7792 = vmatpush1.bf16.msra.mxu0 %v10573_v3  ;;  %9205 = vmatprep.subr.bf16.mxu1 %v10830_v0 }
 0xce4   : > { %7793 = vmatprep.subr.bf16.mxu0 %v10578_v4 }
 0xce6   : > { %9207 = vmatpush3.bf16.msra.mxu1 %v9206_v14 }
 0xce7   : > { %7794 = vmatpush1.bf16.msra.mxu0 %v10576_v34  ;;  %9208 = vmatprep.subr.bf16.mxu1 %v10830_v0 }
 0xce8   : > { %7795 = vmatprep.subr.bf16.mxu0 %v10581_v5 }
 0xcea   : > { %9210 = vmatpush3.bf16.msra.mxu1 %v9209_v57 }
 0xceb   : > { %7796 = vmatpush1.bf16.msra.mxu0 %v10579_v6  ;;  %9211 = vmatprep.subr.bf16.mxu1 %v10830_v0 }
 0xcec   : > { %7797 = vmatprep.subr.bf16.mxu0 %v10584_v8 }
 0xcee   : > { %9213 = vmatpush3.bf16.msra.mxu1 %v9212_v49 }
 0xcef   : > { %7798 = vmatpush1.bf16.msra.mxu0 %v10582_v51 }
 0xcf0   : > { %7799 = vmatprep.subr.bf16.mxu0 %v10587_v9 }
 0xcf3   : > { %7800 = vmatpush1.bf16.msra.mxu0 %v10585_v11 }
 0xcf4   : > { %7801 = vmatprep.subr.bf16.mxu0 %v10590_v12 }
 0xcf7   : > { %7802 = vmatpush1.bf16.msra.mxu0 %v10588_v13 }
 0xcf8   : > { %7803 = vmatprep.subr.bf16.mxu0 %v10593_v41 }
 0xcfb   : > { %7804 = vmatpush1.bf16.msra.mxu0 %v10591_v15 }
 0xcfc   : > { %7805 = vmatprep.subr.bf16.mxu0 %v10596_v16 }
 0xcff   : > { %7806 = vmatpush1.bf16.msra.mxu0 %v10594_v17 }
 0xd00   : > { %7807 = vmatprep.subr.bf16.mxu0 %v10599_v18 }
 0xd03   : > { %7808 = vmatpush1.bf16.msra.mxu0 %v10597_v29 }
 0xd04   : > { %7809 = vmatprep.subr.bf16.mxu0 %v10602_v21 }
 0xd07   : > { %7810 = vmatpush1.bf16.msra.mxu0 %v10600_v22 }
 0xd0a   : > { %7812 = vmatmul.mubr.bf16.vlgmr.msra.gmra.mrb[40].mxu0 %v7609_v28 }
 0xd9d   : > { %v7362_v53 = vpop.f32.mrb[36].mxu0 }
 0xd9e   : > { %v7364_v54 = vpop.f32.mrb[37].mxu0 }
 0xd9f   : > { %v7366_v60 = vpop.f32.mrb[38].mxu0 }
 0xda0   : > { %v7367_v61 = vpop.f32.mrb[39].mxu0 }
 0xda4   : > { %v7563_v62 = vpop.f32.mrb[72].mxu1 }
 0xda5   : > { %v7564_v63 = vadd.f32 %v7563_v62, %v7362_v53  ;;  %v7565_v32 = vpop.f32.mrb[73].mxu1 }
 0xda6   : > { %v7566_v24 = vadd.f32 %v7565_v32, %v7364_v54  ;;  %v7567_v1 = vpop.f32.mrb[74].mxu1 }
 0xda7   : > { %v7568_v37 = vpop.f32.mrb[75].mxu1 }
 0xddd   : > { %v7813_v25 = vpop.f32.mrb[40].mxu0 }
 0xdde   : > { %v7820_v3 = vadd.f32 %v7813_v25, %v7564_v63  ;;  %v7815_v4 = vpop.f32.mrb[41].mxu0 }
 0xddf   : > { %v7821_v34 = vadd.f32 %v7815_v4, %v7566_v24  ;;  %v7817_v5 = vpop.f32.mrb[42].mxu0 }
 0xde0   : > { %v7834_v6 = vadd.f32 %v7827_v38, %v7820_v3  ;;  %v7818_v8 = vpop.f32.mrb[43].mxu0 }
 0xde1   : > { %v7835_v51 = vadd.f32 %v7831_v30, %v7821_v34 }
 0xde2   : > { %v7836_v9 = vmax.f32 %v7834_v6, 0.0 }
 0xde3   : > { %v7837_v11 = vmax.f32 %v7835_v51, 0.0 }
 0xde4   : > { %v7838_v12 = vsel %vm5471_vm0, %v7836_v9, 0.0 }
 0xde5   : > { %v7839_v13 = vrot.slane %v7838_v12, 4  ;;  %v7845_v41 = vsel %vm5471_vm0, %v7837_v11, 0.0 }
 0xde6   : > { %v7846_v15 = vrot.slane %v7845_v41, 4 }
 0xde7   : > { %v7840_v20 = vadd.f32 %v7839_v13, %v7838_v12 }
 0xde8   : > { %v7847_v16 = vadd.f32 %v7846_v15, %v7845_v41 }
 0xde9   : > { %v7841_v23 = vrot.slane %v7840_v20, 2 }
 0xdea   : > { %v7848_v17 = vrot.slane %v7847_v16, 2 }
 0xdeb   : > { %v7842_v18 = vadd.f32 %v7841_v23, %v7840_v20 }
 0xdec   : > { %v7849_v29 = vadd.f32 %v7848_v17, %v7847_v16 }
 0xded   : > { %v7843_v19 = vrot.slane %v7842_v18, 1 }
 0xdee   : > { %v7850_v21 = vrot.slane %v7849_v29, 1 }
 0xdef   : > { %v7844_v22 = vadd.f32 %v7843_v19, %v7842_v18 }
 0xdf0   : > { %v7851_v26 = vadd.f32 %v7850_v21, %v7849_v29 }
 0xdf2   : > { %v7853_v27 = vadd.f32 %v7851_v26, %v7844_v22 }
 0xdf4   : > { %v7854_v28 = vmul.f32 0.25, %v7853_v27 }
 0xdf6   : > { %9188 = vmatmul.mubr.f32.vlgmr.msra.gmra.mrb[76].mxu1 %v7854_v28 }
 0xec9   : > { %v7938_v35 = vpop.f32.mrb[76].mxu1 }
 0xeca   : > { %v7939_v0 = vadd.f32 %v7938_v35, %v7871_v33  ;;  %v9189_v36 = vpop.f32.mrb[77].mxu1 }
 0xecc   : > { %7943 = vst.msk [vmem:[%s613_s25] sm:$0x1] %vm7942_vm6, %v7939_v0 }
 0xecd   : > { %10756 = shalt.err (!%p10753_p0)
}
 0xece   : > { %s10757_s24 = scalar_lea.hbm %s12323_s30, 16  ;;  %s10761_s15 = scalar_lea.hbm %s12443_s23, 32 }
 0xecf   : > { %p10758_p10 = scmp.ne.s32.totalorder %s12323_s30, %s10757_s24  ;;  %p10762_p4 = scmp.lt.u32.totalorder %s12323_s30, %s12443_s23 }
 0xed0   : > { %p10763_p12 = scmp.lt.u32.totalorder %s10761_s15, %s10757_s24  ;;  %p10765_p8 = scmp.lt.u32.totalorder %s10757_s24, %s12323_s30 }
 0xed1   : > { %p10759_p2 = pnand %p10758_p10, %p12444_p11 }
 0xed2   : > { %p10764_p7 = por %p10763_p12, %p10762_p4 }
 0xed3   : > { %p10760_p3 = pneg %p10759_p2 }
 0xed4   : > { %p10766_p13 = por %p10765_p8, %p10764_p7 }
 0xed6   : > { %p10767_p1 = pnand %p10766_p13, %p10760_p3 }
 0xed8   : > { %10770 = shalt.err (!%p10767_p1)
}
 0xed9   : > { %9287 = dma.vmem_to_hbm [thread:$0]  (%p12444_p11), %s12325_s1, 16, %s12323_s30, %s7945_s14  }
 0xeda PF: > { %s12445_s16 = sld [smem:[#allocation19_spill]]  ;;  %s12446_s25 = sld [smem:[#allocation16_spill]] }
 0xedb   : > { %s12447_s22 = sld [smem:[#allocation23_spill]] }
 0xee0   : > { %p9319_p6 = scmp.ge.s32.totalorder %s12445_s16, 2  ;;  %s7969_s19 = sand.u32 1, %s12446_s25  }
 0xee1   : > { %p12448_p9 = scmp.ne.s32.totalorder %s12447_s22, 0  ;;  %s7970_s17 = scalar_lea.sflag [#allocation4], %s7969_s19 }
 0xee3   : > { %p9306_p5 = pnand %p9319_p6, %p12448_p9 }
 0xee5   : > { %10800 = dma.done.wait (!%p9306_p5), %s7970_s17, 16  }
 0xee6   : > { %10802 = vsyncadd (!%p9306_p5), %s7970_s17, 4294967280  ;;  %s12449_s27 = sld [smem:[#allocation20_spill]]  ;;  %s12450_s24 = sld [smem:[#allocation17_spill]] }
 0xee7   : > { %s12451_s25 = sld [smem:[#allocation18_spill]]  ;;  %s12452_s26 = sld [smem:[#allocation21_spill]] }
 0xeec   : > { %p30_p0 = scmp.ge.s32.totalorder %s12449_s27, 4  }
 0xeee   :  { %32 = sbr.rel (!%p30_p0) target bundleno = 15 (0xf), region = 159 }
 0xef5   :  { %7974 = vsyncpa [#allocation3], 1 }
 0xef6   :  { %7976 = vsyncpa [#allocation3 + $0x1], 1 }
 0xef7   :  { %7977 = vsyncpa [#allocation6], 1 }
 0xef8   :  { %7978 = vsyncpa [#allocation9], 1 }
 0xef9   :  { %7979 = vsyncpa [#allocation4], 1 }
 0xefa   :  { %7981 = vsyncpa [#allocation4 + $0x1], 1 }

</bundles_post_ra>
